<compile_context>
chip_gen: v6e
topology: v6e:2x2x1
jax: 0.10.0
libtpu: 0.0.40
codegen_flags: <defaults>
</compile_context>

<pallas_src>
import jax
import jax.numpy as jnp
from jax.experimental import pallas as pl
from jax.experimental.pallas import tpu as pltpu


def _round_up(x, m):
    return ((x + m - 1) // m) * m


def face_side_kernel(x_ref, wproj_ref, w1_ref, b1_ref, w2_ref, b2_ref, out_ref):
    """One grid step == one batch tile of TB pooled feature vectors.

    x_ref    : (TB, Cpad)      bf16 pooled (global-avg) inputs, zero-padded lanes
    wproj_ref: (Cpad, 2048)    bf16 surrogate backbone projection (1x1 conv)
    w1_ref   : (2048, 1024)    bf16 self.fc weight (in x out)
    b1_ref   : (1, 1024)       f32  self.fc bias
    w2_ref   : (1024, Clspad)  bf16 self.output weight (in x out), zero-padded cols
    b2_ref   : (1, Clspad)     f32  self.output bias, zero-padded
    out_ref  : (TB, Clspad)    f32  logits (lane-dense, sliced in the wrapper)
    """
    x = x_ref[...]                                                    # (TB, Cpad) bf16

    # --- backbone surrogate projection (pool already applied, commuted) ---
    feat = jnp.dot(x, wproj_ref[...],
                   preferred_element_type=jnp.float32)                # (TB, 2048) f32

    # --- self.fc: Linear(2048, 1024) ---
    h = jnp.dot(feat.astype(w1_ref.dtype), w1_ref[...],
                preferred_element_type=jnp.float32) + b1_ref[...]     # (TB, 1024) f32

    # --- self.dropout(0.5): eval-mode identity ---
    # TODO(synk): training-mode dropout would use pltpu.prng_seed +
    #             pltpu.prng_random_bits; torch's RNG stream cannot be matched,
    #             so inference semantics are used here.

    # --- self.relu ---
    h = jnp.maximum(h, 0.0)

    # --- self.output: Linear(1024, num_classes) ---
    logits = jnp.dot(h.astype(w2_ref.dtype), w2_ref[...],
                     preferred_element_type=jnp.float32) + b2_ref[...]  # (TB, Clspad)

    out_ref[...] = logits.astype(out_ref.dtype)


def face_side_classifier(x_nchw, params, *, tb_max=128):
    """x_nchw: (N, C, H, W) float32.  Returns logits (N, num_classes) float32."""
    wproj, w1, b1, w2, b2 = params
    N, C, H, W = x_nchw.shape
    num_classes = w2.shape[1]

    # AdaptiveAvgPool2d((1,1)) commuted in front of the (linear) projection:
    # exact algebra, removes the (HW, Cin) x (Cin, 2048) matmul from the kernel.
    pooled = jnp.mean(x_nchw, axis=(2, 3))                 # (N, C) f32

    # Lane-dense padding: channels and classes padded to multiples of 128 lanes.
    LANE = 128
    c_pad = _round_up(max(C, LANE), LANE)
    cls_pad = _round_up(max(num_classes, LANE), LANE)

    # Batch tile: at least 8 (sublane), at most tb_max (MXU-friendly).
    # tb_max=128 keeps the tile valid on v5e's 128-wide MXU and small enough
    # for v7x's 64 MiB VMEM; larger batches get >= 2 grid steps so both v7x
    # TensorCores are used via dimension_semantics=("parallel",).
    n_pad8 = _round_up(max(N, 1), 8)
    tb = min(tb_max, n_pad8)
    n_pad = _round_up(n_pad8, tb)

    pooled_p = jnp.zeros((n_pad, c_pad), jnp.float32).at[:N, :C].set(pooled)
    wproj_p = jnp.zeros((c_pad, 2048), jnp.float32).at[:C, :].set(wproj)
    w2_p = jnp.zeros((1024, cls_pad), jnp.float32).at[:, :num_classes].set(w2)
    b2_p = jnp.zeros((1, cls_pad), jnp.float32).at[:, :num_classes].set(b2)

    # bf16 operands for the MXU; accumulation stays f32 inside the kernel.
    x_bf = pooled_p.astype(jnp.bfloat16)
    wproj_bf = wproj_p.astype(jnp.bfloat16)
    w1_bf = w1.astype(jnp.bfloat16)
    w2_bf = w2_p.astype(jnp.bfloat16)
    b1_f = b1.astype(jnp.float32)

    grid = (n_pad // tb,)

    flops = 2 * n_pad * (c_pad * 2048 + 2048 * 1024 + 1024 * cls_pad)
    bytes_accessed = (
        x_bf.size * 2 + wproj_bf.size * 2 + w1_bf.size * 2 + w2_bf.size * 2
        + b1_f.size * 4 + b2_p.size * 4 + n_pad * cls_pad * 4)

    out = pl.pallas_call(
        face_side_kernel,
        out_shape=jax.ShapeDtypeStruct((n_pad, cls_pad), jnp.float32),
        grid=grid,
        in_specs=[
            pl.BlockSpec((tb, c_pad), lambda b: (b, 0)),       # batch tile of inputs
            pl.BlockSpec((c_pad, 2048), lambda b: (0, 0)),     # weights: constant
            pl.BlockSpec((2048, 1024), lambda b: (0, 0)),      # block index -> no
            pl.BlockSpec((1, 1024), lambda b: (0, 0)),         # re-DMA across grid
            pl.BlockSpec((1024, cls_pad), lambda b: (0, 0)),
            pl.BlockSpec((1, cls_pad), lambda b: (0, 0)),
        ],
        out_specs=pl.BlockSpec((tb, cls_pad), lambda b: (b, 0)),
        compiler_params=pltpu.CompilerParams(
            dimension_semantics=("parallel",)),
        cost_estimate=pl.CostEstimate(
            flops=flops, transcendentals=0, bytes_accessed=bytes_accessed),
    )(x_bf, wproj_bf, w1_bf, b1_f, w2_bf, b2_p)

    return out[:N, :num_classes]


def init_params(key, cin, num_classes=2):
    """Deterministic synthetic parameters (shapes from the module __init__)."""
    k0, k1, k2, k3, k4 = jax.random.split(key, 5)
    wproj = jax.random.normal(k0, (cin, 2048), jnp.float32) * 0.05
    w1 = jax.random.normal(k1, (2048, 1024), jnp.float32) * (1.0 / 2048 ** 0.5)
    b1 = jax.random.normal(k2, (1, 1024), jnp.float32) * 0.01
    w2 = jax.random.normal(k3, (1024, num_classes), jnp.float32) * (1.0 / 1024 ** 0.5)
    b2 = jax.random.normal(k4, (1, num_classes), jnp.float32) * 0.01
    return wproj, w1, b1, w2, b2


def reference_forward(x_nchw, params):
    """Pure-JAX reference with the same bf16/f32 precision recipe.

    (Pooling before the projection is exactly equivalent to the original
    "project then AdaptiveAvgPool2d" because the pool is a linear mean.)
    """
    wproj, w1, b1, w2, b2 = params
    pooled = jnp.mean(x_nchw, axis=(2, 3))
    feat = jnp.dot(pooled.astype(jnp.bfloat16), wproj.astype(jnp.bfloat16),
                   preferred_element_type=jnp.float32)
    h = jnp.dot(feat.astype(jnp.bfloat16), w1.astype(jnp.bfloat16),
                preferred_element_type=jnp.float32) + b1
    h = jnp.maximum(h, 0.0)                       # fc -> (dropout=id) -> relu
    return jnp.dot(h.astype(jnp.bfloat16), w2.astype(jnp.bfloat16),
                   preferred_element_type=jnp.float32) + b2


if __name__ == "__main__":
    key = jax.random.PRNGKey(0)
    kx, kp = jax.random.split(key)

    # Small, module-consistent shapes: batch=2, channels=4, spatial=16x16.
    N, C, H, W = 2, 4, 16, 16
    num_classes = 2

    x = jax.random.normal(kx, (N, C, H, W), jnp.float32)
    params = init_params(kp, C, num_classes)

    logits = jax.block_until_ready(face_side_classifier(x, params))
    ref = jax.block_until_ready(reference_forward(x, params))

    assert logits.shape == (N, num_classes)
    assert jnp.allclose(logits, ref, atol=1e-3, rtol=1e-2), (logits, ref)

    print("KERNEL_OK")
</pallas_src>

<mosaic_0001>
module attributes {stable_mosaic.version = 11 : i64} {
  func.func @face_side_kernel(%arg0: i32, %arg1: memref<8x128xbf16, #tpu.memory_space<vmem>>, %arg2: memref<128x2048xbf16, #tpu.memory_space<vmem>>, %arg3: memref<2048x1024xbf16, #tpu.memory_space<vmem>>, %arg4: memref<1x1024xf32, #tpu.memory_space<vmem>>, %arg5: memref<1024x128xbf16, #tpu.memory_space<vmem>>, %arg6: memref<1x128xf32, #tpu.memory_space<vmem>>, %arg7: memref<8x128xf32, #tpu.memory_space<vmem>>) attributes {dimension_semantics = [#tpu.dimension_semantics<parallel>], iteration_bounds = array<i64: 1>, scalar_prefetch = 0 : i64, scratch_operands = 0 : i64, tpu.core_type = #tpu.core_type<tc>, window_params = [{transform_indices = @transform_0, window_bounds = array<i64: 8, 128>}, {pipeline_mode = #tpu.pipeline_mode<synchronous>, transform_indices = @transform_1, window_bounds = array<i64: 128, 2048>}, {pipeline_mode = #tpu.pipeline_mode<synchronous>, transform_indices = @transform_2, window_bounds = array<i64: 2048, 1024>}, {pipeline_mode = #tpu.pipeline_mode<synchronous>, transform_indices = @transform_3, window_bounds = array<i64: 1, 1024>}, {pipeline_mode = #tpu.pipeline_mode<synchronous>, transform_indices = @transform_4, window_bounds = array<i64: 1024, 128>}, {pipeline_mode = #tpu.pipeline_mode<synchronous>, transform_indices = @transform_5, window_bounds = array<i64: 1, 128>}, {transform_indices = @transform_6, window_bounds = array<i64: 8, 128>}]} {
    %c0 = arith.constant 0 : index
    %c0_0 = arith.constant 0 : index
    %0 = vector.load %arg1[%c0, %c0_0] : memref<8x128xbf16, #tpu.memory_space<vmem>>, vector<8x128xbf16>
    %c0_1 = arith.constant 0 : index
    %c0_2 = arith.constant 0 : index
    %1 = vector.load %arg2[%c0_1, %c0_2] : memref<128x2048xbf16, #tpu.memory_space<vmem>>, vector<128x2048xbf16>
    %cst = arith.constant dense<0.000000e+00> : vector<8x2048xf32>
    %2 = tpu.matmul %0, %1, %cst {dimension_numbers = #tpu.dot_dimension_numbers<[1], [0], [0], [1], [0, 0, 1, 1], [], []>} : vector<8x128xbf16>, vector<128x2048xbf16>, vector<8x2048xf32> -> vector<8x2048xf32>
    %3 = arith.truncf %2 : vector<8x2048xf32> to vector<8x2048xbf16>
    %c0_3 = arith.constant 0 : index
    %c0_4 = arith.constant 0 : index
    %4 = vector.load %arg3[%c0_3, %c0_4] : memref<2048x1024xbf16, #tpu.memory_space<vmem>>, vector<2048x1024xbf16>
    %cst_5 = arith.constant dense<0.000000e+00> : vector<8x1024xf32>
    %5 = tpu.matmul %3, %4, %cst_5 {dimension_numbers = #tpu.dot_dimension_numbers<[1], [0], [0], [1], [0, 0, 1, 1], [], []>} : vector<8x2048xbf16>, vector<2048x1024xbf16>, vector<8x1024xf32> -> vector<8x1024xf32>
    %c0_6 = arith.constant 0 : index
    %c0_7 = arith.constant 0 : index
    %6 = vector.load %arg4[%c0_6, %c0_7] : memref<1x1024xf32, #tpu.memory_space<vmem>>, vector<1x1024xf32>
    %7 = vector.broadcast %6 : vector<1x1024xf32> to vector<8x1024xf32>
    %8 = arith.addf %5, %7 : vector<8x1024xf32>
    %cst_8 = arith.constant 0.000000e+00 : f32
    %9 = vector.broadcast %cst_8 : f32 to vector<8x1024xf32>
    %10 = arith.maximumf %8, %9 : vector<8x1024xf32>
    %11 = arith.truncf %10 : vector<8x1024xf32> to vector<8x1024xbf16>
    %c0_9 = arith.constant 0 : index
    %c0_10 = arith.constant 0 : index
    %12 = vector.load %arg5[%c0_9, %c0_10] : memref<1024x128xbf16, #tpu.memory_space<vmem>>, vector<1024x128xbf16>
    %cst_11 = arith.constant dense<0.000000e+00> : vector<8x128xf32>
    %13 = tpu.matmul %11, %12, %cst_11 {dimension_numbers = #tpu.dot_dimension_numbers<[1], [0], [0], [1], [0, 0, 1, 1], [], []>} : vector<8x1024xbf16>, vector<1024x128xbf16>, vector<8x128xf32> -> vector<8x128xf32>
    %c0_12 = arith.constant 0 : index
    %c0_13 = arith.constant 0 : index
    %14 = vector.load %arg6[%c0_12, %c0_13] : memref<1x128xf32, #tpu.memory_space<vmem>>, vector<1x128xf32>
    %15 = vector.broadcast %14 : vector<1x128xf32> to vector<8x128xf32>
    %16 = arith.addf %13, %15 : vector<8x128xf32>
    %c0_14 = arith.constant 0 : index
    %c0_15 = arith.constant 0 : index
    %17 = vector.load %arg7[%c0_14, %c0_15] : memref<8x128xf32, #tpu.memory_space<vmem>>, vector<8x128xf32>
    tpu.vector_store %arg7[%c0_14, %c0_15], %16 {strides = array<i32>} : memref<8x128xf32, #tpu.memory_space<vmem>>, vector<8x128xf32>,
    return
  }
  func.func @transform_0(%arg0: i32) -> (i32, i32) {
    %c0_i32 = arith.constant 0 : i32
    %c0_i32_0 = arith.constant 0 : i32
    return %arg0, %c0_i32 : i32, i32
  }
  func.func @transform_1(%arg0: i32) -> (i32, i32) {
    %c0_i32 = arith.constant 0 : i32
    %c0_i32_0 = arith.constant 0 : i32
    %c0_i32_1 = arith.constant 0 : i32
    return %c0_i32, %c0_i32_0 : i32, i32
  }
  func.func @transform_2(%arg0: i32) -> (i32, i32) {
    %c0_i32 = arith.constant 0 : i32
    %c0_i32_0 = arith.constant 0 : i32
    %c0_i32_1 = arith.constant 0 : i32
    return %c0_i32, %c0_i32_0 : i32, i32
  }
  func.func @transform_3(%arg0: i32) -> (i32, i32) {
    %c0_i32 = arith.constant 0 : i32
    %c0_i32_0 = arith.constant 0 : i32
    %c0_i32_1 = arith.constant 0 : i32
    return %c0_i32, %c0_i32_0 : i32, i32
  }
  func.func @transform_4(%arg0: i32) -> (i32, i32) {
    %c0_i32 = arith.constant 0 : i32
    %c0_i32_0 = arith.constant 0 : i32
    %c0_i32_1 = arith.constant 0 : i32
    return %c0_i32, %c0_i32_0 : i32, i32
  }
  func.func @transform_5(%arg0: i32) -> (i32, i32) {
    %c0_i32 = arith.constant 0 : i32
    %c0_i32_0 = arith.constant 0 : i32
    %c0_i32_1 = arith.constant 0 : i32
    return %c0_i32, %c0_i32_0 : i32, i32
  }
  func.func @transform_6(%arg0: i32) -> (i32, i32) {
    %c0_i32 = arith.constant 0 : i32
    %c0_i32_0 = arith.constant 0 : i32
    return %arg0, %c0_i32 : i32, i32
  }
}

</mosaic_0001>

<bundles_post_ra>
// kernel: tpu_custom_call.1
= control target key start
LH: loop header
LB: loop body
LE: loop exit
PB: predicated region body
PF: predicated region fallthrough
CT: control target
= control target key end

     0   :  { %11 = vsyncpa [#allocation3], 0  ;;  %s11267_s0 = inlined_call_operand.hbm [shape: bf16[8,128], index: 0, kind: input, shape index: {}]   ;;  %s11268_s1 = inlined_call_operand.hbm [shape: bf16[128,2048], index: 1, kind: input, shape index: {}]   ;;  %s11269_s2 = inlined_call_operand.hbm [shape: bf16[2048,1024], index: 2, kind: input, shape index: {}]   ;;  %s11270_s3 = inlined_call_operand.hbm [shape: f32[1,1024], index: 3, kind: input, shape index: {}]   ;;  %s11271_s4 = inlined_call_operand.hbm [shape: bf16[1024,128], index: 4, kind: input, shape index: {}]   ;;  %s11272_s5 = inlined_call_operand.hbm [shape: f32[1,128], index: 5, kind: input, shape index: {}]   ;;  %s11273_s6 = inlined_call_operand.hbm [shape: f32[8,128], index: 6, kind: output, shape index: {}]  }
   0x1   :  { %12 = vsyncpa [#allocation6], 0 }
   0x2   :  { %13 = vsyncpa [#allocation9], 0 }
   0x3   :  { %14 = vsyncpa [#allocation12], 0 }
   0x4   :  { %15 = vsyncpa [#allocation4], 0  ;;  %s10961_s21 = smov [#allocation5]  }
   0x5   :  { %s31_s22 = sshll.u32 %s10961_s21, 4  ;;  %s32_s22 = int_to_ptr.vmem [resolvable:$true] %s31_s22 }
   0x6   :  { %s10819_s23 = scalar_lea.vmem %s32_s22, 16384  ;;  %p10824_p1 = scmp.lt.s32.totalorder %s32_s22, %s32_s22 }
   0x7   :  { %p10820_p0 = scmp.ne.s32.totalorder %s32_s22, %s10819_s23  ;;  %p10825_p2 = scmp.lt.s32.totalorder %s10819_s23, %s10819_s23 }
   0x9   :  { %p10826_p3 = por %p10825_p2, %p10824_p1 }
   0xb   :  { %p10827_p4 = pnand %p10826_p3, %p10820_p0 }
   0xd   :  { %10830 = shalt.err (!%p10827_p4)
}
   0xe   :  { %s10962_s24 = smov 1024   ;;  %s10963_s25 = smov 64  }
   0xf   :  { %37 = dma.hbm_to_vmem [thread:$0]  %s11268_s1, 16384, %s32_s22, [#allocation6], %s10962_s24, %s10962_s24, %s10963_s25  }
  0x10   :  { %s10964_s28 = smov [#allocation8]   ;;  %s10965_s30 = smov [#allocation2]  }
  0x11   :  { %s56_s29 = sshll.u32 %s10964_s28, 4  ;;  %s22_s7 = sshll.u32 %s10965_s30, 4  ;;  %s57_s29 = int_to_ptr.vmem [resolvable:$true] %s56_s29  ;;  %s23_s7 = int_to_ptr.vmem [resolvable:$true] %s22_s7 }
  0x12   :  { %s10839_s8 = scalar_lea.vmem %s57_s29, 128  ;;  %p10844_p6 = scmp.lt.s32.totalorder %s57_s29, %s57_s29 }
  0x13   :  { %p10840_p5 = scmp.ne.s32.totalorder %s57_s29, %s10839_s8  ;;  %p10845_p7 = scmp.lt.s32.totalorder %s10839_s8, %s10839_s8 }
  0x15   :  { %p10846_p8 = por %p10845_p7, %p10844_p6 }
  0x17   :  { %p10847_p9 = pnand %p10846_p8, %p10840_p5 }
  0x19   :  { %10850 = shalt.err (!%p10847_p9)
}
  0x1a   :  { %59 = dma.hbm_to_vmem [thread:$0]  %s11270_s3, 128, %s57_s29, [#allocation9]  }
  0x1b   :  { %s10859_s11 = scalar_lea.vmem %s23_s7, 64  ;;  %p10864_p11 = scmp.lt.s32.totalorder %s23_s7, %s23_s7 }
  0x1c   :  { %p10860_p10 = scmp.ne.s32.totalorder %s23_s7, %s10859_s11  ;;  %p10865_p12 = scmp.lt.s32.totalorder %s10859_s11, %s10859_s11 }
  0x1e   :  { %p10866_p13 = por %p10865_p12, %p10864_p11 }
  0x20   :  { %p10867_p0 = pnand %p10866_p13, %p10860_p10 }
  0x22   :  { %10870 = shalt.err (!%p10867_p0)
}
  0x23   :  { %25 = dma.hbm_to_vmem [thread:$0]  %s11267_s0, 64, %s23_s7, [#allocation3]  }
  0x24   :  { %s10966_s13 = smov [#allocation7]  }
  0x25   :  { %s43_s14 = sshll.u32 %s10966_s13, 4  ;;  %s44_s14 = int_to_ptr.vmem [resolvable:$true] %s43_s14 }
  0x26   :  { %s10879_s15 = scalar_lea.vmem %s44_s14, 131072  ;;  %p10884_p2 = scmp.lt.s32.totalorder %s44_s14, %s44_s14 }
  0x27   :  { %p10880_p1 = scmp.ne.s32.totalorder %s44_s14, %s10879_s15  ;;  %p10885_p3 = scmp.lt.s32.totalorder %s10879_s15, %s10879_s15 }
  0x29   :  { %p10886_p4 = por %p10885_p3, %p10884_p2 }
  0x2b   :  { %p10887_p5 = pnand %p10886_p4, %p10880_p1 }
  0x2d   :  { %10890 = shalt.err (!%p10887_p5)
}
  0x2e   :  { %s10967_s3 = smov 512   ;;  %s10968_s16 = smov 32  }
  0x2f   :  { %49 = dma.hbm_to_vmem [thread:$0]  %s11269_s2, 131072, %s44_s14, [#allocation6], %s10967_s3, %s10967_s3, %s10968_s16  }
  0x30   :  { %s10969_s19 = smov [#allocation10]   ;;  %s10970_s0 = smov [#allocation11]  }
  0x31   :  { %s65_s20 = sshll.u32 %s10969_s19, 4  ;;  %s78_s21 = sshll.u32 %s10970_s0, 4  ;;  %s66_s20 = int_to_ptr.vmem [resolvable:$true] %s65_s20  ;;  %s79_s21 = int_to_ptr.vmem [resolvable:$true] %s78_s21 }
  0x32   :  { %s10899_s22 = scalar_lea.vmem %s66_s20, 8192  ;;  %p10904_p7 = scmp.lt.s32.totalorder %s66_s20, %s66_s20 }
  0x33   :  { %p10900_p6 = scmp.ne.s32.totalorder %s66_s20, %s10899_s22  ;;  %p10905_p8 = scmp.lt.s32.totalorder %s10899_s22, %s10899_s22 }
  0x35   :  { %p10906_p9 = por %p10905_p8, %p10904_p7 }
  0x37   :  { %p10907_p10 = pnand %p10906_p9, %p10900_p6 }
  0x39   :  { %10910 = shalt.err (!%p10907_p10)
}
  0x3a   :  { %s10971_s23 = smov 4   ;;  %s10919_s2 = scalar_lea.vmem %s79_s21, 16 }
  0x3b   :  { %71 = dma.hbm_to_vmem [thread:$0]  %s11271_s4, 8192, %s66_s20, [#allocation9], %s10963_s25, %s10963_s25, %s10971_s23  }
  0x3c   :  { %p10920_p11 = scmp.ne.s32.totalorder %s79_s21, %s10919_s2  ;;  %s10923_s27 = scalar_lea.vmem %s79_s21, 32 }
  0x3d   :  { %p10924_p12 = scmp.lt.s32.totalorder %s79_s21, %s79_s21  ;;  %p10925_p13 = scmp.lt.s32.totalorder %s10923_s27, %s10919_s2 }
  0x3f   :  { %p10926_p0 = por %p10925_p13, %p10924_p12 }
  0x41   :  { %p10927_p1 = pnand %p10926_p0, %p10920_p11 }
  0x43   :  { %10930 = shalt.err (!%p10927_p1)
}
  0x44   :  { %81 = dma.hbm_to_vmem [thread:$0]  %s11272_s5, 16, %s79_s21, [#allocation12]  }
  0x45   :  { %10951 = dma.done.wait [#allocation3], 64  }
  0x46   :  { %10952 = vsyncadd [#allocation3], 4294967232 }
  0x47   :  { %10953 = dma.done.wait [#allocation6], 147456  }
  0x48   :  { %10954 = vsyncadd [#allocation6], 4294819840 }
  0x49   :  { %10955 = dma.done.wait [#allocation9], 8320  }
  0x4a   :  { %10956 = vsyncadd [#allocation9], 4294958976 }
  0x4b   :  { %10957 = dma.done.wait [#allocation12], 16  }
  0x4c   :  { %10958 = vsyncadd [#allocation12], 4294967280  ;;  %v10972_v0 = vmov 0   ;;  %v214_v1 = vld [vmem:[#allocation5 + $0x380] sm:$0xff]  ;;  %v215_v3 = vld [vmem:[#allocation5 + $0x388] sm:$0xff]  ;;  %s10973_s4 = smov [#allocation13]  }
  0x4d   :  { %902 = vmatprep.mubr.bf16.mxu0 %v10972_v0  ;;  %943 = vmatprep.mubr.bf16.mxu1 %v10972_v0  ;;  %v222_v2 = vld [vmem:[#allocation5 + $0x3c0] sm:$0xff]  ;;  %v223_v5 = vld [vmem:[#allocation5 + $0x3c8] sm:$0xff]  ;;  %v216_v63 = vld [vmem:[#allocation5 + $0x390] sm:$0xff]  ;;  %s9414_s5 = sshll.u32 %s10973_s4, 4  ;;  %s9415_s5 = int_to_ptr.vmem [resolvable:$true] %s9414_s5 }
  0x4e   :  { %v9539_v4 = vcombine.high %v214_v1, %v222_v2  ;;  %v9538_v6 = vcombine.low %v214_v1, %v222_v2  ;;  %v198_v7 = vld [vmem:[#allocation5 + $0x300] sm:$0xff]  ;;  %v9541_v9 = vcombine.high %v215_v3, %v223_v5  ;;  %v9540_v10 = vcombine.low %v215_v3, %v223_v5  ;;  %v199_v12 = vld [vmem:[#allocation5 + $0x308] sm:$0xff]  ;;  %v224_v1 = vld [vmem:[#allocation5 + $0x3d0] sm:$0xff]  ;;  %s10931_s25 = scalar_lea.vmem %s9415_s5, 128  ;;  %p10936_p3 = scmp.lt.s32.totalorder %s9415_s5, %s9415_s5 }
  0x4f   :  { %v206_v8 = vld [vmem:[#allocation5 + $0x340] sm:$0xff]  ;;  %v207_v13 = vld [vmem:[#allocation5 + $0x348] sm:$0xff]  ;;  %v217_v2 = vld [vmem:[#allocation5 + $0x398] sm:$0xff]  ;;  %p10932_p2 = scmp.ne.s32.totalorder %s9415_s5, %s10931_s25  ;;  %p10937_p4 = scmp.lt.s32.totalorder %s10931_s25, %s10931_s25 }
  0x50   :  { %v9523_v11 = vcombine.high %v198_v7, %v206_v8  ;;  %v182_v14 = vld [vmem:[#allocation5 + $0x280] sm:$0xff]  ;;  %870 = vmatprep.subr.bf16.mxu0 %v9539_v4  ;;  %v9525_v15 = vcombine.high %v199_v12, %v207_v13  ;;  %v183_v17 = vld [vmem:[#allocation5 + $0x288] sm:$0xff]  ;;  %911 = vmatprep.subr.bf16.mxu1 %v9541_v9  ;;  %v9522_v19 = vcombine.low %v198_v7, %v206_v8  ;;  %v225_v3 = vld [vmem:[#allocation5 + $0x3d8] sm:$0xff] }
  0x51   :  { %v190_v16 = vld [vmem:[#allocation5 + $0x2c0] sm:$0xff]  ;;  %v191_v18 = vld [vmem:[#allocation5 + $0x2c8] sm:$0xff]  ;;  %871 = vmatpush1.bf16.msra.mxu0 %v9538_v6  ;;  %912 = vmatpush1.bf16.msra.mxu1 %v9540_v10  ;;  %v9524_v20 = vcombine.low %v199_v12, %v207_v13  ;;  %v9543_v6 = vcombine.high %v216_v63, %v224_v1  ;;  %v9545_v7 = vcombine.high %v217_v2, %v225_v3  ;;  %v200_v8 = vld [vmem:[#allocation5 + $0x310] sm:$0xff]  ;;  %p10938_p5 = por %p10937_p4, %p10936_p3 }
  0x52   :  { %872 = vmatprep.subr.bf16.mxu0 %v9523_v11  ;;  %v9507_v21 = vcombine.high %v182_v14, %v190_v16  ;;  %913 = vmatprep.subr.bf16.mxu1 %v9525_v15  ;;  %v9509_v22 = vcombine.high %v183_v17, %v191_v18  ;;  %v166_v23 = vld [vmem:[#allocation5 + $0x200] sm:$0xff]  ;;  %v167_v25 = vld [vmem:[#allocation5 + $0x208] sm:$0xff]  ;;  %v9506_v27 = vcombine.low %v182_v14, %v190_v16  ;;  %v208_v9 = vld [vmem:[#allocation5 + $0x350] sm:$0xff] }
  0x53   :  { %v174_v24 = vld [vmem:[#allocation5 + $0x240] sm:$0xff]  ;;  %v175_v26 = vld [vmem:[#allocation5 + $0x248] sm:$0xff]  ;;  %v9508_v28 = vcombine.low %v183_v17, %v191_v18  ;;  %v201_v10 = vld [vmem:[#allocation5 + $0x318] sm:$0xff]  ;;  %v9542_v13 = vcombine.low %v216_v63, %v224_v1  ;;  %v9544_v14 = vcombine.low %v217_v2, %v225_v3  ;;  %v9527_v15 = vcombine.high %v200_v8, %v208_v9  ;;  %p10939_p6 = pnand %p10938_p5, %p10932_p2 }
  0x54   :  { %v9491_v29 = vcombine.high %v166_v23, %v174_v24  ;;  %v9493_v30 = vcombine.high %v167_v25, %v175_v26  ;;  %v150_v31 = vld [vmem:[#allocation5 + $0x180] sm:$0xff]  ;;  %v151_v33 = vld [vmem:[#allocation5 + $0x188] sm:$0xff]  ;;  %v9490_v35 = vcombine.low %v166_v23, %v174_v24  ;;  %v9492_v36 = vcombine.low %v167_v25, %v175_v26  ;;  %v209_v11 = vld [vmem:[#allocation5 + $0x358] sm:$0xff] }
  0x55   :  { %873 = vmatpush1.bf16.msra.mxu0 %v9522_v19  ;;  %914 = vmatpush1.bf16.msra.mxu1 %v9524_v20  ;;  %v158_v32 = vld [vmem:[#allocation5 + $0x1c0] sm:$0xff]  ;;  %v159_v34 = vld [vmem:[#allocation5 + $0x1c8] sm:$0xff]  ;;  %v11032_v12 = vld [vmem:[#allocation2] sm:$0xf]  ;;  %v9529_v16 = vcombine.high %v201_v10, %v209_v11 }
  0x56   :  { %874 = vmatprep.subr.bf16.mxu0 %v9507_v21  ;;  %915 = vmatprep.subr.bf16.mxu1 %v9509_v22  ;;  %v9475_v37 = vcombine.high %v150_v31, %v158_v32  ;;  %v9477_v38 = vcombine.high %v151_v33, %v159_v34  ;;  %v134_v39 = vld [vmem:[#allocation5 + $0x100] sm:$0xff]  ;;  %v135_v41 = vld [vmem:[#allocation5 + $0x108] sm:$0xff]  ;;  %v9474_v43 = vcombine.low %v150_v31, %v158_v32  ;;  %v184_v17 = vld [vmem:[#allocation5 + $0x290] sm:$0xff] }
  0x57   :  { %v142_v40 = vld [vmem:[#allocation5 + $0x140] sm:$0xff]  ;;  %v143_v42 = vld [vmem:[#allocation5 + $0x148] sm:$0xff]  ;;  %v9476_v44 = vcombine.low %v151_v33, %v159_v34  ;;  %v192_v18 = vld [vmem:[#allocation5 + $0x2d0] sm:$0xff]  ;;  %v9526_v21 = vcombine.low %v200_v8, %v208_v9  ;;  %v9528_v22 = vcombine.low %v201_v10, %v209_v11 }
  0x58   :  { %v9459_v45 = vcombine.high %v134_v39, %v142_v40  ;;  %v9461_v46 = vcombine.high %v135_v41, %v143_v42  ;;  %v118_v47 = vld [vmem:[#allocation5 + $0x80] sm:$0xff]  ;;  %v119_v49 = vld [vmem:[#allocation5 + $0x88] sm:$0xff]  ;;  %v9458_v51 = vcombine.low %v134_v39, %v142_v40  ;;  %v9460_v52 = vcombine.low %v135_v41, %v143_v42  ;;  %v185_v19 = vld [vmem:[#allocation5 + $0x298] sm:$0xff] }
  0x59   :  { %875 = vmatpush1.bf16.msra.mxu0 %v9506_v27  ;;  %916 = vmatpush1.bf16.msra.mxu1 %v9508_v28  ;;  %v126_v48 = vld [vmem:[#allocation5 + $0xc0] sm:$0xff]  ;;  %v127_v50 = vld [vmem:[#allocation5 + $0xc8] sm:$0xff]  ;;  %v193_v20 = vld [vmem:[#allocation5 + $0x2d8] sm:$0xff]  ;;  %v9511_v23 = vcombine.high %v184_v17, %v192_v18 }
  0x5a   :  { %876 = vmatprep.subr.bf16.mxu0 %v9491_v29  ;;  %917 = vmatprep.subr.bf16.mxu1 %v9493_v30  ;;  %v9443_v53 = vcombine.high %v118_v47, %v126_v48  ;;  %v9445_v54 = vcombine.high %v119_v49, %v127_v50  ;;  %v102_v55 = vld [vmem:[#allocation5] sm:$0xff]  ;;  %v103_v57 = vld [vmem:[#allocation5 + $0x8] sm:$0xff]  ;;  %v9442_v59 = vcombine.low %v118_v47, %v126_v48  ;;  %v168_v25 = vld [vmem:[#allocation5 + $0x210] sm:$0xff] }
  0x5b   :  { %v110_v56 = vld [vmem:[#allocation5 + $0x40] sm:$0xff]  ;;  %v111_v58 = vld [vmem:[#allocation5 + $0x48] sm:$0xff]  ;;  %v9444_v60 = vcombine.low %v119_v49, %v127_v50  ;;  %v9513_v24 = vcombine.high %v185_v19, %v193_v20  ;;  %v176_v26 = vld [vmem:[#allocation5 + $0x250] sm:$0xff]  ;;  %v9510_v29 = vcombine.low %v184_v17, %v192_v18  ;;  %v9512_v30 = vcombine.low %v185_v19, %v193_v20 }
  0x5c   :  { %v9427_v61 = vcombine.high %v102_v55, %v110_v56  ;;  %v9429_v62 = vcombine.high %v103_v57, %v111_v58  ;;  %v9426_v4 = vcombine.low %v102_v55, %v110_v56  ;;  %v9428_v5 = vcombine.low %v103_v57, %v111_v58  ;;  %v169_v27 = vld [vmem:[#allocation5 + $0x218] sm:$0xff]  ;;  %v152_v33 = vld [vmem:[#allocation5 + $0x190] sm:$0xff]  ;;  %v218_v2 = vld [vmem:[#allocation5 + $0x3a0] sm:$0xff] }
  0x5d   :  { %877 = vmatpush1.bf16.msra.mxu0 %v9490_v35  ;;  %918 = vmatpush1.bf16.msra.mxu1 %v9492_v36  ;;  %v177_v28 = vld [vmem:[#allocation5 + $0x258] sm:$0xff]  ;;  %v9495_v31 = vcombine.high %v168_v25, %v176_v26  ;;  %v160_v34 = vld [vmem:[#allocation5 + $0x1d0] sm:$0xff]  ;;  %v226_v3 = vld [vmem:[#allocation5 + $0x3e0] sm:$0xff] }
  0x5e   :  { %878 = vmatprep.subr.bf16.mxu0 %v9475_v37  ;;  %919 = vmatprep.subr.bf16.mxu1 %v9477_v38  ;;  %v9497_v32 = vcombine.high %v169_v27, %v177_v28  ;;  %v153_v35 = vld [vmem:[#allocation5 + $0x198] sm:$0xff]  ;;  %v9494_v37 = vcombine.low %v168_v25, %v176_v26  ;;  %v9496_v38 = vcombine.low %v169_v27, %v177_v28  ;;  %v136_v41 = vld [vmem:[#allocation5 + $0x110] sm:$0xff]  ;;  %v202_v9 = vld [vmem:[#allocation5 + $0x320] sm:$0xff] }
  0x5f   :  { %v161_v36 = vld [vmem:[#allocation5 + $0x1d8] sm:$0xff]  ;;  %v9479_v39 = vcombine.high %v152_v33, %v160_v34  ;;  %v144_v42 = vld [vmem:[#allocation5 + $0x150] sm:$0xff]  ;;  %v9547_v8 = vcombine.high %v218_v2, %v226_v3  ;;  %v210_v11 = vld [vmem:[#allocation5 + $0x360] sm:$0xff] }
  0x60   :  { %v9481_v40 = vcombine.high %v153_v35, %v161_v36  ;;  %v9463_v47 = vcombine.high %v136_v41, %v144_v42  ;;  %v120_v49 = vld [vmem:[#allocation5 + $0x90] sm:$0xff]  ;;  %v194_v17 = vld [vmem:[#allocation5 + $0x2e0] sm:$0xff]  ;;  %v9531_v19 = vcombine.high %v202_v9, %v210_v11  ;;  %v187_v20 = vld [vmem:[#allocation5 + $0x2a8] sm:$0xff] }
  0x61   :  { %879 = vmatpush1.bf16.msra.mxu0 %v9474_v43  ;;  %920 = vmatpush1.bf16.msra.mxu1 %v9476_v44  ;;  %v137_v43 = vld [vmem:[#allocation5 + $0x118] sm:$0xff]  ;;  %v128_v50 = vld [vmem:[#allocation5 + $0xd0] sm:$0xff]  ;;  %v178_v25 = vld [vmem:[#allocation5 + $0x260] sm:$0xff] }
  0x62   :  { %880 = vmatprep.subr.bf16.mxu0 %v9459_v45  ;;  %921 = vmatprep.subr.bf16.mxu1 %v9461_v46  ;;  %v145_v44 = vld [vmem:[#allocation5 + $0x158] sm:$0xff]  ;;  %v9478_v45 = vcombine.low %v152_v33, %v160_v34  ;;  %v9480_v46 = vcombine.low %v153_v35, %v161_v36  ;;  %v9447_v55 = vcombine.high %v120_v49, %v128_v50  ;;  %v104_v57 = vld [vmem:[#allocation5 + $0x10] sm:$0xff]  ;;  %v171_v28 = vld [vmem:[#allocation5 + $0x228] sm:$0xff] }
  0x63   :  { %v9465_v48 = vcombine.high %v137_v43, %v145_v44  ;;  %v112_v58 = vld [vmem:[#allocation5 + $0x50] sm:$0xff]  ;;  %v162_v33 = vld [vmem:[#allocation5 + $0x1e0] sm:$0xff]  ;;  %v155_v36 = vld [vmem:[#allocation5 + $0x1a8] sm:$0xff] }
  0x64   :  { %v9431_v63 = vcombine.high %v104_v57, %v112_v58 }
  0x65   :  { %881 = vmatpush1.bf16.msra.mxu0 %v9458_v51  ;;  %922 = vmatpush1.bf16.msra.mxu1 %v9460_v52  ;;  %v121_v51 = vld [vmem:[#allocation5 + $0x98] sm:$0xff] }
  0x66   :  { %882 = vmatprep.subr.bf16.mxu0 %v9443_v53  ;;  %923 = vmatprep.subr.bf16.mxu1 %v9445_v54  ;;  %v129_v52 = vld [vmem:[#allocation5 + $0xd8] sm:$0xff]  ;;  %v9462_v53 = vcombine.low %v136_v41, %v144_v42  ;;  %v9464_v54 = vcombine.low %v137_v43, %v145_v44  ;;  %v146_v41 = vld [vmem:[#allocation5 + $0x160] sm:$0xff]  ;;  %v139_v44 = vld [vmem:[#allocation5 + $0x128] sm:$0xff] }
  0x67   :  { %v9449_v56 = vcombine.high %v121_v51, %v129_v52 }
  0x69   :  { %883 = vmatpush1.bf16.msra.mxu0 %v9442_v59  ;;  %924 = vmatpush1.bf16.msra.mxu1 %v9444_v60  ;;  %v105_v59 = vld [vmem:[#allocation5 + $0x18] sm:$0xff] }
  0x6a   :  { %884 = vmatprep.subr.bf16.mxu0 %v9427_v61  ;;  %925 = vmatprep.subr.bf16.mxu1 %v9429_v62  ;;  %v113_v60 = vld [vmem:[#allocation5 + $0x58] sm:$0xff]  ;;  %v9446_v61 = vcombine.low %v120_v49, %v128_v50  ;;  %v9448_v62 = vcombine.low %v121_v51, %v129_v52  ;;  %v130_v49 = vld [vmem:[#allocation5 + $0xe0] sm:$0xff]  ;;  %v123_v52 = vld [vmem:[#allocation5 + $0xa8] sm:$0xff] }
  0x6b   :  { %v9433_v1 = vcombine.high %v105_v59, %v113_v60 }
  0x6d   :  { %885 = vmatpush1.bf16.msra.mxu0 %v9426_v4  ;;  %926 = vmatpush1.bf16.msra.mxu1 %v9428_v5  ;;  %v219_v4 = vld [vmem:[#allocation5 + $0x3a8] sm:$0xff] }
  0x6e   :  { %952 = vmatprep.subr.bf16.mxu0 %v9543_v6  ;;  %993 = vmatprep.subr.bf16.mxu1 %v9545_v7  ;;  %v227_v5 = vld [vmem:[#allocation5 + $0x3e8] sm:$0xff]  ;;  %v9430_v6 = vcombine.low %v104_v57, %v112_v58  ;;  %v9432_v7 = vcombine.low %v105_v59, %v113_v60  ;;  %v114_v57 = vld [vmem:[#allocation5 + $0x60] sm:$0xff] }
  0x6f   :  { %v9549_v10 = vcombine.high %v219_v4, %v227_v5  ;;  %v9548_v18 = vcombine.low %v219_v4, %v227_v5  ;;  %v107_v60 = vld [vmem:[#allocation5 + $0x28] sm:$0xff]  ;;  %v221_v5 = vld [vmem:[#allocation5 + $0x3b8] sm:$0xff] }
  0x70   :  { %903 = vmatmul.mubr.bf16.vlgmr.msra.gmra.mxu0 %v11032_v12  ;;  %944 = vmatmul.mubr.bf16.vlgmr.msra.gmra.mxu1 %v11032_v12 }
  0x71   :  { %953 = vmatpush1.bf16.msra.mxu0 %v9542_v13  ;;  %994 = vmatpush1.bf16.msra.mxu1 %v9544_v14  ;;  %v203_v13 = vld [vmem:[#allocation5 + $0x328] sm:$0xff] }
  0x72   :  { %954 = vmatprep.subr.bf16.mxu0 %v9527_v15  ;;  %995 = vmatprep.subr.bf16.mxu1 %v9529_v16  ;;  %v211_v14 = vld [vmem:[#allocation5 + $0x368] sm:$0xff]  ;;  %v9546_v15 = vcombine.low %v218_v2, %v226_v3  ;;  %v186_v16 = vld [vmem:[#allocation5 + $0x2a0] sm:$0xff]  ;;  %v228_v2 = vld [vmem:[#allocation5 + $0x3f0] sm:$0xff] }
  0x73   :  { %984 = vmatprep.mubr.bf16.mxu0 %v10972_v0  ;;  %1025 = vmatprep.mubr.bf16.mxu1 %v10972_v0  ;;  %v9532_v26 = vcombine.low %v203_v13, %v211_v14  ;;  %v9515_v27 = vcombine.high %v186_v16, %v194_v17 }
  0x75   :  { %955 = vmatpush1.bf16.msra.mxu0 %v9526_v21  ;;  %996 = vmatpush1.bf16.msra.mxu1 %v9528_v22  ;;  %v195_v21 = vld [vmem:[#allocation5 + $0x2e8] sm:$0xff]  ;;  %v9533_v22 = vcombine.high %v203_v13, %v211_v14  ;;  %v205_v14 = vld [vmem:[#allocation5 + $0x338] sm:$0xff] }
  0x76   :  { %956 = vmatprep.subr.bf16.mxu0 %v9511_v23  ;;  %997 = vmatprep.subr.bf16.mxu1 %v9513_v24  ;;  %v9530_v23 = vcombine.low %v202_v9, %v210_v11  ;;  %v170_v24 = vld [vmem:[#allocation5 + $0x220] sm:$0xff]  ;;  %v9516_v34 = vcombine.low %v187_v20, %v195_v21  ;;  %v204_v9 = vld [vmem:[#allocation5 + $0x330] sm:$0xff] }
  0x77   :  { %v9499_v35 = vcombine.high %v170_v24, %v178_v25 }
  0x79   :  { %957 = vmatpush1.bf16.msra.mxu0 %v9510_v29  ;;  %998 = vmatpush1.bf16.msra.mxu1 %v9512_v30  ;;  %v179_v29 = vld [vmem:[#allocation5 + $0x268] sm:$0xff]  ;;  %v9517_v30 = vcombine.high %v187_v20, %v195_v21  ;;  %v188_v21 = vld [vmem:[#allocation5 + $0x2b0] sm:$0xff] }
  0x7a   :  { %958 = vmatprep.subr.bf16.mxu0 %v9495_v31  ;;  %999 = vmatprep.subr.bf16.mxu1 %v9497_v32  ;;  %v9514_v31 = vcombine.low %v186_v16, %v194_v17  ;;  %v154_v32 = vld [vmem:[#allocation5 + $0x1a0] sm:$0xff]  ;;  %v9500_v42 = vcombine.low %v171_v28, %v179_v29 }
  0x7b   :  { %v9483_v43 = vcombine.high %v154_v32, %v162_v33 }
  0x7d   :  { %959 = vmatpush1.bf16.msra.mxu0 %v9494_v37  ;;  %1000 = vmatpush1.bf16.msra.mxu1 %v9496_v38  ;;  %v163_v37 = vld [vmem:[#allocation5 + $0x1e8] sm:$0xff]  ;;  %v9501_v38 = vcombine.high %v171_v28, %v179_v29  ;;  %v172_v29 = vld [vmem:[#allocation5 + $0x230] sm:$0xff] }
  0x7e   :  { %960 = vmatprep.subr.bf16.mxu0 %v9479_v39  ;;  %1001 = vmatprep.subr.bf16.mxu1 %v9481_v40  ;;  %v9498_v39 = vcombine.low %v170_v24, %v178_v25  ;;  %v138_v40 = vld [vmem:[#allocation5 + $0x120] sm:$0xff]  ;;  %v9484_v50 = vcombine.low %v155_v36, %v163_v37  ;;  %v197_v24 = vld [vmem:[#allocation5 + $0x2f8] sm:$0xff] }
  0x7f   :  { %v9467_v51 = vcombine.high %v138_v40, %v146_v41 }
  0x81   :  { %961 = vmatpush1.bf16.msra.mxu0 %v9478_v45  ;;  %1002 = vmatpush1.bf16.msra.mxu1 %v9480_v46  ;;  %v147_v45 = vld [vmem:[#allocation5 + $0x168] sm:$0xff]  ;;  %v9485_v46 = vcombine.high %v155_v36, %v163_v37 }
  0x82   :  { %962 = vmatprep.subr.bf16.mxu0 %v9463_v47  ;;  %1003 = vmatprep.subr.bf16.mxu1 %v9465_v48  ;;  %v9482_v47 = vcombine.low %v154_v32, %v162_v33  ;;  %v122_v48 = vld [vmem:[#allocation5 + $0xa0] sm:$0xff]  ;;  %v9468_v58 = vcombine.low %v139_v44, %v147_v45  ;;  %v181_v32 = vld [vmem:[#allocation5 + $0x278] sm:$0xff] }
  0x83   :  { %v9451_v59 = vcombine.high %v122_v48, %v130_v49 }
  0x85   :  { %963 = vmatpush1.bf16.msra.mxu0 %v9462_v53  ;;  %1004 = vmatpush1.bf16.msra.mxu1 %v9464_v54  ;;  %v131_v53 = vld [vmem:[#allocation5 + $0xe8] sm:$0xff]  ;;  %v9469_v54 = vcombine.high %v139_v44, %v147_v45  ;;  %v140_v44 = vld [vmem:[#allocation5 + $0x130] sm:$0xff] }
  0x86   :  { %964 = vmatprep.subr.bf16.mxu0 %v9447_v55  ;;  %1005 = vmatprep.subr.bf16.mxu1 %v9449_v56  ;;  %v9466_v55 = vcombine.low %v138_v40, %v146_v41  ;;  %v106_v56 = vld [vmem:[#allocation5 + $0x20] sm:$0xff]  ;;  %v9452_v3 = vcombine.low %v123_v52, %v131_v53  ;;  %v165_v40 = vld [vmem:[#allocation5 + $0x1f8] sm:$0xff]  ;;  %v148_v45 = vld [vmem:[#allocation5 + $0x170] sm:$0xff] }
  0x87   :  { %v9435_v4 = vcombine.high %v106_v56, %v114_v57 }
  0x89   :  { %965 = vmatpush1.bf16.msra.mxu0 %v9446_v61  ;;  %1006 = vmatpush1.bf16.msra.mxu1 %v9448_v62  ;;  %v115_v61 = vld [vmem:[#allocation5 + $0x68] sm:$0xff]  ;;  %v9453_v62 = vcombine.high %v123_v52, %v131_v53  ;;  %v124_v52 = vld [vmem:[#allocation5 + $0xb0] sm:$0xff] }
  0x8a   :  { %966 = vmatprep.subr.bf16.mxu0 %v9431_v63  ;;  %1007 = vmatprep.subr.bf16.mxu1 %v9433_v1  ;;  %v9450_v63 = vcombine.low %v122_v48, %v130_v49  ;;  %v220_v1 = vld [vmem:[#allocation5 + $0x3b0] sm:$0xff]  ;;  %v9436_v11 = vcombine.low %v107_v60, %v115_v61 }
  0x8b   :  { %v9551_v13 = vcombine.high %v220_v1, %v228_v2  ;;  %v9550_v17 = vcombine.low %v220_v1, %v228_v2  ;;  %v132_v53 = vld [vmem:[#allocation5 + $0xf0] sm:$0xff] }
  0x8c   :  { %v9454_v1 = vcombine.low %v124_v52, %v132_v53 }
  0x8d   :  { %967 = vmatpush1.bf16.msra.mxu0 %v9430_v6  ;;  %1008 = vmatpush1.bf16.msra.mxu1 %v9432_v7  ;;  %v229_v6 = vld [vmem:[#allocation5 + $0x3f8] sm:$0xff]  ;;  %v9437_v7 = vcombine.high %v107_v60, %v115_v61  ;;  %v108_v60 = vld [vmem:[#allocation5 + $0x30] sm:$0xff] }
  0x8e   :  { %1034 = vmatprep.subr.bf16.mxu0 %v9547_v8  ;;  %1075 = vmatprep.subr.bf16.mxu1 %v9549_v10  ;;  %v9434_v8 = vcombine.low %v106_v56, %v114_v57  ;;  %v212_v10 = vld [vmem:[#allocation5 + $0x370] sm:$0xff]  ;;  %v9553_v16 = vcombine.high %v221_v5, %v229_v6  ;;  %v9470_v56 = vcombine.low %v140_v44, %v148_v45 }
  0x8f   :  { %v9534_v25 = vcombine.low %v204_v9, %v212_v10  ;;  %v116_v61 = vld [vmem:[#allocation5 + $0x70] sm:$0xff] }
  0x90   :  { %985 = vmatmul.mubr.bf16.vlgmr.msra.gmra.mxu0 %v11032_v12  ;;  %1026 = vmatmul.mubr.bf16.vlgmr.msra.gmra.mxu1 %v11032_v12 }
  0x91   :  { %1035 = vmatpush1.bf16.msra.mxu0 %v9546_v15  ;;  %1076 = vmatpush1.bf16.msra.mxu1 %v9548_v18  ;;  %v213_v15 = vld [vmem:[#allocation5 + $0x378] sm:$0xff]  ;;  %v9552_v18 = vcombine.low %v221_v5, %v229_v6  ;;  %v1270_v5 = vld [vmem:[#allocation7 + $0x1c0] sm:$0xff] }
  0x92   :  { %1036 = vmatprep.subr.bf16.mxu0 %v9531_v19  ;;  %1077 = vmatprep.subr.bf16.mxu1 %v9533_v22  ;;  %v9535_v19 = vcombine.high %v204_v9, %v212_v10  ;;  %v9537_v20 = vcombine.high %v205_v14, %v213_v15  ;;  %v196_v22 = vld [vmem:[#allocation5 + $0x2f0] sm:$0xff]  ;;  %v1274_v6 = vld [vmem:[#allocation7 + $0x1e0] sm:$0xff]  ;;  %v9438_v9 = vcombine.low %v108_v60, %v116_v61 }
  0x93   :  { %1066 = vmatprep.mubr.bf16.mxu0 %v10972_v0  ;;  %1107 = vmatprep.mubr.bf16.mxu1 %v10972_v0  ;;  %v9518_v33 = vcombine.low %v188_v21, %v196_v22 }
  0x95   :  { %1037 = vmatpush1.bf16.msra.mxu0 %v9530_v23  ;;  %1078 = vmatpush1.bf16.msra.mxu1 %v9532_v26  ;;  %v189_v23 = vld [vmem:[#allocation5 + $0x2b8] sm:$0xff]  ;;  %v9536_v26 = vcombine.low %v205_v14, %v213_v15  ;;  %v1262_v14 = vld [vmem:[#allocation7 + $0x180] sm:$0xff] }
  0x96   :  { %1038 = vmatprep.subr.bf16.mxu0 %v9515_v27  ;;  %1079 = vmatprep.subr.bf16.mxu1 %v9517_v30  ;;  %v9519_v27 = vcombine.high %v188_v21, %v196_v22  ;;  %v9521_v28 = vcombine.high %v189_v23, %v197_v24  ;;  %v180_v30 = vld [vmem:[#allocation5 + $0x270] sm:$0xff]  ;;  %v9520_v36 = vcombine.low %v189_v23, %v197_v24  ;;  %v1266_v15 = vld [vmem:[#allocation7 + $0x1a0] sm:$0xff] }
  0x97   :  { %v9503_v37 = vcombine.high %v172_v29, %v180_v30  ;;  %v9502_v41 = vcombine.low %v172_v29, %v180_v30  ;;  %v1254_v22 = vld [vmem:[#allocation7 + $0x140] sm:$0xff] }
  0x98   :  { %v1258_v23 = vld [vmem:[#allocation7 + $0x160] sm:$0xff] }
  0x99   :  { %1039 = vmatpush1.bf16.msra.mxu0 %v9514_v31  ;;  %1080 = vmatpush1.bf16.msra.mxu1 %v9516_v34  ;;  %v173_v31 = vld [vmem:[#allocation5 + $0x238] sm:$0xff]  ;;  %v156_v34 = vld [vmem:[#allocation5 + $0x1b0] sm:$0xff]  ;;  %v1382_v24 = vld [vmem:[#allocation7 + $0x540] sm:$0xff] }
  0x9a   :  { %1040 = vmatprep.subr.bf16.mxu0 %v9499_v35  ;;  %1081 = vmatprep.subr.bf16.mxu1 %v9501_v38  ;;  %v164_v35 = vld [vmem:[#allocation5 + $0x1f0] sm:$0xff]  ;;  %v9505_v38 = vcombine.high %v173_v31, %v181_v32  ;;  %v1246_v30 = vld [vmem:[#allocation7 + $0x100] sm:$0xff] }
  0x9b   :  { %v9486_v48 = vcombine.low %v156_v34, %v164_v35 }
  0x9d   :  { %1041 = vmatpush1.bf16.msra.mxu0 %v9498_v39  ;;  %1082 = vmatpush1.bf16.msra.mxu1 %v9500_v42  ;;  %v157_v39 = vld [vmem:[#allocation5 + $0x1b8] sm:$0xff]  ;;  %v9504_v42 = vcombine.low %v173_v31, %v181_v32  ;;  %v1250_v31 = vld [vmem:[#allocation7 + $0x120] sm:$0xff] }
  0x9e   :  { %1042 = vmatprep.subr.bf16.mxu0 %v9483_v43  ;;  %1083 = vmatprep.subr.bf16.mxu1 %v9485_v46  ;;  %v9487_v43 = vcombine.high %v156_v34, %v164_v35  ;;  %v141_v46 = vld [vmem:[#allocation5 + $0x138] sm:$0xff]  ;;  %v9488_v49 = vcombine.low %v157_v39, %v165_v40  ;;  %v1374_v32 = vld [vmem:[#allocation7 + $0x500] sm:$0xff]  ;;  %v9594_v34 = vcombine.low %v1254_v22, %v1258_v23 }
  0xa1   :  { %1043 = vmatpush1.bf16.msra.mxu0 %v9482_v47  ;;  %1084 = vmatpush1.bf16.msra.mxu1 %v9484_v50  ;;  %v149_v47 = vld [vmem:[#allocation5 + $0x178] sm:$0xff]  ;;  %v9471_v50 = vcombine.high %v140_v44, %v148_v45  ;;  %v1230_v44 = vld [vmem:[#allocation7 + $0x80] sm:$0xff] }
  0xa2   :  { %1044 = vmatprep.subr.bf16.mxu0 %v9467_v51  ;;  %1085 = vmatprep.subr.bf16.mxu1 %v9469_v54  ;;  %v9473_v51 = vcombine.high %v141_v46, %v149_v47  ;;  %v125_v54 = vld [vmem:[#allocation5 + $0xb8] sm:$0xff]  ;;  %v9472_v57 = vcombine.low %v141_v46, %v149_v47  ;;  %v1234_v45 = vld [vmem:[#allocation7 + $0xa0] sm:$0xff] }
  0xa3   :  { %v1358_v46 = vld [vmem:[#allocation7 + $0x480] sm:$0xff] }
  0xa4   :  { %v1362_v47 = vld [vmem:[#allocation7 + $0x4a0] sm:$0xff] }
  0xa5   :  { %1045 = vmatpush1.bf16.msra.mxu0 %v9466_v55  ;;  %1086 = vmatpush1.bf16.msra.mxu1 %v9468_v58  ;;  %v133_v55 = vld [vmem:[#allocation5 + $0xf8] sm:$0xff]  ;;  %v9455_v58 = vcombine.high %v124_v52, %v132_v53  ;;  %v1222_v52 = vld [vmem:[#allocation7 + $0x40] sm:$0xff] }
  0xa6   :  { %1046 = vmatprep.subr.bf16.mxu0 %v9451_v59  ;;  %1087 = vmatprep.subr.bf16.mxu1 %v9453_v62  ;;  %v9457_v59 = vcombine.high %v125_v54, %v133_v55  ;;  %v109_v62 = vld [vmem:[#allocation5 + $0x38] sm:$0xff]  ;;  %v9456_v2 = vcombine.low %v125_v54, %v133_v55  ;;  %v1226_v53 = vld [vmem:[#allocation7 + $0x60] sm:$0xff] }
  0xa7   :  { %v1350_v54 = vld [vmem:[#allocation7 + $0x440] sm:$0xff] }
  0xa8   :  { %v1354_v55 = vld [vmem:[#allocation7 + $0x460] sm:$0xff] }
  0xa9   :  { %1047 = vmatpush1.bf16.msra.mxu0 %v9450_v63  ;;  %1088 = vmatpush1.bf16.msra.mxu1 %v9452_v3  ;;  %v117_v63 = vld [vmem:[#allocation5 + $0x78] sm:$0xff]  ;;  %v9439_v3 = vcombine.high %v108_v60, %v116_v61  ;;  %v1214_v60 = vld [vmem:[#allocation7] sm:$0xff] }
  0xaa   :  { %1048 = vmatprep.subr.bf16.mxu0 %v9435_v4  ;;  %1089 = vmatprep.subr.bf16.mxu1 %v9437_v7  ;;  %v9441_v4 = vcombine.high %v109_v62, %v117_v63  ;;  %v1398_v7 = vld [vmem:[#allocation7 + $0x5c0] sm:$0xff]  ;;  %v9440_v10 = vcombine.low %v109_v62, %v117_v63 }
  0xab   :  { %v1218_v61 = vld [vmem:[#allocation7 + $0x20] sm:$0xff] }
  0xac   :  { %v1342_v62 = vld [vmem:[#allocation7 + $0x400] sm:$0xff] }
  0xad   :  { %1049 = vmatpush1.bf16.msra.mxu0 %v9434_v8  ;;  %1090 = vmatpush1.bf16.msra.mxu1 %v9436_v11  ;;  %v1402_v8 = vld [vmem:[#allocation7 + $0x5e0] sm:$0xff]  ;;  %v9611_v11 = vcombine.high %v1270_v5, %v1274_v6 }
  0xae   :  { %1116 = vmatprep.subr.bf16.mxu0 %v9551_v13  ;;  %1157 = vmatprep.subr.bf16.mxu1 %v9553_v16  ;;  %v9739_v13 = vcombine.high %v1398_v7, %v1402_v8  ;;  %v1390_v16 = vld [vmem:[#allocation7 + $0x580] sm:$0xff] }
  0xaf   :  { %v1346_v63 = vld [vmem:[#allocation7 + $0x420] sm:$0xff] }
  0xb0   :  { %1067 = vmatmul.mubr.bf16.vlgmr.msra.gmra.mxu0 %v11032_v12  ;;  %1108 = vmatmul.mubr.bf16.vlgmr.msra.gmra.mxu1 %v11032_v12 }
  0xb1   :  { %1117 = vmatpush1.bf16.msra.mxu0 %v9550_v17  ;;  %1158 = vmatpush1.bf16.msra.mxu1 %v9552_v18  ;;  %v1394_v17 = vld [vmem:[#allocation7 + $0x5a0] sm:$0xff]  ;;  %v9610_v18 = vcombine.low %v1270_v5, %v1274_v6 }
  0xb2   :  { %1118 = vmatprep.subr.bf16.mxu0 %v9535_v19  ;;  %1159 = vmatprep.subr.bf16.mxu1 %v9537_v20  ;;  %v9738_v19 = vcombine.low %v1398_v7, %v1402_v8  ;;  %v9603_v20 = vcombine.high %v1262_v14, %v1266_v15  ;;  %v9731_v21 = vcombine.high %v1390_v16, %v1394_v17  ;;  %v1334_v5 = vld [vmem:[#allocation7 + $0x3c0] sm:$0xff] }
  0xb3   :  { %1148 = vmatprep.mubr.bf16.mxu0 %v10972_v0  ;;  %1189 = vmatprep.mubr.bf16.mxu1 %v10972_v0  ;;  %v9489_v0 = vcombine.high %v157_v39, %v165_v40  ;;  %v1366_v39 = vld [vmem:[#allocation7 + $0x4c0] sm:$0xff] }
  0xb4   :  { %v1370_v40 = vld [vmem:[#allocation7 + $0x4e0] sm:$0xff] }
  0xb5   :  { %1119 = vmatpush1.bf16.msra.mxu0 %v9534_v25  ;;  %1160 = vmatpush1.bf16.msra.mxu1 %v9536_v26  ;;  %v1386_v25 = vld [vmem:[#allocation7 + $0x560] sm:$0xff]  ;;  %v9602_v26 = vcombine.low %v1262_v14, %v1266_v15 }
  0xb6   :  { %1120 = vmatprep.subr.bf16.mxu0 %v9519_v27  ;;  %1161 = vmatprep.subr.bf16.mxu1 %v9521_v28  ;;  %v9730_v27 = vcombine.low %v1390_v16, %v1394_v17  ;;  %v9595_v28 = vcombine.high %v1254_v22, %v1258_v23  ;;  %v9723_v29 = vcombine.high %v1382_v24, %v1386_v25  ;;  %v1338_v6 = vld [vmem:[#allocation7 + $0x3e0] sm:$0xff] }
  0xb7   :  { %v9722_v35 = vcombine.low %v1382_v24, %v1386_v25  ;;  %v1462_v7 = vld [vmem:[#allocation7 + $0x7c0] sm:$0xff] }
  0xb8   :  { %v1466_v8 = vld [vmem:[#allocation7 + $0x7e0] sm:$0xff] }
  0xb9   :  { %1121 = vmatpush1.bf16.msra.mxu0 %v9518_v33  ;;  %1162 = vmatpush1.bf16.msra.mxu1 %v9520_v36  ;;  %v1378_v33 = vld [vmem:[#allocation7 + $0x520] sm:$0xff]  ;;  %v9587_v36 = vcombine.high %v1246_v30, %v1250_v31 }
  0xba   :  { %1122 = vmatprep.subr.bf16.mxu0 %v9503_v37  ;;  %1163 = vmatprep.subr.bf16.mxu1 %v9505_v38  ;;  %v1238_v37 = vld [vmem:[#allocation7 + $0xc0] sm:$0xff] }
  0xbb   :  { %v1242_v38 = vld [vmem:[#allocation7 + $0xe0] sm:$0xff] }
  0xbc   :  { %v1326_v14 = vld [vmem:[#allocation7 + $0x380] sm:$0xff] }
  0xbd   :  { %1123 = vmatpush1.bf16.msra.mxu0 %v9502_v41  ;;  %1164 = vmatpush1.bf16.msra.mxu1 %v9504_v42  ;;  %v9586_v41 = vcombine.low %v1246_v30, %v1250_v31  ;;  %v9714_v42 = vcombine.low %v1374_v32, %v1378_v33  ;;  %v1330_v15 = vld [vmem:[#allocation7 + $0x3a0] sm:$0xff] }
  0xbe   :  { %1124 = vmatprep.subr.bf16.mxu0 %v9487_v43  ;;  %1165 = vmatprep.subr.bf16.mxu1 %v9489_v0  ;;  %v9579_v43 = vcombine.high %v1238_v37, %v1242_v38  ;;  %v9707_v0 = vcombine.high %v1366_v39, %v1370_v40  ;;  %v1454_v16 = vld [vmem:[#allocation7 + $0x780] sm:$0xff] }
  0xbf   :  { %v1458_v17 = vld [vmem:[#allocation7 + $0x7a0] sm:$0xff] }
  0xc0   :  { %v1318_v22 = vld [vmem:[#allocation7 + $0x340] sm:$0xff] }
  0xc1   :  { %1125 = vmatpush1.bf16.msra.mxu0 %v9486_v48  ;;  %1166 = vmatpush1.bf16.msra.mxu1 %v9488_v49  ;;  %v9578_v48 = vcombine.low %v1238_v37, %v1242_v38  ;;  %v9706_v49 = vcombine.low %v1366_v39, %v1370_v40  ;;  %v1322_v23 = vld [vmem:[#allocation7 + $0x360] sm:$0xff] }
  0xc2   :  { %1126 = vmatprep.subr.bf16.mxu0 %v9471_v50  ;;  %1167 = vmatprep.subr.bf16.mxu1 %v9473_v51  ;;  %v9571_v50 = vcombine.high %v1230_v44, %v1234_v45  ;;  %v9699_v51 = vcombine.high %v1358_v46, %v1362_v47  ;;  %v1446_v24 = vld [vmem:[#allocation7 + $0x740] sm:$0xff] }
  0xc3   :  { %v1450_v25 = vld [vmem:[#allocation7 + $0x760] sm:$0xff] }
  0xc4   :  { %v1310_v30 = vld [vmem:[#allocation7 + $0x300] sm:$0xff] }
  0xc5   :  { %1127 = vmatpush1.bf16.msra.mxu0 %v9470_v56  ;;  %1168 = vmatpush1.bf16.msra.mxu1 %v9472_v57  ;;  %v9570_v56 = vcombine.low %v1230_v44, %v1234_v45  ;;  %v9698_v57 = vcombine.low %v1358_v46, %v1362_v47  ;;  %v1314_v31 = vld [vmem:[#allocation7 + $0x320] sm:$0xff] }
  0xc6   :  { %1128 = vmatprep.subr.bf16.mxu0 %v9455_v58  ;;  %1169 = vmatprep.subr.bf16.mxu1 %v9457_v59  ;;  %v9563_v58 = vcombine.high %v1222_v52, %v1226_v53  ;;  %v9691_v59 = vcombine.high %v1350_v54, %v1354_v55  ;;  %v1302_v37 = vld [vmem:[#allocation7 + $0x2c0] sm:$0xff] }
  0xc7   :  { %v1306_v38 = vld [vmem:[#allocation7 + $0x2e0] sm:$0xff] }
  0xc8   :  { %v1430_v39 = vld [vmem:[#allocation7 + $0x6c0] sm:$0xff] }
  0xc9   :  { %1129 = vmatpush1.bf16.msra.mxu0 %v9454_v1  ;;  %1170 = vmatpush1.bf16.msra.mxu1 %v9456_v2  ;;  %v9562_v1 = vcombine.low %v1222_v52, %v1226_v53  ;;  %v9690_v2 = vcombine.low %v1350_v54, %v1354_v55  ;;  %v1434_v40 = vld [vmem:[#allocation7 + $0x6e0] sm:$0xff] }
  0xca   :  { %1130 = vmatprep.subr.bf16.mxu0 %v9439_v3  ;;  %1171 = vmatprep.subr.bf16.mxu1 %v9441_v4  ;;  %v9555_v3 = vcombine.high %v1214_v60, %v1218_v61  ;;  %v9683_v4 = vcombine.high %v1342_v62, %v1346_v63  ;;  %v1294_v44 = vld [vmem:[#allocation7 + $0x280] sm:$0xff] }
  0xcb   :  { %v1298_v45 = vld [vmem:[#allocation7 + $0x2a0] sm:$0xff] }
  0xcc   :  { %v1422_v46 = vld [vmem:[#allocation7 + $0x680] sm:$0xff] }
  0xcd   :  { %1131 = vmatpush1.bf16.msra.mxu0 %v9438_v9  ;;  %1172 = vmatpush1.bf16.msra.mxu1 %v9440_v10  ;;  %v9554_v9 = vcombine.low %v1214_v60, %v1218_v61  ;;  %v9682_v10 = vcombine.low %v1342_v62, %v1346_v63  ;;  %v1426_v47 = vld [vmem:[#allocation7 + $0x6a0] sm:$0xff] }
  0xce   :  { %7400 = vmatprep.subr.bf16.mxu0 %v9611_v11  ;;  %7441 = vmatprep.subr.bf16.mxu1 %v9739_v13  ;;  %v9675_v11 = vcombine.high %v1334_v5, %v1338_v6  ;;  %v9803_v13 = vcombine.high %v1462_v7, %v1466_v8  ;;  %v1286_v52 = vld [vmem:[#allocation7 + $0x240] sm:$0xff] }
  0xcf   :  { %v1290_v53 = vld [vmem:[#allocation7 + $0x260] sm:$0xff] }
  0xd0   :  { %1149 = vmatmul.mubr.bf16.vlgmr.msra.gmra.mxu0 %v11032_v12  ;;  %1190 = vmatmul.mubr.bf16.vlgmr.msra.gmra.mxu1 %v11032_v12  ;;  %v9715_v12 = vcombine.high %v1374_v32, %v1378_v33  ;;  %v1438_v32 = vld [vmem:[#allocation7 + $0x700] sm:$0xff] }
  0xd1   :  { %7401 = vmatpush1.bf16.msra.mxu0 %v9610_v18  ;;  %7442 = vmatpush1.bf16.msra.mxu1 %v9738_v19  ;;  %v9674_v18 = vcombine.low %v1334_v5, %v1338_v6  ;;  %v9802_v19 = vcombine.low %v1462_v7, %v1466_v8  ;;  %v1442_v33 = vld [vmem:[#allocation7 + $0x720] sm:$0xff] }
  0xd2   :  { %7402 = vmatprep.subr.bf16.mxu0 %v9603_v20  ;;  %7443 = vmatprep.subr.bf16.mxu1 %v9731_v21  ;;  %v9667_v20 = vcombine.high %v1326_v14, %v1330_v15  ;;  %v9795_v21 = vcombine.high %v1454_v16, %v1458_v17  ;;  %v1414_v54 = vld [vmem:[#allocation7 + $0x640] sm:$0xff] }
  0xd3   :  { %v1418_v55 = vld [vmem:[#allocation7 + $0x660] sm:$0xff] }
  0xd4   :  { %v1278_v60 = vld [vmem:[#allocation7 + $0x200] sm:$0xff] }
  0xd5   :  { %7403 = vmatpush1.bf16.msra.mxu0 %v9602_v26  ;;  %7444 = vmatpush1.bf16.msra.mxu1 %v9730_v27  ;;  %v9666_v26 = vcombine.low %v1326_v14, %v1330_v15  ;;  %v9794_v27 = vcombine.low %v1454_v16, %v1458_v17  ;;  %v1282_v61 = vld [vmem:[#allocation7 + $0x220] sm:$0xff] }
  0xd6   :  { %7404 = vmatprep.subr.bf16.mxu0 %v9595_v28  ;;  %7445 = vmatprep.subr.bf16.mxu1 %v9723_v29  ;;  %v9659_v28 = vcombine.high %v1318_v22, %v1322_v23  ;;  %v9787_v29 = vcombine.high %v1446_v24, %v1450_v25  ;;  %v1406_v62 = vld [vmem:[#allocation7 + $0x600] sm:$0xff] }
  0xd7   :  { %v1410_v63 = vld [vmem:[#allocation7 + $0x620] sm:$0xff] }
  0xd8   :  { %v1526_v5 = vld [vmem:[#allocation7 + $0x9c0] sm:$0xff] }
  0xd9   :  { %7405 = vmatpush1.bf16.msra.mxu0 %v9594_v34  ;;  %7446 = vmatpush1.bf16.msra.mxu1 %v9722_v35  ;;  %v9658_v34 = vcombine.low %v1318_v22, %v1322_v23  ;;  %v9786_v35 = vcombine.low %v1446_v24, %v1450_v25  ;;  %v1530_v6 = vld [vmem:[#allocation7 + $0x9e0] sm:$0xff] }
  0xda   :  { %7406 = vmatprep.subr.bf16.mxu0 %v9587_v36  ;;  %7447 = vmatprep.subr.bf16.mxu1 %v9715_v12  ;;  %v9651_v36 = vcombine.high %v1310_v30, %v1314_v31  ;;  %v9779_v12 = vcombine.high %v1438_v32, %v1442_v33  ;;  %v1654_v7 = vld [vmem:[#allocation7 + $0xdc0] sm:$0xff]  ;;  %v9866_v24 = vcombine.low %v1526_v5, %v1530_v6 }
  0xdb   :  { %v1658_v8 = vld [vmem:[#allocation7 + $0xde0] sm:$0xff] }
  0xdc   :  { %v1518_v16 = vld [vmem:[#allocation7 + $0x980] sm:$0xff] }
  0xdd   :  { %7407 = vmatpush1.bf16.msra.mxu0 %v9586_v41  ;;  %7448 = vmatpush1.bf16.msra.mxu1 %v9714_v42  ;;  %v9650_v41 = vcombine.low %v1310_v30, %v1314_v31  ;;  %v9778_v42 = vcombine.low %v1438_v32, %v1442_v33  ;;  %v1522_v17 = vld [vmem:[#allocation7 + $0x9a0] sm:$0xff] }
  0xde   :  { %7408 = vmatprep.subr.bf16.mxu0 %v9579_v43  ;;  %7449 = vmatprep.subr.bf16.mxu1 %v9707_v0  ;;  %v9643_v43 = vcombine.high %v1302_v37, %v1306_v38  ;;  %v9771_v0 = vcombine.high %v1430_v39, %v1434_v40  ;;  %v1510_v32 = vld [vmem:[#allocation7 + $0x940] sm:$0xff] }
  0xdf   :  { %v1514_v33 = vld [vmem:[#allocation7 + $0x960] sm:$0xff] }
  0xe1   :  { %7409 = vmatpush1.bf16.msra.mxu0 %v9578_v48  ;;  %7450 = vmatpush1.bf16.msra.mxu1 %v9706_v49  ;;  %v9642_v48 = vcombine.low %v1302_v37, %v1306_v38  ;;  %v9770_v49 = vcombine.low %v1430_v39, %v1434_v40  ;;  %v9858_v37 = vcombine.low %v1518_v16, %v1522_v17 }
  0xe2   :  { %7410 = vmatprep.subr.bf16.mxu0 %v9571_v50  ;;  %7451 = vmatprep.subr.bf16.mxu1 %v9699_v51  ;;  %v9635_v50 = vcombine.high %v1294_v44, %v1298_v45  ;;  %v9763_v51 = vcombine.high %v1422_v46, %v1426_v47  ;;  %v9851_v39 = vcombine.high %v1510_v32, %v1514_v33 }
  0xe5   :  { %7411 = vmatpush1.bf16.msra.mxu0 %v9570_v56  ;;  %7452 = vmatpush1.bf16.msra.mxu1 %v9698_v57  ;;  %v9634_v56 = vcombine.low %v1294_v44, %v1298_v45  ;;  %v9762_v57 = vcombine.low %v1422_v46, %v1426_v47  ;;  %v9850_v44 = vcombine.low %v1510_v32, %v1514_v33  ;;  %v1586_v32 = vld [vmem:[#allocation7 + $0xba0] sm:$0xff] }
  0xe6   :  { %7412 = vmatprep.subr.bf16.mxu0 %v9563_v58  ;;  %7453 = vmatprep.subr.bf16.mxu1 %v9691_v59  ;;  %v9627_v58 = vcombine.high %v1286_v52, %v1290_v53  ;;  %v9755_v59 = vcombine.high %v1414_v54, %v1418_v55 }
  0xe9   :  { %7413 = vmatpush1.bf16.msra.mxu0 %v9562_v1  ;;  %7454 = vmatpush1.bf16.msra.mxu1 %v9690_v2  ;;  %v9626_v1 = vcombine.low %v1286_v52, %v1290_v53  ;;  %v9754_v2 = vcombine.low %v1414_v54, %v1418_v55 }
  0xea   :  { %7414 = vmatprep.subr.bf16.mxu0 %v9555_v3  ;;  %7455 = vmatprep.subr.bf16.mxu1 %v9683_v4  ;;  %v9619_v3 = vcombine.high %v1278_v60, %v1282_v61  ;;  %v9747_v4 = vcombine.high %v1406_v62, %v1410_v63 }
  0xed   :  { %7415 = vmatpush1.bf16.msra.mxu0 %v9554_v9  ;;  %7456 = vmatpush1.bf16.msra.mxu1 %v9682_v10  ;;  %v9618_v9 = vcombine.low %v1278_v60, %v1282_v61  ;;  %v9746_v10 = vcombine.low %v1406_v62, %v1410_v63 }
  0xee   :  { %7416 = vmatprep.subr.bf16.mxu0 %v9675_v11  ;;  %7457 = vmatprep.subr.bf16.mxu1 %v9803_v13  ;;  %v9867_v11 = vcombine.high %v1526_v5, %v1530_v6  ;;  %v9995_v13 = vcombine.high %v1654_v7, %v1658_v8 }
  0xf1   :  { %7417 = vmatpush2.bf16.msra.mxu0 %v9674_v18  ;;  %7458 = vmatpush2.bf16.msra.mxu1 %v9802_v19  ;;  %v1646_v19 = vld [vmem:[#allocation7 + $0xd80] sm:$0xff] }
  0xf2   :  { %7418 = vmatprep.subr.bf16.mxu0 %v9667_v20  ;;  %7459 = vmatprep.subr.bf16.mxu1 %v9795_v21  ;;  %v1650_v20 = vld [vmem:[#allocation7 + $0xda0] sm:$0xff] }
  0xf3   :  { %v9987_v31 = vcombine.high %v1646_v19, %v1650_v20  ;;  %v9986_v38 = vcombine.low %v1646_v19, %v1650_v20  ;;  %v1594_v19 = vld [vmem:[#allocation7 + $0xbe0] sm:$0xff] }
  0xf4   :  { %v1718_v20 = vld [vmem:[#allocation7 + $0xfc0] sm:$0xff] }
  0xf5   :  { %7419 = vmatpush2.bf16.msra.mxu0 %v9666_v26  ;;  %7460 = vmatpush2.bf16.msra.mxu1 %v9794_v27 }
  0xf6   :  { %7420 = vmatprep.subr.bf16.mxu0 %v9659_v28  ;;  %7461 = vmatprep.subr.bf16.mxu1 %v9787_v29  ;;  %v9994_v28 = vcombine.low %v1654_v7, %v1658_v8  ;;  %v9859_v29 = vcombine.high %v1518_v16, %v1522_v17 }
  0xf9   :  { %7421 = vmatpush2.bf16.msra.mxu0 %v9658_v34  ;;  %7462 = vmatpush2.bf16.msra.mxu1 %v9786_v35  ;;  %v1638_v35 = vld [vmem:[#allocation7 + $0xd40] sm:$0xff] }
  0xfa   :  { %7422 = vmatprep.subr.bf16.mxu0 %v9651_v36  ;;  %7463 = vmatprep.subr.bf16.mxu1 %v9779_v12  ;;  %v1642_v36 = vld [vmem:[#allocation7 + $0xd60] sm:$0xff] }
  0xfb   :  { %v9979_v40 = vcombine.high %v1638_v35, %v1642_v36  ;;  %v9978_v45 = vcombine.low %v1638_v35, %v1642_v36  ;;  %v1714_v35 = vld [vmem:[#allocation7 + $0xfa0] sm:$0xff] }
  0xfd   :  { %7423 = vmatpush2.bf16.msra.mxu0 %v9650_v41  ;;  %7464 = vmatpush2.bf16.msra.mxu1 %v9778_v42  ;;  %v1502_v41 = vld [vmem:[#allocation7 + $0x900] sm:$0xff] }
  0xfe   :  { %7424 = vmatprep.subr.bf16.mxu0 %v9643_v43  ;;  %7465 = vmatprep.subr.bf16.mxu1 %v9771_v0  ;;  %v1506_v42 = vld [vmem:[#allocation7 + $0x920] sm:$0xff] }
  0xff   :  { %v1630_v43 = vld [vmem:[#allocation7 + $0xd00] sm:$0xff]  ;;  %v9843_v46 = vcombine.high %v1502_v41, %v1506_v42  ;;  %v9842_v52 = vcombine.low %v1502_v41, %v1506_v42 }
 0x100   :  { %v1634_v0 = vld [vmem:[#allocation7 + $0xd20] sm:$0xff] }
 0x101   :  { %7425 = vmatpush2.bf16.msra.mxu0 %v9642_v48  ;;  %7466 = vmatpush2.bf16.msra.mxu1 %v9770_v49  ;;  %v9971_v47 = vcombine.high %v1630_v43, %v1634_v0  ;;  %v1494_v48 = vld [vmem:[#allocation7 + $0x8c0] sm:$0xff]  ;;  %v9970_v53 = vcombine.low %v1630_v43, %v1634_v0 }
 0x102   :  { %7426 = vmatprep.subr.bf16.mxu0 %v9635_v50  ;;  %7467 = vmatprep.subr.bf16.mxu1 %v9763_v51  ;;  %v1498_v49 = vld [vmem:[#allocation7 + $0x8e0] sm:$0xff] }
 0x103   :  { %v1622_v50 = vld [vmem:[#allocation7 + $0xcc0] sm:$0xff]  ;;  %v9835_v54 = vcombine.high %v1494_v48, %v1498_v49  ;;  %v9834_v60 = vcombine.low %v1494_v48, %v1498_v49 }
 0x104   :  { %v1626_v51 = vld [vmem:[#allocation7 + $0xce0] sm:$0xff] }
 0x105   :  { %7427 = vmatpush2.bf16.msra.mxu0 %v9634_v56  ;;  %7468 = vmatpush2.bf16.msra.mxu1 %v9762_v57  ;;  %v9963_v55 = vcombine.high %v1622_v50, %v1626_v51  ;;  %v1486_v56 = vld [vmem:[#allocation7 + $0x880] sm:$0xff]  ;;  %v9962_v61 = vcombine.low %v1622_v50, %v1626_v51 }
 0x106   :  { %7428 = vmatprep.subr.bf16.mxu0 %v9627_v58  ;;  %7469 = vmatprep.subr.bf16.mxu1 %v9755_v59  ;;  %v1490_v57 = vld [vmem:[#allocation7 + $0x8a0] sm:$0xff] }
 0x107   :  { %v1614_v58 = vld [vmem:[#allocation7 + $0xc80] sm:$0xff]  ;;  %v9827_v62 = vcombine.high %v1486_v56, %v1490_v57  ;;  %v9826_v5 = vcombine.low %v1486_v56, %v1490_v57 }
 0x108   :  { %v1618_v59 = vld [vmem:[#allocation7 + $0xca0] sm:$0xff] }
 0x109   :  { %7429 = vmatpush2.bf16.msra.mxu0 %v9626_v1  ;;  %7470 = vmatpush2.bf16.msra.mxu1 %v9754_v2  ;;  %v9955_v63 = vcombine.high %v1614_v58, %v1618_v59  ;;  %v1478_v1 = vld [vmem:[#allocation7 + $0x840] sm:$0xff]  ;;  %v9954_v6 = vcombine.low %v1614_v58, %v1618_v59 }
 0x10a   :  { %7430 = vmatprep.subr.bf16.mxu0 %v9619_v3  ;;  %7471 = vmatprep.subr.bf16.mxu1 %v9747_v4  ;;  %v1482_v2 = vld [vmem:[#allocation7 + $0x860] sm:$0xff] }
 0x10b   :  { %v1606_v3 = vld [vmem:[#allocation7 + $0xc40] sm:$0xff]  ;;  %v9819_v7 = vcombine.high %v1478_v1, %v1482_v2 }
 0x10c   :  { %v1610_v4 = vld [vmem:[#allocation7 + $0xc60] sm:$0xff] }
 0x10d   :  { %7431 = vmatpush2.bf16.msra.mxu0 %v9618_v9  ;;  %7472 = vmatpush2.bf16.msra.mxu1 %v9746_v10  ;;  %v9947_v8 = vcombine.high %v1606_v3, %v1610_v4  ;;  %v1470_v9 = vld [vmem:[#allocation7 + $0x800] sm:$0xff] }
 0x10e   :  { %7482 = vmatprep.subr.bf16.mxu0 %v9867_v11  ;;  %7523 = vmatprep.subr.bf16.mxu1 %v9995_v13  ;;  %v1474_v10 = vld [vmem:[#allocation7 + $0x820] sm:$0xff] }
 0x10f   :  { %v1598_v11 = vld [vmem:[#allocation7 + $0xc00] sm:$0xff]  ;;  %v9811_v16 = vcombine.high %v1470_v9, %v1474_v10 }
 0x110   :  { %v1602_v13 = vld [vmem:[#allocation7 + $0xc20] sm:$0xff] }
 0x111   :  { %v9939_v17 = vcombine.high %v1598_v11, %v1602_v13  ;;  %v1574_v0 = vld [vmem:[#allocation7 + $0xb40] sm:$0xff] }
 0x112   :  { %v1694_v56 = vld [vmem:[#allocation7 + $0xf00] sm:$0xff] }
 0x113   :  { %v1698_v57 = vld [vmem:[#allocation7 + $0xf20] sm:$0xff] }
 0x130   :  { %v904_v14 = vpop.f32.mrf.mxu0  ;;  %v945_v15 = vpop.f32.mrf.mxu1 }
 0x131   :  { %v11048_v21 = vpack.c.bf16 %v945_v15, %v945_v15  ;;  %v11052_v25 = vpack.c.bf16 %v904_v14, %v904_v14  ;;  %v9818_v14 = vcombine.low %v1478_v1, %v1482_v2  ;;  %v9946_v15 = vcombine.low %v1606_v3, %v1610_v4  ;;  %v1686_v1 = vld [vmem:[#allocation7 + $0xec0] sm:$0xff] }
 0x132   :  { %v906_v18 = vpop.f32.mrf.mxu0  ;;  %v947_v23 = vpop.f32.mrf.mxu1  ;;  %v1690_v2 = vld [vmem:[#allocation7 + $0xee0] sm:$0xff]  ;;  %v10034_v4 = vcombine.low %v1694_v56, %v1698_v57 }
 0x133   :  { %v11050_v22 = vpack.c.bf16 %v906_v18, %v906_v18  ;;  %v11054_v26 = vpack.c.bf16 %v947_v23, %v947_v23  ;;  %v1590_v18 = vld [vmem:[#allocation7 + $0xbc0] sm:$0xff] }
 0x134   :  { %v908_v27 = vpop.f32.mrf.mxu0  ;;  %v949_v30 = vpop.f32.mrf.mxu1  ;;  %v1722_v23 = vld [vmem:[#allocation7 + $0xfe0] sm:$0xff] }
 0x135   :  { %7432 = vmatprep.mubr.bf16.mxu0 %v11050_v22  ;;  %7473 = vmatprep.mubr.bf16.mxu1 %v11054_v26  ;;  %v9938_v27 = vcombine.low %v1598_v11, %v1602_v13  ;;  %v10059_v30 = vcombine.high %v1718_v20, %v1722_v23  ;;  %v10026_v13 = vcombine.low %v1686_v1, %v1690_v2 }
 0x136   :  { %v909_v34 = vpop.f32.mrf.mxu0  ;;  %7433 = vmatmul.mubr.bf16.vlgmr.msra.gmra.mxu0 %v11052_v25  ;;  %v950_v12 = vpop.f32.mrf.mxu1  ;;  %7474 = vmatmul.mubr.bf16.vlgmr.msra.gmra.mxu1 %v11048_v21 }
 0x137   :  { %7483 = vmatpush1.bf16.msra.mxu0 %v9866_v24  ;;  %7524 = vmatpush1.bf16.msra.mxu1 %v9994_v28  ;;  %v9810_v24 = vcombine.low %v1470_v9, %v1474_v10  ;;  %v9931_v28 = vcombine.high %v1590_v18, %v1594_v19  ;;  %v1710_v34 = vld [vmem:[#allocation7 + $0xf80] sm:$0xff]  ;;  %v9930_v12 = vcombine.low %v1590_v18, %v1594_v19 }
 0x138   :  { %7484 = vmatprep.subr.bf16.mxu0 %v9859_v29  ;;  %7525 = vmatprep.subr.bf16.mxu1 %v9987_v31  ;;  %v1582_v31 = vld [vmem:[#allocation7 + $0xb80] sm:$0xff]  ;;  %v10051_v43 = vcombine.high %v1710_v34, %v1714_v35  ;;  %v10050_v51 = vcombine.low %v1710_v34, %v1714_v35 }
 0x139   :  { %v9922_v49 = vcombine.low %v1582_v31, %v1586_v32  ;;  %v1678_v9 = vld [vmem:[#allocation7 + $0xe80] sm:$0xff] }
 0x13a   :  { %v1682_v10 = vld [vmem:[#allocation7 + $0xea0] sm:$0xff] }
 0x13b   :  { %7485 = vmatpush1.bf16.msra.mxu0 %v9858_v37  ;;  %7526 = vmatpush1.bf16.msra.mxu1 %v9986_v38  ;;  %v1670_v18 = vld [vmem:[#allocation7 + $0xe40] sm:$0xff] }
 0x13c   :  { %7486 = vmatprep.subr.bf16.mxu0 %v9851_v39  ;;  %7527 = vmatprep.subr.bf16.mxu1 %v9979_v40  ;;  %v10058_v39 = vcombine.low %v1718_v20, %v1722_v23  ;;  %v9923_v40 = vcombine.high %v1582_v31, %v1586_v32  ;;  %v1674_v19 = vld [vmem:[#allocation7 + $0xe60] sm:$0xff]  ;;  %v10018_v23 = vcombine.low %v1678_v9, %v1682_v10 }
 0x13d   :  { %v1662_v31 = vld [vmem:[#allocation7 + $0xe00] sm:$0xff]  ;;  %v10010_v35 = vcombine.low %v1670_v18, %v1674_v19 }
 0x13e   :  { %v1666_v32 = vld [vmem:[#allocation7 + $0xe20] sm:$0xff] }
 0x13f   :  { %7487 = vmatpush1.bf16.msra.mxu0 %v9850_v44  ;;  %7528 = vmatpush1.bf16.msra.mxu1 %v9978_v45  ;;  %v1578_v44 = vld [vmem:[#allocation7 + $0xb60] sm:$0xff] }
 0x140   :  { %7488 = vmatprep.subr.bf16.mxu0 %v9843_v46  ;;  %7529 = vmatprep.subr.bf16.mxu1 %v9971_v47  ;;  %v1702_v46 = vld [vmem:[#allocation7 + $0xf40] sm:$0xff]  ;;  %v9914_v58 = vcombine.low %v1574_v0, %v1578_v44 }
 0x141   :  { %v1706_v47 = vld [vmem:[#allocation7 + $0xf60] sm:$0xff] }
 0x142   :  { %v10042_v59 = vcombine.low %v1702_v46, %v1706_v47 }
 0x143   :  { %7489 = vmatpush1.bf16.msra.mxu0 %v9842_v52  ;;  %7530 = vmatpush1.bf16.msra.mxu1 %v9970_v53  ;;  %v9915_v52 = vcombine.high %v1574_v0, %v1578_v44  ;;  %v10043_v53 = vcombine.high %v1702_v46, %v1706_v47  ;;  %v10002_v0 = vcombine.low %v1662_v31, %v1666_v32  ;;  %v1774_v47 = vld [vmem:[#allocation7 + $0x1180] sm:$0xff] }
 0x144   :  { %7490 = vmatprep.subr.bf16.mxu0 %v9835_v54  ;;  %7531 = vmatprep.subr.bf16.mxu1 %v9963_v55  ;;  %v1566_v54 = vld [vmem:[#allocation7 + $0xb00] sm:$0xff] }
 0x145   :  { %v1570_v55 = vld [vmem:[#allocation7 + $0xb20] sm:$0xff] }
 0x146   :  { %v9906_v3 = vcombine.low %v1566_v54, %v1570_v55 }
 0x147   :  { %7491 = vmatpush1.bf16.msra.mxu0 %v9834_v60  ;;  %7532 = vmatpush1.bf16.msra.mxu1 %v9962_v61  ;;  %v9907_v60 = vcombine.high %v1566_v54, %v1570_v55  ;;  %v10035_v61 = vcombine.high %v1694_v56, %v1698_v57 }
 0x148   :  { %7492 = vmatprep.subr.bf16.mxu0 %v9827_v62  ;;  %7533 = vmatprep.subr.bf16.mxu1 %v9955_v63  ;;  %v1558_v62 = vld [vmem:[#allocation7 + $0xac0] sm:$0xff] }
 0x149   :  { %v1562_v63 = vld [vmem:[#allocation7 + $0xae0] sm:$0xff] }
 0x14a   :  { %v9898_v11 = vcombine.low %v1558_v62, %v1562_v63 }
 0x14b   :  { %7493 = vmatpush1.bf16.msra.mxu0 %v9826_v5  ;;  %7534 = vmatpush1.bf16.msra.mxu1 %v9954_v6  ;;  %v9899_v5 = vcombine.high %v1558_v62, %v1562_v63  ;;  %v10027_v6 = vcombine.high %v1686_v1, %v1690_v2  ;;  %v1770_v62 = vld [vmem:[#allocation7 + $0x1160] sm:$0xff] }
 0x14c   :  { %7494 = vmatprep.subr.bf16.mxu0 %v9819_v7  ;;  %7535 = vmatprep.subr.bf16.mxu1 %v9947_v8  ;;  %v1550_v7 = vld [vmem:[#allocation7 + $0xa80] sm:$0xff] }
 0x14d   :  { %v1554_v8 = vld [vmem:[#allocation7 + $0xaa0] sm:$0xff] }
 0x14e   :  { %v9890_v20 = vcombine.low %v1550_v7, %v1554_v8  ;;  %v1894_v1 = vld [vmem:[#allocation7 + $0x1540] sm:$0xff] }
 0x14f   :  { %7495 = vmatpush1.bf16.msra.mxu0 %v9818_v14  ;;  %7536 = vmatpush1.bf16.msra.mxu1 %v9946_v15  ;;  %v9891_v14 = vcombine.high %v1550_v7, %v1554_v8  ;;  %v10019_v15 = vcombine.high %v1678_v9, %v1682_v10  ;;  %v1898_v2 = vld [vmem:[#allocation7 + $0x1560] sm:$0xff] }
 0x150   :  { %7496 = vmatprep.subr.bf16.mxu0 %v9811_v16  ;;  %v11060_v29 = vpop.f32.mrf.mxu0  ;;  %7537 = vmatprep.subr.bf16.mxu1 %v9939_v17  ;;  %v11062_v33 = vpop.f32.mrf.mxu1  ;;  %v1542_v16 = vld [vmem:[#allocation7 + $0xa40] sm:$0xff]  ;;  %v10235_v8 = vcombine.high %v1894_v1, %v1898_v2 }
 0x151   :  { %v1546_v17 = vld [vmem:[#allocation7 + $0xa60] sm:$0xff]  ;;  %v11080_v56 = vpack.c.bf16 %v11060_v29, %v11060_v29 }
 0x152   :  { %v988_v36 = vpop.f32.mrf.mxu0  ;;  %v1029_v38 = vpop.f32.mrf.mxu1  ;;  %v9882_v34 = vcombine.low %v1542_v16, %v1546_v17  ;;  %v1758_v9 = vld [vmem:[#allocation7 + $0x1100] sm:$0xff] }
 0x153   :  { %7497 = vmatpush1.bf16.msra.mxu0 %v9810_v24  ;;  %v11064_v37 = vpack.c.bf16 %v988_v36, %v988_v36  ;;  %7538 = vmatpush1.bf16.msra.mxu1 %v9938_v27  ;;  %v11066_v42 = vpack.c.bf16 %v1029_v38, %v1029_v38  ;;  %v9883_v24 = vcombine.high %v1542_v16, %v1546_v17  ;;  %v1782_v38 = vld [vmem:[#allocation7 + $0x11c0] sm:$0xff] }
 0x154   :  { %7498 = vmatprep.subr.bf16.mxu0 %v9931_v28  ;;  %v990_v41 = vpop.f32.mrf.mxu0  ;;  %7539 = vmatprep.subr.bf16.mxu1 %v10059_v30  ;;  %v1031_v45 = vpop.f32.mrf.mxu1  ;;  %v10011_v27 = vcombine.high %v1670_v18, %v1674_v19  ;;  %v1534_v28 = vld [vmem:[#allocation7 + $0xa00] sm:$0xff] }
 0x155   :  { %7514 = vmatprep.mubr.bf16.mxu0 %v11064_v37  ;;  %7555 = vmatprep.mubr.bf16.mxu1 %v11066_v42  ;;  %v1538_v30 = vld [vmem:[#allocation7 + $0xa20] sm:$0xff] }
 0x156   :  { %v991_v48 = vpop.f32.mrf.mxu0  ;;  %v1032_v50 = vpop.f32.mrf.mxu1  ;;  %v9875_v36 = vcombine.high %v1534_v28, %v1538_v30  ;;  %v1914_v41 = vld [vmem:[#allocation7 + $0x15e0] sm:$0xff] }
 0x157   :  { %7499 = vmatpush2.bf16.msra.mxu0 %v9930_v12  ;;  %7540 = vmatpush2.bf16.msra.mxu1 %v10058_v39  ;;  %v10003_v12 = vcombine.high %v1662_v31, %v1666_v32  ;;  %v1786_v39 = vld [vmem:[#allocation7 + $0x11e0] sm:$0xff] }
 0x158   :  { %7500 = vmatprep.subr.bf16.mxu0 %v9923_v40  ;;  %7541 = vmatprep.subr.bf16.mxu1 %v10051_v43  ;;  %v1910_v40 = vld [vmem:[#allocation7 + $0x15c0] sm:$0xff]  ;;  %v9874_v43 = vcombine.low %v1534_v28, %v1538_v30  ;;  %v10123_v44 = vcombine.high %v1782_v38, %v1786_v39  ;;  %v10122_v54 = vcombine.low %v1782_v38, %v1786_v39 }
 0x159   :  { %v10251_v46 = vcombine.high %v1910_v40, %v1914_v41  ;;  %v1778_v48 = vld [vmem:[#allocation7 + $0x11a0] sm:$0xff]  ;;  %v10250_v57 = vcombine.low %v1910_v40, %v1914_v41 }
 0x15a   :  { %v1902_v50 = vld [vmem:[#allocation7 + $0x1580] sm:$0xff] }
 0x15b   :  { %7501 = vmatpush2.bf16.msra.mxu0 %v9922_v49  ;;  %7542 = vmatpush2.bf16.msra.mxu1 %v10050_v51  ;;  %v1906_v51 = vld [vmem:[#allocation7 + $0x15a0] sm:$0xff] }
 0x15c   :  { %7502 = vmatprep.subr.bf16.mxu0 %v9915_v52  ;;  %7543 = vmatprep.subr.bf16.mxu1 %v10043_v53  ;;  %v11076_v53 = vpack.c.bf16 %v11062_v33, %v11062_v33  ;;  %v1762_v10 = vld [vmem:[#allocation7 + $0x1120] sm:$0xff] }
 0x15d   :  { %v10099_v16 = vcombine.high %v1758_v9, %v1762_v10  ;;  %v1750_v18 = vld [vmem:[#allocation7 + $0x10c0] sm:$0xff] }
 0x15e   :  { %v1754_v19 = vld [vmem:[#allocation7 + $0x10e0] sm:$0xff] }
 0x15f   :  { %7503 = vmatpush2.bf16.msra.mxu0 %v9914_v58  ;;  %7544 = vmatpush2.bf16.msra.mxu1 %v10042_v59  ;;  %v10115_v58 = vcombine.high %v1774_v47, %v1778_v48  ;;  %v10091_v28 = vcombine.high %v1750_v18, %v1754_v19  ;;  %v1742_v31 = vld [vmem:[#allocation7 + $0x1080] sm:$0xff] }
 0x160   :  { %7504 = vmatprep.subr.bf16.mxu0 %v9907_v60  ;;  %7545 = vmatprep.subr.bf16.mxu1 %v10035_v61  ;;  %v10243_v60 = vcombine.high %v1902_v50, %v1906_v51  ;;  %v1766_v61 = vld [vmem:[#allocation7 + $0x1140] sm:$0xff] }
 0x161   :  { %v10107_v7 = vcombine.high %v1766_v61, %v1770_v62  ;;  %v1746_v32 = vld [vmem:[#allocation7 + $0x10a0] sm:$0xff] }
 0x162   :  { %v10083_v38 = vcombine.high %v1742_v31, %v1746_v32  ;;  %v1734_v40 = vld [vmem:[#allocation7 + $0x1040] sm:$0xff] }
 0x163   :  { %7505 = vmatpush2.bf16.msra.mxu0 %v9906_v3  ;;  %7546 = vmatpush2.bf16.msra.mxu1 %v10034_v4  ;;  %v10114_v4 = vcombine.low %v1774_v47, %v1778_v48  ;;  %v1738_v41 = vld [vmem:[#allocation7 + $0x1060] sm:$0xff] }
 0x164   :  { %7506 = vmatprep.subr.bf16.mxu0 %v9899_v5  ;;  %7547 = vmatprep.subr.bf16.mxu1 %v10027_v6  ;;  %v10242_v6 = vcombine.low %v1902_v50, %v1906_v51  ;;  %v10075_v47 = vcombine.high %v1734_v40, %v1738_v41  ;;  %v1726_v50 = vld [vmem:[#allocation7 + $0x1000] sm:$0xff] }
 0x165   :  { %v1730_v51 = vld [vmem:[#allocation7 + $0x1020] sm:$0xff] }
 0x167   :  { %7507 = vmatpush2.bf16.msra.mxu0 %v9898_v11  ;;  %7548 = vmatpush2.bf16.msra.mxu1 %v10026_v13  ;;  %v1886_v11 = vld [vmem:[#allocation7 + $0x1500] sm:$0xff] }
 0x168   :  { %7508 = vmatprep.subr.bf16.mxu0 %v9891_v14  ;;  %7549 = vmatprep.subr.bf16.mxu1 %v10019_v15  ;;  %v1890_v13 = vld [vmem:[#allocation7 + $0x1520] sm:$0xff]  ;;  %v10106_v14 = vcombine.low %v1766_v61, %v1770_v62  ;;  %v10234_v15 = vcombine.low %v1894_v1, %v1898_v2  ;;  %v10066_v1 = vcombine.low %v1726_v50, %v1730_v51 }
 0x169   :  { %v10227_v17 = vcombine.high %v1886_v11, %v1890_v13  ;;  %v1850_v61 = vld [vmem:[#allocation7 + $0x13e0] sm:$0xff] }
 0x16a   :  { %v1974_v62 = vld [vmem:[#allocation7 + $0x17c0] sm:$0xff] }
 0x16b   :  { %7509 = vmatpush2.bf16.msra.mxu0 %v9890_v20  ;;  %7550 = vmatpush2.bf16.msra.mxu1 %v10018_v23  ;;  %v1878_v20 = vld [vmem:[#allocation7 + $0x14c0] sm:$0xff] }
 0x16c   :  { %7510 = vmatprep.subr.bf16.mxu0 %v9883_v24  ;;  %7551 = vmatprep.subr.bf16.mxu1 %v10011_v27  ;;  %v1882_v23 = vld [vmem:[#allocation7 + $0x14e0] sm:$0xff]  ;;  %v10098_v24 = vcombine.low %v1758_v9, %v1762_v10  ;;  %v10226_v27 = vcombine.low %v1886_v11, %v1890_v13 }
 0x16d   :  { %v10219_v30 = vcombine.high %v1878_v20, %v1882_v23  ;;  %v1966_v9 = vld [vmem:[#allocation7 + $0x1780] sm:$0xff] }
 0x16e   :  { %v1970_v10 = vld [vmem:[#allocation7 + $0x17a0] sm:$0xff] }
 0x16f   :  { %7511 = vmatpush2.bf16.msra.mxu0 %v9882_v34  ;;  %7552 = vmatpush2.bf16.msra.mxu1 %v10010_v35  ;;  %v1870_v34 = vld [vmem:[#allocation7 + $0x1480] sm:$0xff] }
 0x170   :  { %7512 = vmatprep.subr.bf16.mxu0 %v9875_v36  ;;  %v11070_v45 = vpop.f32.mrf.mxu0  ;;  %7553 = vmatprep.subr.bf16.mxu1 %v10003_v12  ;;  %v11072_v49 = vpop.f32.mrf.mxu1  ;;  %v1874_v35 = vld [vmem:[#allocation7 + $0x14a0] sm:$0xff]  ;;  %v10090_v36 = vcombine.low %v1750_v18, %v1754_v19  ;;  %v10218_v12 = vcombine.low %v1878_v20, %v1882_v23  ;;  %v10307_v18 = vcombine.high %v1966_v9, %v1970_v10 }
 0x171   :  { %v10211_v39 = vcombine.high %v1870_v34, %v1874_v35  ;;  %v1830_v19 = vld [vmem:[#allocation7 + $0x1340] sm:$0xff] }
 0x172   :  { %v1070_v52 = vpop.f32.mrf.mxu0  ;;  %v1111_v55 = vpop.f32.mrf.mxu1  ;;  %v1834_v20 = vld [vmem:[#allocation7 + $0x1360] sm:$0xff] }
 0x173   :  { %7513 = vmatpush2.bf16.msra.mxu0 %v9874_v43  ;;  %7554 = vmatpush2.bf16.msra.mxu1 %v10002_v0  ;;  %v11082_v63 = vpack.c.bf16 %v1070_v52, %v1070_v52  ;;  %v11085_v3 = vpack.c.bf16 %v1111_v55, %v1111_v55  ;;  %v1862_v43 = vld [vmem:[#allocation7 + $0x1440] sm:$0xff]  ;;  %v10074_v55 = vcombine.low %v1734_v40, %v1738_v41 }
 0x174   :  { %7564 = vmatprep.subr.bf16.mxu0 %v10123_v44  ;;  %v1072_v59 = vpop.f32.mrf.mxu0  ;;  %7605 = vmatprep.subr.bf16.mxu1 %v10251_v46  ;;  %v1113_v33 = vpop.f32.mrf.mxu1  ;;  %v1866_v0 = vld [vmem:[#allocation7 + $0x1460] sm:$0xff]  ;;  %v10082_v44 = vcombine.low %v1742_v31, %v1746_v32  ;;  %v10210_v46 = vcombine.low %v1870_v34, %v1874_v35  ;;  %v10306_v32 = vcombine.low %v1966_v9, %v1970_v10 }
 0x175   :  { %v10203_v48 = vcombine.high %v1862_v43, %v1866_v0  ;;  %v1854_v52 = vld [vmem:[#allocation7 + $0x1400] sm:$0xff]  ;;  %v10171_v34 = vcombine.high %v1830_v19, %v1834_v20  ;;  %v10170_v40 = vcombine.low %v1830_v19, %v1834_v20 }
 0x176   :  { %7515 = vmatmul.mubr.bf16.vlgmr.msra.gmra.mxu0 %v11080_v56  ;;  %v1073_v29 = vpop.f32.mrf.mxu0  ;;  %7556 = vmatmul.mubr.bf16.vlgmr.msra.gmra.mxu1 %v11076_v53  ;;  %v1114_v5 = vpop.f32.mrf.mxu1  ;;  %v1978_v33 = vld [vmem:[#allocation7 + $0x17e0] sm:$0xff] }
 0x177   :  { %7565 = vmatpush1.bf16.msra.mxu0 %v10122_v54  ;;  %7606 = vmatpush1.bf16.msra.mxu1 %v10250_v57  ;;  %v1858_v54 = vld [vmem:[#allocation7 + $0x1420] sm:$0xff]  ;;  %v10202_v57 = vcombine.low %v1862_v43, %v1866_v0  ;;  %v10315_v5 = vcombine.high %v1974_v62, %v1978_v33 }
 0x178   :  { %7566 = vmatprep.subr.bf16.mxu0 %v10115_v58  ;;  %7607 = vmatprep.subr.bf16.mxu1 %v10243_v60  ;;  %v10067_v58 = vcombine.high %v1726_v50, %v1730_v51  ;;  %v10195_v59 = vcombine.high %v1854_v52, %v1858_v54  ;;  %v1846_v60 = vld [vmem:[#allocation7 + $0x13c0] sm:$0xff]  ;;  %v10194_v2 = vcombine.low %v1854_v52, %v1858_v54 }
 0x179   :  { %7596 = vmatprep.mubr.bf16.mxu0 %v11082_v63  ;;  %7637 = vmatprep.mubr.bf16.mxu1 %v11085_v3  ;;  %v10187_v29 = vcombine.high %v1846_v60, %v1850_v61  ;;  %v10186_v13 = vcombine.low %v1846_v60, %v1850_v61 }
 0x17b   :  { %7567 = vmatpush1.bf16.msra.mxu0 %v10114_v4  ;;  %7608 = vmatpush1.bf16.msra.mxu1 %v10242_v6  ;;  %v1838_v6 = vld [vmem:[#allocation7 + $0x1380] sm:$0xff] }
 0x17c   :  { %7568 = vmatprep.subr.bf16.mxu0 %v10107_v7  ;;  %7609 = vmatprep.subr.bf16.mxu1 %v10235_v8  ;;  %v1842_v7 = vld [vmem:[#allocation7 + $0x13a0] sm:$0xff] }
 0x17f   :  { %7569 = vmatpush1.bf16.msra.mxu0 %v10106_v14  ;;  %7610 = vmatpush1.bf16.msra.mxu1 %v10234_v15  ;;  %v10314_v15 = vcombine.low %v1974_v62, %v1978_v33 }
 0x180   :  { %7570 = vmatprep.subr.bf16.mxu0 %v10099_v16  ;;  %7611 = vmatprep.subr.bf16.mxu1 %v10227_v17  ;;  %v10179_v16 = vcombine.high %v1838_v6, %v1842_v7 }
 0x183   :  { %7571 = vmatpush1.bf16.msra.mxu0 %v10098_v24  ;;  %7612 = vmatpush1.bf16.msra.mxu1 %v10226_v27  ;;  %v1958_v24 = vld [vmem:[#allocation7 + $0x1740] sm:$0xff] }
 0x184   :  { %7572 = vmatprep.subr.bf16.mxu0 %v10091_v28  ;;  %7613 = vmatprep.subr.bf16.mxu1 %v10219_v30  ;;  %v1962_v27 = vld [vmem:[#allocation7 + $0x1760] sm:$0xff]  ;;  %v10178_v30 = vcombine.low %v1838_v6, %v1842_v7 }
 0x185   :  { %v10299_v35 = vcombine.high %v1958_v24, %v1962_v27  ;;  %v10298_v41 = vcombine.low %v1958_v24, %v1962_v27  ;;  %v2038_v24 = vld [vmem:[#allocation7 + $0x19c0] sm:$0xff] }
 0x186   :  { %v2042_v27 = vld [vmem:[#allocation7 + $0x19e0] sm:$0xff] }
 0x187   :  { %7573 = vmatpush1.bf16.msra.mxu0 %v10090_v36  ;;  %7614 = vmatpush1.bf16.msra.mxu1 %v10218_v12  ;;  %v1822_v36 = vld [vmem:[#allocation7 + $0x1300] sm:$0xff] }
 0x188   :  { %7574 = vmatprep.subr.bf16.mxu0 %v10083_v38  ;;  %7615 = vmatprep.subr.bf16.mxu1 %v10211_v39  ;;  %v1826_v12 = vld [vmem:[#allocation7 + $0x1320] sm:$0xff] }
 0x189   :  { %v1950_v38 = vld [vmem:[#allocation7 + $0x1700] sm:$0xff]  ;;  %v10163_v43 = vcombine.high %v1822_v36, %v1826_v12  ;;  %v10162_v50 = vcombine.low %v1822_v36, %v1826_v12 }
 0x18a   :  { %v1954_v39 = vld [vmem:[#allocation7 + $0x1720] sm:$0xff] }
 0x18b   :  { %7575 = vmatpush1.bf16.msra.mxu0 %v10082_v44  ;;  %7616 = vmatpush1.bf16.msra.mxu1 %v10210_v46  ;;  %v10291_v0 = vcombine.high %v1950_v38, %v1954_v39  ;;  %v1814_v44 = vld [vmem:[#allocation7 + $0x12c0] sm:$0xff]  ;;  %v10290_v51 = vcombine.low %v1950_v38, %v1954_v39 }
 0x18c   :  { %7576 = vmatprep.subr.bf16.mxu0 %v10075_v47  ;;  %7617 = vmatprep.subr.bf16.mxu1 %v10203_v48  ;;  %v1818_v46 = vld [vmem:[#allocation7 + $0x12e0] sm:$0xff] }
 0x18d   :  { %v1942_v47 = vld [vmem:[#allocation7 + $0x16c0] sm:$0xff]  ;;  %v10155_v52 = vcombine.high %v1814_v44, %v1818_v46  ;;  %v10154_v60 = vcombine.low %v1814_v44, %v1818_v46  ;;  %v11104_v44 = vpack.c.bf16 %v11072_v49, %v11072_v49 }
 0x18e   :  { %v1946_v48 = vld [vmem:[#allocation7 + $0x16e0] sm:$0xff] }
 0x18f   :  { %7577 = vmatpush1.bf16.msra.mxu0 %v10074_v55  ;;  %7618 = vmatpush1.bf16.msra.mxu1 %v10202_v57  ;;  %v10283_v54 = vcombine.high %v1942_v47, %v1946_v48  ;;  %v1806_v55 = vld [vmem:[#allocation7 + $0x1280] sm:$0xff]  ;;  %v10282_v61 = vcombine.low %v1942_v47, %v1946_v48 }
 0x190   :  { %7578 = vmatprep.subr.bf16.mxu0 %v10067_v58  ;;  %v11090_v4 = vpop.f32.mrf.mxu0  ;;  %7619 = vmatprep.subr.bf16.mxu1 %v10195_v59  ;;  %v11092_v8 = vpop.f32.mrf.mxu1  ;;  %v1810_v57 = vld [vmem:[#allocation7 + $0x12a0] sm:$0xff] }
 0x191   :  { %v1934_v58 = vld [vmem:[#allocation7 + $0x1680] sm:$0xff]  ;;  %v10147_v62 = vcombine.high %v1806_v55, %v1810_v57  ;;  %v10146_v6 = vcombine.low %v1806_v55, %v1810_v57 }
 0x192   :  { %v11094_v11 = vpop.f32.mrf.mxu0  ;;  %v11096_v14 = vpop.f32.mrf.mxu1  ;;  %v1938_v59 = vld [vmem:[#allocation7 + $0x16a0] sm:$0xff] }
 0x193   :  { %7579 = vmatpush1.bf16.msra.mxu0 %v10066_v1  ;;  %7620 = vmatpush1.bf16.msra.mxu1 %v10194_v2  ;;  %v10275_v33 = vcombine.high %v1934_v58, %v1938_v59  ;;  %v1798_v1 = vld [vmem:[#allocation7 + $0x1240] sm:$0xff]  ;;  %v10274_v7 = vcombine.low %v1934_v58, %v1938_v59  ;;  %v11108_v46 = vpack.c.bf16 %v11094_v11, %v11094_v11 }
 0x194   :  { %7580 = vmatprep.subr.bf16.mxu0 %v10187_v29  ;;  %v1154_v17 = vpop.f32.mrf.mxu0  ;;  %7621 = vmatprep.subr.bf16.mxu1 %v10315_v5  ;;  %v1195_v23 = vpop.f32.mrf.mxu1  ;;  %v1802_v2 = vld [vmem:[#allocation7 + $0x1260] sm:$0xff] }
 0x195   :  { %v1926_v29 = vld [vmem:[#allocation7 + $0x1640] sm:$0xff]  ;;  %v10139_v9 = vcombine.high %v1798_v1, %v1802_v2 }
 0x196   :  { %v1155_v28 = vpop.f32.mrf.mxu0  ;;  %v1196_v31 = vpop.f32.mrf.mxu1  ;;  %v1930_v5 = vld [vmem:[#allocation7 + $0x1660] sm:$0xff] }
 0x197   :  { %7581 = vmatpush2.bf16.msra.mxu0 %v10186_v13  ;;  %7622 = vmatpush2.bf16.msra.mxu1 %v10314_v15  ;;  %v10267_v10 = vcombine.high %v1926_v29, %v1930_v5  ;;  %v1790_v13 = vld [vmem:[#allocation7 + $0x1200] sm:$0xff]  ;;  %v10266_v19 = vcombine.low %v1926_v29, %v1930_v5 }
 0x198   :  { %7582 = vmatprep.subr.bf16.mxu0 %v10179_v16  ;;  %7623 = vmatprep.subr.bf16.mxu1 %v10307_v18  ;;  %v1794_v15 = vld [vmem:[#allocation7 + $0x1220] sm:$0xff]  ;;  %v10138_v18 = vcombine.low %v1798_v1, %v1802_v2 }
 0x199   :  { %v1918_v16 = vld [vmem:[#allocation7 + $0x1600] sm:$0xff]  ;;  %v10131_v20 = vcombine.high %v1790_v13, %v1794_v15  ;;  %v10130_v31 = vcombine.low %v1790_v13, %v1794_v15 }
 0x19a   :  { %v1922_v17 = vld [vmem:[#allocation7 + $0x1620] sm:$0xff] }
 0x19b   :  { %7583 = vmatpush2.bf16.msra.mxu0 %v10178_v30  ;;  %7624 = vmatpush2.bf16.msra.mxu1 %v10306_v32  ;;  %v10259_v23 = vcombine.high %v1918_v16, %v1922_v17  ;;  %v2166_v28 = vld [vmem:[#allocation7 + $0x1dc0] sm:$0xff]  ;;  %v10258_v32 = vcombine.low %v1918_v16, %v1922_v17 }
 0x19c   :  { %7584 = vmatprep.subr.bf16.mxu0 %v10171_v34  ;;  %7625 = vmatprep.subr.bf16.mxu1 %v10299_v35  ;;  %v2170_v30 = vld [vmem:[#allocation7 + $0x1de0] sm:$0xff]  ;;  %v10379_v34 = vcombine.high %v2038_v24, %v2042_v27 }
 0x19d   :  { %v10507_v35 = vcombine.high %v2166_v28, %v2170_v30  ;;  %v2030_v36 = vld [vmem:[#allocation7 + $0x1980] sm:$0xff] }
 0x19e   :  { %v2034_v12 = vld [vmem:[#allocation7 + $0x19a0] sm:$0xff] }
 0x19f   :  { %7585 = vmatpush2.bf16.msra.mxu0 %v10170_v40  ;;  %7626 = vmatpush2.bf16.msra.mxu1 %v10298_v41  ;;  %v2158_v38 = vld [vmem:[#allocation7 + $0x1d80] sm:$0xff]  ;;  %v10378_v40 = vcombine.low %v2038_v24, %v2042_v27  ;;  %v11100_v41 = vpack.c.bf16 %v11070_v45, %v11070_v45  ;;  %v11112_v45 = vpack.c.bf16 %v11096_v14, %v11096_v14 }
 0x1a0   :  { %7586 = vmatprep.subr.bf16.mxu0 %v10163_v43  ;;  %7627 = vmatprep.subr.bf16.mxu1 %v10291_v0  ;;  %v2162_v39 = vld [vmem:[#allocation7 + $0x1da0] sm:$0xff]  ;;  %v10506_v43 = vcombine.low %v2166_v28, %v2170_v30  ;;  %v10371_v0 = vcombine.high %v2030_v36, %v2034_v12  ;;  %v10370_v49 = vcombine.low %v2030_v36, %v2034_v12 }
 0x1a1   :  { %v10499_v47 = vcombine.high %v2158_v38, %v2162_v39  ;;  %v2022_v48 = vld [vmem:[#allocation7 + $0x1940] sm:$0xff]  ;;  %v10498_v11 = vcombine.low %v2158_v38, %v2162_v39 }
 0x1a2   :  { %v2014_v57 = vld [vmem:[#allocation7 + $0x1900] sm:$0xff] }
 0x1a3   :  { %7587 = vmatpush2.bf16.msra.mxu0 %v10162_v50  ;;  %7628 = vmatpush2.bf16.msra.mxu1 %v10290_v51  ;;  %v2026_v50 = vld [vmem:[#allocation7 + $0x1960] sm:$0xff] }
 0x1a4   :  { %7588 = vmatprep.subr.bf16.mxu0 %v10155_v52  ;;  %7629 = vmatprep.subr.bf16.mxu1 %v10283_v54  ;;  %v2150_v51 = vld [vmem:[#allocation7 + $0x1d40] sm:$0xff]  ;;  %v10363_v54 = vcombine.high %v2022_v48, %v2026_v50 }
 0x1a5   :  { %v2154_v52 = vld [vmem:[#allocation7 + $0x1d60] sm:$0xff] }
 0x1a6   :  { %v10491_v55 = vcombine.high %v2150_v51, %v2154_v52  ;;  %v2018_v58 = vld [vmem:[#allocation7 + $0x1920] sm:$0xff] }
 0x1a7   :  { %7589 = vmatpush2.bf16.msra.mxu0 %v10154_v60  ;;  %7630 = vmatpush2.bf16.msra.mxu1 %v10282_v61  ;;  %v2142_v14 = vld [vmem:[#allocation7 + $0x1d00] sm:$0xff]  ;;  %v10362_v60 = vcombine.low %v2022_v48, %v2026_v50  ;;  %v10490_v61 = vcombine.low %v2150_v51, %v2154_v52 }
 0x1a8   :  { %7590 = vmatprep.subr.bf16.mxu0 %v10147_v62  ;;  %7631 = vmatprep.subr.bf16.mxu1 %v10275_v33  ;;  %v2146_v59 = vld [vmem:[#allocation7 + $0x1d20] sm:$0xff]  ;;  %v10355_v62 = vcombine.high %v2014_v57, %v2018_v58 }
 0x1a9   :  { %v10483_v33 = vcombine.high %v2142_v14, %v2146_v59  ;;  %v2006_v1 = vld [vmem:[#allocation7 + $0x18c0] sm:$0xff] }
 0x1aa   :  { %v2010_v2 = vld [vmem:[#allocation7 + $0x18e0] sm:$0xff] }
 0x1ab   :  { %7591 = vmatpush2.bf16.msra.mxu0 %v10146_v6  ;;  %7632 = vmatpush2.bf16.msra.mxu1 %v10274_v7  ;;  %v2134_v29 = vld [vmem:[#allocation7 + $0x1cc0] sm:$0xff]  ;;  %v10354_v6 = vcombine.low %v2014_v57, %v2018_v58  ;;  %v10482_v7 = vcombine.low %v2142_v14, %v2146_v59 }
 0x1ac   :  { %7592 = vmatprep.subr.bf16.mxu0 %v10139_v9  ;;  %7633 = vmatprep.subr.bf16.mxu1 %v10267_v10  ;;  %v2138_v5 = vld [vmem:[#allocation7 + $0x1ce0] sm:$0xff]  ;;  %v10347_v9 = vcombine.high %v2006_v1, %v2010_v2 }
 0x1ad   :  { %v10475_v10 = vcombine.high %v2134_v29, %v2138_v5  ;;  %v1998_v13 = vld [vmem:[#allocation7 + $0x1880] sm:$0xff] }
 0x1ae   :  { %v2002_v15 = vld [vmem:[#allocation7 + $0x18a0] sm:$0xff] }
 0x1af   :  { %7593 = vmatpush2.bf16.msra.mxu0 %v10138_v18  ;;  %7634 = vmatpush2.bf16.msra.mxu1 %v10266_v19  ;;  %v2126_v16 = vld [vmem:[#allocation7 + $0x1c80] sm:$0xff]  ;;  %v10346_v18 = vcombine.low %v2006_v1, %v2010_v2  ;;  %v10474_v19 = vcombine.low %v2134_v29, %v2138_v5 }
 0x1b0   :  { %7594 = vmatprep.subr.bf16.mxu0 %v10131_v20  ;;  %7635 = vmatprep.subr.bf16.mxu1 %v10259_v23  ;;  %v2130_v17 = vld [vmem:[#allocation7 + $0x1ca0] sm:$0xff]  ;;  %v10339_v20 = vcombine.high %v1998_v13, %v2002_v15 }
 0x1b1   :  { %v10467_v23 = vcombine.high %v2126_v16, %v2130_v17  ;;  %v1990_v24 = vld [vmem:[#allocation7 + $0x1840] sm:$0xff] }
 0x1b2   :  { %v1994_v27 = vld [vmem:[#allocation7 + $0x1860] sm:$0xff] }
 0x1b3   :  { %7595 = vmatpush2.bf16.msra.mxu0 %v10130_v31  ;;  %7636 = vmatpush2.bf16.msra.mxu1 %v10258_v32  ;;  %v2118_v28 = vld [vmem:[#allocation7 + $0x1c40] sm:$0xff]  ;;  %v10338_v31 = vcombine.low %v1998_v13, %v2002_v15  ;;  %v10466_v32 = vcombine.low %v2126_v16, %v2130_v17 }
 0x1b4   :  { %7646 = vmatprep.subr.bf16.mxu0 %v10379_v34  ;;  %7687 = vmatprep.subr.bf16.mxu1 %v10507_v35  ;;  %v2122_v30 = vld [vmem:[#allocation7 + $0x1c60] sm:$0xff]  ;;  %v10331_v34 = vcombine.high %v1990_v24, %v1994_v27 }
 0x1b5   :  { %v10459_v35 = vcombine.high %v2118_v28, %v2122_v30  ;;  %v1982_v36 = vld [vmem:[#allocation7 + $0x1800] sm:$0xff] }
 0x1b6   :  { %7597 = vmatmul.mubr.bf16.vlgmr.msra.gmra.mxu0 %v11100_v41  ;;  %7638 = vmatmul.mubr.bf16.vlgmr.msra.gmra.mxu1 %v11104_v44  ;;  %v1986_v12 = vld [vmem:[#allocation7 + $0x1820] sm:$0xff] }
 0x1b7   :  { %7647 = vmatpush1.bf16.msra.mxu0 %v10378_v40  ;;  %7688 = vmatpush1.bf16.msra.mxu1 %v10506_v43  ;;  %v2110_v38 = vld [vmem:[#allocation7 + $0x1c00] sm:$0xff]  ;;  %v10330_v40 = vcombine.low %v1990_v24, %v1994_v27  ;;  %v10458_v43 = vcombine.low %v2118_v28, %v2122_v30 }
 0x1b8   :  { %7648 = vmatprep.subr.bf16.mxu0 %v10371_v0  ;;  %7678 = vmatprep.mubr.bf16.mxu0 %v11108_v46  ;;  %v2114_v39 = vld [vmem:[#allocation7 + $0x1c20] sm:$0xff]  ;;  %v10323_v0 = vcombine.high %v1982_v36, %v1986_v12 }
 0x1b9   :  { %7689 = vmatprep.subr.bf16.mxu1 %v10499_v47  ;;  %7719 = vmatprep.mubr.bf16.mxu1 %v11112_v45  ;;  %v10451_v47 = vcombine.high %v2110_v38, %v2114_v39  ;;  %v2102_v48 = vld [vmem:[#allocation7 + $0x1bc0] sm:$0xff] }
 0x1ba   :  { %v2106_v50 = vld [vmem:[#allocation7 + $0x1be0] sm:$0xff] }
 0x1bb   :  { %7649 = vmatpush1.bf16.msra.mxu0 %v10370_v49  ;;  %7690 = vmatpush1.bf16.msra.mxu1 %v10498_v11  ;;  %v2230_v51 = vld [vmem:[#allocation7 + $0x1fc0] sm:$0xff]  ;;  %v10322_v49 = vcombine.low %v1982_v36, %v1986_v12  ;;  %v10450_v11 = vcombine.low %v2110_v38, %v2114_v39 }
 0x1bc   :  { %7650 = vmatprep.subr.bf16.mxu0 %v10363_v54  ;;  %7691 = vmatprep.subr.bf16.mxu1 %v10491_v55  ;;  %v2234_v52 = vld [vmem:[#allocation7 + $0x1fe0] sm:$0xff]  ;;  %v10443_v54 = vcombine.high %v2102_v48, %v2106_v50 }
 0x1bd   :  { %v10571_v55 = vcombine.high %v2230_v51, %v2234_v52  ;;  %v2094_v57 = vld [vmem:[#allocation7 + $0x1b80] sm:$0xff] }
 0x1be   :  { %v2098_v58 = vld [vmem:[#allocation7 + $0x1ba0] sm:$0xff] }
 0x1bf   :  { %7651 = vmatpush1.bf16.msra.mxu0 %v10362_v60  ;;  %7692 = vmatpush1.bf16.msra.mxu1 %v10490_v61  ;;  %v2222_v14 = vld [vmem:[#allocation7 + $0x1f80] sm:$0xff]  ;;  %v10442_v60 = vcombine.low %v2102_v48, %v2106_v50  ;;  %v10570_v61 = vcombine.low %v2230_v51, %v2234_v52 }
 0x1c0   :  { %7652 = vmatprep.subr.bf16.mxu0 %v10355_v62  ;;  %7693 = vmatprep.subr.bf16.mxu1 %v10483_v33  ;;  %v2226_v59 = vld [vmem:[#allocation7 + $0x1fa0] sm:$0xff]  ;;  %v10435_v62 = vcombine.high %v2094_v57, %v2098_v58 }
 0x1c1   :  { %v10563_v33 = vcombine.high %v2222_v14, %v2226_v59  ;;  %v2086_v1 = vld [vmem:[#allocation7 + $0x1b40] sm:$0xff] }
 0x1c2   :  { %v2090_v2 = vld [vmem:[#allocation7 + $0x1b60] sm:$0xff] }
 0x1c3   :  { %7653 = vmatpush1.bf16.msra.mxu0 %v10354_v6  ;;  %7694 = vmatpush1.bf16.msra.mxu1 %v10482_v7  ;;  %v2214_v29 = vld [vmem:[#allocation7 + $0x1f40] sm:$0xff]  ;;  %v10434_v6 = vcombine.low %v2094_v57, %v2098_v58  ;;  %v10562_v7 = vcombine.low %v2222_v14, %v2226_v59 }
 0x1c4   :  { %7654 = vmatprep.subr.bf16.mxu0 %v10347_v9  ;;  %7695 = vmatprep.subr.bf16.mxu1 %v10475_v10  ;;  %v2218_v5 = vld [vmem:[#allocation7 + $0x1f60] sm:$0xff]  ;;  %v10427_v9 = vcombine.high %v2086_v1, %v2090_v2 }
 0x1c5   :  { %v10555_v10 = vcombine.high %v2214_v29, %v2218_v5  ;;  %v2078_v13 = vld [vmem:[#allocation7 + $0x1b00] sm:$0xff] }
 0x1c6   :  { %v2082_v15 = vld [vmem:[#allocation7 + $0x1b20] sm:$0xff] }
 0x1c7   :  { %7655 = vmatpush1.bf16.msra.mxu0 %v10346_v18  ;;  %7696 = vmatpush1.bf16.msra.mxu1 %v10474_v19  ;;  %v2206_v16 = vld [vmem:[#allocation7 + $0x1f00] sm:$0xff]  ;;  %v10426_v18 = vcombine.low %v2086_v1, %v2090_v2  ;;  %v10554_v19 = vcombine.low %v2214_v29, %v2218_v5  ;;  %v1271_v29 = vld [vmem:[#allocation7 + $0x1c8] sm:$0xff] }
 0x1c8   :  { %7656 = vmatprep.subr.bf16.mxu0 %v10339_v20  ;;  %7697 = vmatprep.subr.bf16.mxu1 %v10467_v23  ;;  %v2210_v17 = vld [vmem:[#allocation7 + $0x1f20] sm:$0xff]  ;;  %v10419_v20 = vcombine.high %v2078_v13, %v2082_v15  ;;  %v1275_v5 = vld [vmem:[#allocation7 + $0x1e8] sm:$0xff] }
 0x1c9   :  { %v10547_v23 = vcombine.high %v2206_v16, %v2210_v17  ;;  %v2070_v24 = vld [vmem:[#allocation7 + $0x1ac0] sm:$0xff] }
 0x1ca   :  { %v2074_v27 = vld [vmem:[#allocation7 + $0x1ae0] sm:$0xff] }
 0x1cb   :  { %7657 = vmatpush1.bf16.msra.mxu0 %v10338_v31  ;;  %7698 = vmatpush1.bf16.msra.mxu1 %v10466_v32  ;;  %v2198_v28 = vld [vmem:[#allocation7 + $0x1ec0] sm:$0xff]  ;;  %v10418_v31 = vcombine.low %v2078_v13, %v2082_v15  ;;  %v10546_v32 = vcombine.low %v2206_v16, %v2210_v17  ;;  %v9613_v15 = vcombine.high %v1271_v29, %v1275_v5 }
 0x1cc   :  { %7658 = vmatprep.subr.bf16.mxu0 %v10331_v34  ;;  %7699 = vmatprep.subr.bf16.mxu1 %v10459_v35  ;;  %v2202_v30 = vld [vmem:[#allocation7 + $0x1ee0] sm:$0xff]  ;;  %v10411_v34 = vcombine.high %v2070_v24, %v2074_v27 }
 0x1cd   :  { %v10539_v35 = vcombine.high %v2198_v28, %v2202_v30  ;;  %v2062_v36 = vld [vmem:[#allocation7 + $0x1a80] sm:$0xff] }
 0x1ce   :  { %v2066_v12 = vld [vmem:[#allocation7 + $0x1aa0] sm:$0xff] }
 0x1cf   :  { %7659 = vmatpush1.bf16.msra.mxu0 %v10330_v40  ;;  %7700 = vmatpush1.bf16.msra.mxu1 %v10458_v43  ;;  %v2190_v38 = vld [vmem:[#allocation7 + $0x1e80] sm:$0xff]  ;;  %v10410_v40 = vcombine.low %v2070_v24, %v2074_v27  ;;  %v10538_v43 = vcombine.low %v2198_v28, %v2202_v30  ;;  %v1391_v27 = vld [vmem:[#allocation7 + $0x588] sm:$0xff]  ;;  %v11124_v30 = vpack.c.bf16 %v11090_v4, %v11090_v4 }
 0x1d0   :  { %7660 = vmatprep.subr.bf16.mxu0 %v10323_v0  ;;  %7701 = vmatprep.subr.bf16.mxu1 %v10451_v47  ;;  %v2194_v39 = vld [vmem:[#allocation7 + $0x1ea0] sm:$0xff]  ;;  %v10403_v0 = vcombine.high %v2062_v36, %v2066_v12  ;;  %v1395_v28 = vld [vmem:[#allocation7 + $0x5a8] sm:$0xff] }
 0x1d1   :  { %v10531_v47 = vcombine.high %v2190_v38, %v2194_v39  ;;  %v2054_v48 = vld [vmem:[#allocation7 + $0x1a40] sm:$0xff] }
 0x1d2   :  { %v2058_v50 = vld [vmem:[#allocation7 + $0x1a60] sm:$0xff] }
 0x1d3   :  { %7661 = vmatpush1.bf16.msra.mxu0 %v10322_v49  ;;  %7702 = vmatpush1.bf16.msra.mxu1 %v10450_v11  ;;  %v2182_v51 = vld [vmem:[#allocation7 + $0x1e40] sm:$0xff]  ;;  %v10402_v49 = vcombine.low %v2062_v36, %v2066_v12  ;;  %v2240_v11 = vlaneseq  ;;  %v1255_v36 = vld [vmem:[#allocation7 + $0x148] sm:$0xff] }
 0x1d4   :  { %7662 = vmatprep.subr.bf16.mxu0 %v10443_v54  ;;  %7703 = vmatprep.subr.bf16.mxu1 %v10571_v55  ;;  %v2186_v52 = vld [vmem:[#allocation7 + $0x1e60] sm:$0xff]  ;;  %v10530_v54 = vcombine.low %v2190_v38, %v2194_v39  ;;  %v10395_v55 = vcombine.high %v2054_v48, %v2058_v50  ;;  %v1259_v12 = vld [vmem:[#allocation7 + $0x168] sm:$0xff]  ;;  %v9733_v39 = vcombine.high %v1391_v27, %v1395_v28 }
 0x1d5   :  { %v10523_v57 = vcombine.high %v2182_v51, %v2186_v52  ;;  %v2046_v58 = vld [vmem:[#allocation7 + $0x1a00] sm:$0xff] }
 0x1d6   :  { %v2050_v14 = vld [vmem:[#allocation7 + $0x1a20] sm:$0xff] }
 0x1d7   :  { %7663 = vmatpush2.bf16.msra.mxu0 %v10442_v60  ;;  %7704 = vmatpush2.bf16.msra.mxu1 %v10570_v61  ;;  %v2174_v59 = vld [vmem:[#allocation7 + $0x1e00] sm:$0xff]  ;;  %v10394_v61 = vcombine.low %v2054_v48, %v2058_v50  ;;  %v10387_v1 = vcombine.high %v2046_v58, %v2050_v14  ;;  %v9732_v48 = vcombine.low %v1391_v27, %v1395_v28 }
 0x1d8   :  { %7664 = vmatprep.subr.bf16.mxu0 %v10435_v62  ;;  %7705 = vmatprep.subr.bf16.mxu1 %v10563_v33  ;;  %v2178_v60 = vld [vmem:[#allocation7 + $0x1e20] sm:$0xff]  ;;  %v11118_v62 = vshrl.u32 %v2240_v11, 7  ;;  %v10522_v33 = vcombine.low %v2182_v51, %v2186_v52  ;;  %v9597_v50 = vcombine.high %v1255_v36, %v1259_v12 }
 0x1d9   :  { %v10515_v2 = vcombine.high %v2174_v59, %v2178_v60  ;;  %v10514_v13 = vcombine.low %v2174_v59, %v2178_v60  ;;  %v2238_v16 = vld [vmem:[#allocation8] sm:$0xff] }
 0x1db   :  { %7665 = vmatpush2.bf16.msra.mxu0 %v10434_v6  ;;  %7706 = vmatpush2.bf16.msra.mxu1 %v10562_v7  ;;  %v1399_v6 = vld [vmem:[#allocation7 + $0x5c8] sm:$0xff] }
 0x1dc   :  { %7666 = vmatprep.subr.bf16.mxu0 %v10427_v9  ;;  %7707 = vmatprep.subr.bf16.mxu1 %v10555_v10  ;;  %v1403_v7 = vld [vmem:[#allocation7 + $0x5e8] sm:$0xff]  ;;  %v10386_v9 = vcombine.low %v2046_v58, %v2050_v14  ;;  %v2242_v10 = vsub.s32 0, %v11118_v62 }
 0x1dd   :  { %v9741_v17 = vcombine.high %v1399_v6, %v1403_v7  ;;  %v1375_v58 = vld [vmem:[#allocation7 + $0x508] sm:$0xff] }
 0x1de   :  { %v2243_v24 = vrot.slane %v2238_v16, %v2242_v10  ;;  %v1379_v14 = vld [vmem:[#allocation7 + $0x528] sm:$0xff] }
 0x1df   :  { %7667 = vmatpush2.bf16.msra.mxu0 %v10426_v18  ;;  %7708 = vmatpush2.bf16.msra.mxu1 %v10554_v19  ;;  %v2246_v18 = vsub.s32 1, %v11118_v62  ;;  %v1263_v19 = vld [vmem:[#allocation7 + $0x188] sm:$0xff] }
 0x1e0   :  { %7668 = vmatprep.subr.bf16.mxu0 %v10419_v20  ;;  %7709 = vmatprep.subr.bf16.mxu1 %v10547_v23  ;;  %v1267_v20 = vld [vmem:[#allocation7 + $0x1a8] sm:$0xff]  ;;  %v9612_v23 = vcombine.low %v1271_v29, %v1275_v5  ;;  %v9717_v5 = vcombine.high %v1375_v58, %v1379_v14 }
 0x1e1   :  { %v1371_v10 = vld [vmem:[#allocation7 + $0x4e8] sm:$0xff] }
 0x1e3   :  { %7669 = vmatpush2.bf16.msra.mxu0 %v10418_v31  ;;  %7710 = vmatpush2.bf16.msra.mxu1 %v10546_v32  ;;  %v9740_v31 = vcombine.low %v1399_v6, %v1403_v7  ;;  %v11128_v32 = vpack.c.bf16 %v11092_v8, %v11092_v8  ;;  %v1239_v6 = vld [vmem:[#allocation7 + $0xc8] sm:$0xff] }
 0x1e4   :  { %7670 = vmatprep.subr.bf16.mxu0 %v10411_v34  ;;  %7711 = vmatprep.subr.bf16.mxu1 %v10539_v35  ;;  %v2247_v34 = vrot.slane %v2238_v16, %v2246_v18  ;;  %v9605_v35 = vcombine.high %v1263_v19, %v1267_v20  ;;  %v1243_v7 = vld [vmem:[#allocation7 + $0xe8] sm:$0xff] }
 0x1e5   :  { %v9581_v16 = vcombine.high %v1239_v6, %v1243_v7  ;;  %v1231_v18 = vld [vmem:[#allocation7 + $0x88] sm:$0xff] }
 0x1e7   :  { %7671 = vmatpush2.bf16.msra.mxu0 %v10410_v40  ;;  %7712 = vmatpush2.bf16.msra.mxu1 %v10538_v43  ;;  %v1383_v40 = vld [vmem:[#allocation7 + $0x548] sm:$0xff] }
 0x1e8   :  { %7672 = vmatprep.subr.bf16.mxu0 %v10403_v0  ;;  %7713 = vmatprep.subr.bf16.mxu1 %v10531_v47  ;;  %v1387_v43 = vld [vmem:[#allocation7 + $0x568] sm:$0xff]  ;;  %v9604_v47 = vcombine.low %v1263_v19, %v1267_v20 }
 0x1e9   :  { %v9725_v11 = vcombine.high %v1383_v40, %v1387_v43  ;;  %v1235_v19 = vld [vmem:[#allocation7 + $0xa8] sm:$0xff] }
 0x1ea   :  { %v1359_v20 = vld [vmem:[#allocation7 + $0x488] sm:$0xff]  ;;  %v9573_v28 = vcombine.high %v1231_v18, %v1235_v19 }
 0x1eb   :  { %7673 = vmatpush2.bf16.msra.mxu0 %v10402_v49  ;;  %7714 = vmatpush2.bf16.msra.mxu1 %v10530_v54  ;;  %v1247_v54 = vld [vmem:[#allocation7 + $0x108] sm:$0xff] }
 0x1ec   :  { %7674 = vmatprep.subr.bf16.mxu0 %v10395_v55  ;;  %7715 = vmatprep.subr.bf16.mxu1 %v10523_v57  ;;  %v1251_v55 = vld [vmem:[#allocation7 + $0x128] sm:$0xff] }
 0x1ef   :  { %7675 = vmatpush2.bf16.msra.mxu0 %v10394_v61  ;;  %7716 = vmatpush2.bf16.msra.mxu1 %v10522_v33  ;;  %v9596_v61 = vcombine.low %v1255_v36, %v1259_v12  ;;  %v1351_v36 = vld [vmem:[#allocation7 + $0x448] sm:$0xff] }
 0x1f0   :  { %7676 = vmatprep.subr.bf16.mxu0 %v10387_v1  ;;  %7717 = vmatprep.subr.bf16.mxu1 %v10515_v2  ;;  %v9724_v1 = vcombine.low %v1383_v40, %v1387_v43  ;;  %v9589_v2 = vcombine.high %v1247_v54, %v1251_v55  ;;  %v1355_v12 = vld [vmem:[#allocation7 + $0x468] sm:$0xff] }
 0x1f1   :  { %v9693_v43 = vcombine.high %v1351_v36, %v1355_v12 }
 0x1f3   :  { %7677 = vmatpush2.bf16.msra.mxu0 %v10386_v9  ;;  %7718 = vmatpush2.bf16.msra.mxu1 %v10514_v13  ;;  %v1367_v9 = vld [vmem:[#allocation7 + $0x4c8] sm:$0xff]  ;;  %v9588_v13 = vcombine.low %v1247_v54, %v1251_v55 }
 0x1f4   :  { %7728 = vmatprep.subr.bf16.mxu0 %v9613_v15  ;;  %7769 = vmatprep.subr.bf16.mxu1 %v9741_v17  ;;  %v9716_v15 = vcombine.low %v1375_v58, %v1379_v14  ;;  %v9709_v17 = vcombine.high %v1367_v9, %v1371_v10  ;;  %v9708_v27 = vcombine.low %v1367_v9, %v1371_v10  ;;  %v1339_v54 = vld [vmem:[#allocation7 + $0x3e8] sm:$0xff] }
 0x1f5   :  { %v1463_v55 = vld [vmem:[#allocation7 + $0x7c8] sm:$0xff] }
 0x1f6   :  { %7679 = vmatmul.mubr.bf16.vlgmr.msra.gmra.mxu0 %v11124_v30  ;;  %v7434_v38 = vpop.f32.mrf.mxu0  ;;  %7720 = vmatmul.mubr.bf16.vlgmr.msra.gmra.mxu1 %v11128_v32  ;;  %v7475_v0 = vpop.f32.mrf.mxu1  ;;  %v1319_v10 = vld [vmem:[#allocation7 + $0x348] sm:$0xff] }
 0x1f7   :  { %v7435_v4 = vadd.f32 %v7434_v38, %v2243_v24  ;;  %7729 = vmatpush1.bf16.msra.mxu0 %v9612_v23  ;;  %7760 = vmatprep.mubr.bf16.mxu0 %v11050_v22  ;;  %v1363_v23 = vld [vmem:[#allocation7 + $0x4a8] sm:$0xff]  ;;  %v9580_v24 = vcombine.low %v1239_v6, %v1243_v7  ;;  %v9572_v38 = vcombine.low %v1231_v18, %v1235_v19 }
 0x1f8   :  { %7770 = vmatpush1.bf16.msra.mxu1 %v9740_v31  ;;  %v7436_v8 = vpop.f32.mrf.mxu0  ;;  %7801 = vmatprep.mubr.bf16.mxu1 %v11054_v26  ;;  %v7477_v49 = vpop.f32.mrf.mxu1  ;;  %v9701_v31 = vcombine.high %v1359_v20, %v1363_v23 }
 0x1f9   :  { %v11133_v51 = vadd.f32 %v7475_v0, %v7435_v4  ;;  %v7437_v52 = vadd.f32 %v7436_v8, %v2247_v34  ;;  %7730 = vmatprep.subr.bf16.mxu0 %v9605_v35  ;;  %7771 = vmatprep.subr.bf16.mxu1 %v9733_v39  ;;  %v1223_v34 = vld [vmem:[#allocation7 + $0x48] sm:$0xff]  ;;  %v9700_v39 = vcombine.low %v1359_v20, %v1363_v23 }
 0x1fa   :  { %v7438_v57 = vpop.f32.mrf.mxu0  ;;  %v7479_v60 = vpop.f32.mrf.mxu1  ;;  %v1227_v35 = vld [vmem:[#allocation7 + $0x68] sm:$0xff] }
 0x1fb   :  { %v11136_v59 = vadd.f32 %v7477_v49, %v7437_v52  ;;  %7731 = vmatpush1.bf16.msra.mxu0 %v9604_v47  ;;  %v9565_v40 = vcombine.high %v1223_v34, %v1227_v35  ;;  %v1215_v4 = vld [vmem:[#allocation7 + $0x8] sm:$0xff] }
 0x1fc   :  { %7772 = vmatpush1.bf16.msra.mxu1 %v9732_v48  ;;  %v7439_v33 = vpop.f32.mrf.mxu0  ;;  %7732 = vmatprep.subr.bf16.mxu0 %v9597_v50  ;;  %v7480_v29 = vpop.f32.mrf.mxu1  ;;  %v1219_v0 = vld [vmem:[#allocation7 + $0x28] sm:$0xff]  ;;  %v9564_v48 = vcombine.low %v1223_v34, %v1227_v35  ;;  %v9692_v50 = vcombine.low %v1351_v36, %v1355_v12 }
 0x1fd   :  { %7773 = vmatprep.subr.bf16.mxu1 %v9725_v11  ;;  %v1343_v47 = vld [vmem:[#allocation7 + $0x408] sm:$0xff]  ;;  %v9557_v52 = vcombine.high %v1215_v4, %v1219_v0  ;;  %v9556_v58 = vcombine.low %v1215_v4, %v1219_v0 }
 0x1fe   :  { %v1347_v8 = vld [vmem:[#allocation7 + $0x428] sm:$0xff] }
 0x1ff   :  { %7733 = vmatpush1.bf16.msra.mxu0 %v9596_v61  ;;  %v9685_v49 = vcombine.high %v1343_v47, %v1347_v8  ;;  %v1335_v11 = vld [vmem:[#allocation7 + $0x3c8] sm:$0xff]  ;;  %v9684_v14 = vcombine.low %v1343_v47, %v1347_v8 }
 0x200   :  { %7774 = vmatpush1.bf16.msra.mxu1 %v9724_v1  ;;  %7734 = vmatprep.subr.bf16.mxu0 %v9589_v2  ;;  %v1467_v57 = vld [vmem:[#allocation7 + $0x7e8] sm:$0xff]  ;;  %v9677_v60 = vcombine.high %v1335_v11, %v1339_v54 }
 0x201   :  { %7775 = vmatprep.subr.bf16.mxu1 %v9717_v5  ;;  %v9805_v61 = vcombine.high %v1463_v55, %v1467_v57  ;;  %v1327_v33 = vld [vmem:[#allocation7 + $0x388] sm:$0xff]  ;;  %v9676_v5 = vcombine.low %v1335_v11, %v1339_v54  ;;  %v9804_v6 = vcombine.low %v1463_v55, %v1467_v57 }
 0x202   :  { %v1331_v1 = vld [vmem:[#allocation7 + $0x3a8] sm:$0xff] }
 0x203   :  { %7735 = vmatpush1.bf16.msra.mxu0 %v9588_v13  ;;  %v1455_v2 = vld [vmem:[#allocation7 + $0x788] sm:$0xff]  ;;  %v9669_v7 = vcombine.high %v1327_v33, %v1331_v1 }
 0x204   :  { %7776 = vmatpush1.bf16.msra.mxu1 %v9716_v15  ;;  %7736 = vmatprep.subr.bf16.mxu0 %v9581_v16  ;;  %v1459_v29 = vld [vmem:[#allocation7 + $0x7a8] sm:$0xff] }
 0x205   :  { %7777 = vmatprep.subr.bf16.mxu1 %v9709_v17  ;;  %v9797_v9 = vcombine.high %v1455_v2, %v1459_v29  ;;  %v1323_v13 = vld [vmem:[#allocation7 + $0x368] sm:$0xff]  ;;  %v9668_v17 = vcombine.low %v1327_v33, %v1331_v1  ;;  %v9796_v18 = vcombine.low %v1455_v2, %v1459_v29 }
 0x206   :  { %v1447_v15 = vld [vmem:[#allocation7 + $0x748] sm:$0xff]  ;;  %v9661_v19 = vcombine.high %v1319_v10, %v1323_v13 }
 0x207   :  { %7737 = vmatpush1.bf16.msra.mxu0 %v9580_v24  ;;  %v1451_v16 = vld [vmem:[#allocation7 + $0x768] sm:$0xff] }
 0x208   :  { %7778 = vmatpush1.bf16.msra.mxu1 %v9708_v27  ;;  %7738 = vmatprep.subr.bf16.mxu0 %v9573_v28  ;;  %v9789_v20 = vcombine.high %v1447_v15, %v1451_v16  ;;  %v1311_v23 = vld [vmem:[#allocation7 + $0x308] sm:$0xff]  ;;  %v9788_v34 = vcombine.low %v1447_v15, %v1451_v16 }
 0x209   :  { %7779 = vmatprep.subr.bf16.mxu1 %v9701_v31  ;;  %v1315_v24 = vld [vmem:[#allocation7 + $0x328] sm:$0xff]  ;;  %v9660_v31 = vcombine.low %v1319_v10, %v1323_v13 }
 0x20a   :  { %v1439_v27 = vld [vmem:[#allocation7 + $0x708] sm:$0xff]  ;;  %v9653_v35 = vcombine.high %v1311_v23, %v1315_v24 }
 0x20b   :  { %7739 = vmatpush1.bf16.msra.mxu0 %v9572_v38  ;;  %v1443_v28 = vld [vmem:[#allocation7 + $0x728] sm:$0xff] }
 0x20c   :  { %7780 = vmatpush1.bf16.msra.mxu1 %v9700_v39  ;;  %7740 = vmatprep.subr.bf16.mxu0 %v9565_v40  ;;  %v9781_v36 = vcombine.high %v1439_v27, %v1443_v28  ;;  %v1303_v12 = vld [vmem:[#allocation7 + $0x2c8] sm:$0xff]  ;;  %v9780_v4 = vcombine.low %v1439_v27, %v1443_v28 }
 0x20d   :  { %7781 = vmatprep.subr.bf16.mxu1 %v9693_v43  ;;  %v1307_v38 = vld [vmem:[#allocation7 + $0x2e8] sm:$0xff]  ;;  %v9652_v43 = vcombine.low %v1311_v23, %v1315_v24 }
 0x20e   :  { %v1431_v39 = vld [vmem:[#allocation7 + $0x6c8] sm:$0xff]  ;;  %v9645_v0 = vcombine.high %v1303_v12, %v1307_v38 }
 0x20f   :  { %7741 = vmatpush1.bf16.msra.mxu0 %v9564_v48  ;;  %v1435_v40 = vld [vmem:[#allocation7 + $0x6e8] sm:$0xff] }
 0x210   :  { %7782 = vmatpush1.bf16.msra.mxu1 %v9692_v50  ;;  %7742 = vmatprep.subr.bf16.mxu0 %v9557_v52  ;;  %v9773_v47 = vcombine.high %v1431_v39, %v1435_v40  ;;  %v1295_v8 = vld [vmem:[#allocation7 + $0x288] sm:$0xff]  ;;  %v9772_v11 = vcombine.low %v1431_v39, %v1435_v40 }
 0x211   :  { %7783 = vmatprep.subr.bf16.mxu1 %v9685_v49  ;;  %v1299_v48 = vld [vmem:[#allocation7 + $0x2a8] sm:$0xff]  ;;  %v9644_v49 = vcombine.low %v1303_v12, %v1307_v38 }
 0x212   :  { %v1423_v50 = vld [vmem:[#allocation7 + $0x688] sm:$0xff]  ;;  %v9637_v54 = vcombine.high %v1295_v8, %v1299_v48 }
 0x213   :  { %7743 = vmatpush1.bf16.msra.mxu0 %v9556_v58  ;;  %v1427_v52 = vld [vmem:[#allocation7 + $0x6a8] sm:$0xff] }
 0x214   :  { %7784 = vmatpush1.bf16.msra.mxu1 %v9684_v14  ;;  %7744 = vmatprep.subr.bf16.mxu0 %v9677_v60  ;;  %v9765_v55 = vcombine.high %v1423_v50, %v1427_v52  ;;  %v1287_v57 = vld [vmem:[#allocation7 + $0x248] sm:$0xff]  ;;  %v9764_v33 = vcombine.low %v1423_v50, %v1427_v52 }
 0x215   :  { %7785 = vmatprep.subr.bf16.mxu1 %v9805_v61  ;;  %v1291_v58 = vld [vmem:[#allocation7 + $0x268] sm:$0xff]  ;;  %v9636_v61 = vcombine.low %v1295_v8, %v1299_v48 }
 0x216   :  { %v1415_v14 = vld [vmem:[#allocation7 + $0x648] sm:$0xff]  ;;  %v9629_v1 = vcombine.high %v1287_v57, %v1291_v58 }
 0x217   :  { %7745 = vmatpush2.bf16.msra.mxu0 %v9676_v5  ;;  %v1419_v60 = vld [vmem:[#allocation7 + $0x668] sm:$0xff] }
 0x218   :  { %7786 = vmatpush2.bf16.msra.mxu1 %v9804_v6  ;;  %7746 = vmatprep.subr.bf16.mxu0 %v9669_v7  ;;  %v9757_v2 = vcombine.high %v1415_v14, %v1419_v60  ;;  %v1279_v29 = vld [vmem:[#allocation7 + $0x208] sm:$0xff]  ;;  %v9756_v10 = vcombine.low %v1415_v14, %v1419_v60 }
 0x219   :  { %7787 = vmatprep.subr.bf16.mxu1 %v9797_v9  ;;  %v1283_v5 = vld [vmem:[#allocation7 + $0x228] sm:$0xff]  ;;  %v9628_v9 = vcombine.low %v1287_v57, %v1291_v58 }
 0x21a   :  { %v1407_v6 = vld [vmem:[#allocation7 + $0x608] sm:$0xff]  ;;  %v9621_v13 = vcombine.high %v1279_v29, %v1283_v5 }
 0x21b   :  { %7747 = vmatpush2.bf16.msra.mxu0 %v9668_v17  ;;  %v1411_v7 = vld [vmem:[#allocation7 + $0x628] sm:$0xff] }
 0x21c   :  { %7788 = vmatpush2.bf16.msra.mxu1 %v9796_v18  ;;  %7748 = vmatprep.subr.bf16.mxu0 %v9661_v19  ;;  %v9749_v15 = vcombine.high %v1407_v6, %v1411_v7  ;;  %v1527_v16 = vld [vmem:[#allocation7 + $0x9c8] sm:$0xff]  ;;  %v9748_v23 = vcombine.low %v1407_v6, %v1411_v7 }
 0x21d   :  { %7789 = vmatprep.subr.bf16.mxu1 %v9789_v20  ;;  %v1531_v17 = vld [vmem:[#allocation7 + $0x9e8] sm:$0xff]  ;;  %v9620_v20 = vcombine.low %v1279_v29, %v1283_v5 }
 0x21e   :  { %v1655_v18 = vld [vmem:[#allocation7 + $0xdc8] sm:$0xff]  ;;  %v9869_v24 = vcombine.high %v1527_v16, %v1531_v17 }
 0x21f   :  { %7749 = vmatpush2.bf16.msra.mxu0 %v9660_v31  ;;  %v1659_v19 = vld [vmem:[#allocation7 + $0xde8] sm:$0xff] }
 0x220   :  { %7790 = vmatpush2.bf16.msra.mxu1 %v9788_v34  ;;  %7750 = vmatprep.subr.bf16.mxu0 %v9653_v35  ;;  %v9997_v27 = vcombine.high %v1655_v18, %v1659_v19  ;;  %v1519_v28 = vld [vmem:[#allocation7 + $0x988] sm:$0xff]  ;;  %v9868_v34 = vcombine.low %v1527_v16, %v1531_v17  ;;  %v9996_v12 = vcombine.low %v1655_v18, %v1659_v19 }
 0x221   :  { %7791 = vmatprep.subr.bf16.mxu1 %v9781_v36  ;;  %v1523_v31 = vld [vmem:[#allocation7 + $0x9a8] sm:$0xff] }
 0x222   :  { %v1647_v35 = vld [vmem:[#allocation7 + $0xd88] sm:$0xff]  ;;  %v9861_v38 = vcombine.high %v1519_v28, %v1523_v31  ;;  %v9860_v50 = vcombine.low %v1519_v28, %v1523_v31 }
 0x223   :  { %7751 = vmatpush2.bf16.msra.mxu0 %v9652_v43  ;;  %v1651_v36 = vld [vmem:[#allocation7 + $0xda8] sm:$0xff] }
 0x224   :  { %7792 = vmatpush2.bf16.msra.mxu1 %v9780_v4  ;;  %7752 = vmatprep.subr.bf16.mxu0 %v9645_v0  ;;  %v1511_v39 = vld [vmem:[#allocation7 + $0x948] sm:$0xff]  ;;  %v9989_v4 = vcombine.high %v1647_v35, %v1651_v36 }
 0x225   :  { %7793 = vmatprep.subr.bf16.mxu1 %v9773_v47  ;;  %v1515_v40 = vld [vmem:[#allocation7 + $0x968] sm:$0xff] }
 0x226   :  { %v1639_v0 = vld [vmem:[#allocation7 + $0xd48] sm:$0xff]  ;;  %v9852_v29 = vcombine.low %v1511_v39, %v1515_v40 }
 0x227   :  { %7753 = vmatpush2.bf16.msra.mxu0 %v9644_v49  ;;  %v1643_v47 = vld [vmem:[#allocation7 + $0xd68] sm:$0xff]  ;;  %v9988_v49 = vcombine.low %v1647_v35, %v1651_v36 }
 0x228   :  { %7794 = vmatpush2.bf16.msra.mxu1 %v9772_v11  ;;  %7754 = vmatprep.subr.bf16.mxu0 %v9637_v54  ;;  %v9853_v11 = vcombine.high %v1511_v39, %v1515_v40  ;;  %v1503_v58 = vld [vmem:[#allocation7 + $0x908] sm:$0xff]  ;;  %v9980_v6 = vcombine.low %v1639_v0, %v1643_v47 }
 0x229   :  { %7795 = vmatprep.subr.bf16.mxu1 %v9765_v55  ;;  %v1507_v14 = vld [vmem:[#allocation7 + $0x928] sm:$0xff] }
 0x22a   :  { %v9845_v7 = vcombine.high %v1503_v58, %v1507_v14  ;;  %v1627_v16 = vld [vmem:[#allocation7 + $0xce8] sm:$0xff]  ;;  %v9844_v17 = vcombine.low %v1503_v58, %v1507_v14 }
 0x22b   :  { %7755 = vmatpush2.bf16.msra.mxu0 %v9636_v61  ;;  %v1631_v61 = vld [vmem:[#allocation7 + $0xd08] sm:$0xff] }
 0x22c   :  { %7796 = vmatpush2.bf16.msra.mxu1 %v9764_v33  ;;  %7756 = vmatprep.subr.bf16.mxu0 %v9629_v1  ;;  %v1635_v33 = vld [vmem:[#allocation7 + $0xd28] sm:$0xff] }
 0x22d   :  { %7797 = vmatprep.subr.bf16.mxu1 %v9757_v2  ;;  %v9972_v18 = vcombine.low %v1631_v61, %v1635_v33  ;;  %v1619_v28 = vld [vmem:[#allocation7 + $0xca8] sm:$0xff] }
 0x22e   :  { %v1607_v39 = vld [vmem:[#allocation7 + $0xc48] sm:$0xff] }
 0x22f   :  { %7757 = vmatpush2.bf16.msra.mxu0 %v9628_v9  ;;  %v9973_v9 = vcombine.high %v1631_v61, %v1635_v33  ;;  %v1611_v40 = vld [vmem:[#allocation7 + $0xc68] sm:$0xff] }
 0x230   :  { %7798 = vmatpush2.bf16.msra.mxu1 %v9756_v10  ;;  %7758 = vmatprep.subr.bf16.mxu0 %v9621_v13  ;;  %v1495_v10 = vld [vmem:[#allocation7 + $0x8c8] sm:$0xff] }
 0x231   :  { %7799 = vmatprep.subr.bf16.mxu1 %v9749_v15  ;;  %v1499_v13 = vld [vmem:[#allocation7 + $0x8e8] sm:$0xff] }
 0x232   :  { %v1623_v15 = vld [vmem:[#allocation7 + $0xcc8] sm:$0xff]  ;;  %v9837_v19 = vcombine.high %v1495_v10, %v1499_v13  ;;  %v9836_v31 = vcombine.low %v1495_v10, %v1499_v13 }
 0x233   :  { %7759 = vmatpush2.bf16.msra.mxu0 %v9620_v20  ;;  %v9965_v20 = vcombine.high %v1623_v15, %v1627_v16  ;;  %v1595_v58 = vld [vmem:[#allocation7 + $0xbe8] sm:$0xff] }
 0x234   :  { %7800 = vmatpush2.bf16.msra.mxu1 %v9748_v23  ;;  %7810 = vmatprep.subr.bf16.mxu0 %v9869_v24  ;;  %v1487_v23 = vld [vmem:[#allocation7 + $0x888] sm:$0xff] }
 0x235   :  { %7851 = vmatprep.subr.bf16.mxu1 %v9997_v27  ;;  %v1491_v24 = vld [vmem:[#allocation7 + $0x8a8] sm:$0xff] }
 0x236   :  { %v7516_v43 = vpop.f32.mrf.mxu0  ;;  %7761 = vmatmul.mubr.bf16.vlgmr.msra.gmra.mxu0 %v11052_v25  ;;  %v7557_v48 = vpop.f32.mrf.mxu1  ;;  %v1615_v27 = vld [vmem:[#allocation7 + $0xc88] sm:$0xff]  ;;  %v9829_v35 = vcombine.high %v1487_v23, %v1491_v24 }
 0x237   :  { %v7517_v8 = vadd.f32 %v7516_v43, %v11133_v51  ;;  %7802 = vmatmul.mubr.bf16.vlgmr.msra.gmra.mxu1 %v11048_v21  ;;  %7811 = vmatpush1.bf16.msra.mxu0 %v9868_v34  ;;  %v9981_v51 = vcombine.high %v1639_v0, %v1643_v47  ;;  %v9964_v34 = vcombine.low %v1623_v15, %v1627_v16  ;;  %v1719_v14 = vld [vmem:[#allocation7 + $0xfc8] sm:$0xff] }
 0x238   :  { %7842 = vmatprep.mubr.bf16.mxu0 %v11064_v37  ;;  %7852 = vmatpush1.bf16.msra.mxu1 %v9996_v12  ;;  %v7518_v52 = vpop.f32.mrf.mxu0  ;;  %v7559_v57 = vpop.f32.mrf.mxu1  ;;  %v9957_v36 = vcombine.high %v1615_v27, %v1619_v28  ;;  %v1479_v12 = vld [vmem:[#allocation7 + $0x848] sm:$0xff]  ;;  %v9828_v43 = vcombine.low %v1487_v23, %v1491_v24  ;;  %v9949_v47 = vcombine.high %v1607_v39, %v1611_v40 }
 0x239   :  { %v11142_v54 = vadd.f32 %v7557_v48, %v7517_v8  ;;  %7883 = vmatprep.mubr.bf16.mxu1 %v11066_v42  ;;  %v7519_v55 = vadd.f32 %v7518_v52, %v11136_v59  ;;  %7812 = vmatprep.subr.bf16.mxu0 %v9861_v38  ;;  %v1483_v38 = vld [vmem:[#allocation7 + $0x868] sm:$0xff] }
 0x23a   :  { %v7520_v60 = vpop.f32.mrf.mxu0  ;;  %7853 = vmatprep.subr.bf16.mxu1 %v9989_v4  ;;  %v7561_v2 = vpop.f32.mrf.mxu1  ;;  %v9956_v4 = vcombine.low %v1615_v27, %v1619_v28  ;;  %v9821_v0 = vcombine.high %v1479_v12, %v1483_v38  ;;  %v1471_v8 = vld [vmem:[#allocation7 + $0x808] sm:$0xff] }
 0x23b   :  { %v11146_v1 = vadd.f32 %v7559_v57, %v7519_v55  ;;  %7813 = vmatpush1.bf16.msra.mxu0 %v9860_v50  ;;  %v1475_v48 = vld [vmem:[#allocation7 + $0x828] sm:$0xff] }
 0x23c   :  { %7854 = vmatpush1.bf16.msra.mxu1 %v9988_v49  ;;  %v7521_v5 = vpop.f32.mrf.mxu0  ;;  %7814 = vmatprep.subr.bf16.mxu0 %v9853_v11  ;;  %v7562_v59 = vpop.f32.mrf.mxu1  ;;  %v1599_v50 = vld [vmem:[#allocation7 + $0xc08] sm:$0xff]  ;;  %v9820_v49 = vcombine.low %v1479_v12, %v1483_v38  ;;  %v9948_v11 = vcombine.low %v1607_v39, %v1611_v40  ;;  %v9813_v55 = vcombine.high %v1471_v8, %v1475_v48 }
 0x23d   :  { %7855 = vmatprep.subr.bf16.mxu1 %v9981_v51  ;;  %v1603_v52 = vld [vmem:[#allocation7 + $0xc28] sm:$0xff]  ;;  %v9812_v61 = vcombine.low %v1471_v8, %v1475_v48 }
 0x23e   :  { %v9941_v57 = vcombine.high %v1599_v50, %v1603_v52  ;;  %v1591_v51 = vld [vmem:[#allocation7 + $0xbc8] sm:$0xff]  ;;  %v9940_v33 = vcombine.low %v1599_v50, %v1603_v52 }
 0x23f   :  { %7815 = vmatpush1.bf16.msra.mxu0 %v9852_v29  ;;  %v1723_v60 = vld [vmem:[#allocation7 + $0xfe8] sm:$0xff]  ;;  %v9933_v2 = vcombine.high %v1591_v51, %v1595_v58 }
 0x240   :  { %7856 = vmatpush1.bf16.msra.mxu1 %v9980_v6  ;;  %7816 = vmatprep.subr.bf16.mxu0 %v9845_v7  ;;  %v10061_v29 = vcombine.high %v1719_v14, %v1723_v60  ;;  %v1583_v5 = vld [vmem:[#allocation7 + $0xb88] sm:$0xff]  ;;  %v10060_v10 = vcombine.low %v1719_v14, %v1723_v60 }
 0x241   :  { %7857 = vmatprep.subr.bf16.mxu1 %v9973_v9  ;;  %v1587_v6 = vld [vmem:[#allocation7 + $0xba8] sm:$0xff]  ;;  %v9932_v9 = vcombine.low %v1591_v51, %v1595_v58 }
 0x242   :  { %v1711_v7 = vld [vmem:[#allocation7 + $0xf88] sm:$0xff]  ;;  %v9925_v13 = vcombine.high %v1583_v5, %v1587_v6 }
 0x243   :  { %7817 = vmatpush1.bf16.msra.mxu0 %v9844_v17  ;;  %v1715_v59 = vld [vmem:[#allocation7 + $0xfa8] sm:$0xff] }
 0x244   :  { %7858 = vmatpush1.bf16.msra.mxu1 %v9972_v18  ;;  %7818 = vmatprep.subr.bf16.mxu0 %v9837_v19  ;;  %v10053_v15 = vcombine.high %v1711_v7, %v1715_v59  ;;  %v1575_v16 = vld [vmem:[#allocation7 + $0xb48] sm:$0xff]  ;;  %v10052_v23 = vcombine.low %v1711_v7, %v1715_v59 }
 0x245   :  { %7859 = vmatprep.subr.bf16.mxu1 %v9965_v20  ;;  %v1579_v17 = vld [vmem:[#allocation7 + $0xb68] sm:$0xff]  ;;  %v9924_v20 = vcombine.low %v1583_v5, %v1587_v6 }
 0x246   :  { %v1703_v18 = vld [vmem:[#allocation7 + $0xf48] sm:$0xff]  ;;  %v9917_v24 = vcombine.high %v1575_v16, %v1579_v17 }
 0x247   :  { %7819 = vmatpush1.bf16.msra.mxu0 %v9836_v31  ;;  %v1707_v19 = vld [vmem:[#allocation7 + $0xf68] sm:$0xff] }
 0x248   :  { %7860 = vmatpush1.bf16.msra.mxu1 %v9964_v34  ;;  %7820 = vmatprep.subr.bf16.mxu0 %v9829_v35  ;;  %v10045_v27 = vcombine.high %v1703_v18, %v1707_v19  ;;  %v1567_v28 = vld [vmem:[#allocation7 + $0xb08] sm:$0xff]  ;;  %v10044_v12 = vcombine.low %v1703_v18, %v1707_v19 }
 0x249   :  { %7861 = vmatprep.subr.bf16.mxu1 %v9957_v36  ;;  %v1571_v31 = vld [vmem:[#allocation7 + $0xb28] sm:$0xff]  ;;  %v9916_v36 = vcombine.low %v1575_v16, %v1579_v17 }
 0x24a   :  { %v1695_v34 = vld [vmem:[#allocation7 + $0xf08] sm:$0xff]  ;;  %v9909_v38 = vcombine.high %v1567_v28, %v1571_v31 }
 0x24b   :  { %7821 = vmatpush1.bf16.msra.mxu0 %v9828_v43  ;;  %v1699_v35 = vld [vmem:[#allocation7 + $0xf28] sm:$0xff] }
 0x24c   :  { %7862 = vmatpush1.bf16.msra.mxu1 %v9956_v4  ;;  %7822 = vmatprep.subr.bf16.mxu0 %v9821_v0  ;;  %v10037_v39 = vcombine.high %v1695_v34, %v1699_v35  ;;  %v1559_v40 = vld [vmem:[#allocation7 + $0xac8] sm:$0xff]  ;;  %v10036_v8 = vcombine.low %v1695_v34, %v1699_v35 }
 0x24d   :  { %7863 = vmatprep.subr.bf16.mxu1 %v9949_v47  ;;  %v1563_v43 = vld [vmem:[#allocation7 + $0xae8] sm:$0xff]  ;;  %v9908_v47 = vcombine.low %v1567_v28, %v1571_v31 }
 0x24e   :  { %v1687_v4 = vld [vmem:[#allocation7 + $0xec8] sm:$0xff]  ;;  %v9901_v48 = vcombine.high %v1559_v40, %v1563_v43 }
 0x24f   :  { %7823 = vmatpush1.bf16.msra.mxu0 %v9820_v49  ;;  %v1691_v0 = vld [vmem:[#allocation7 + $0xee8] sm:$0xff] }
 0x250   :  { %7864 = vmatpush1.bf16.msra.mxu1 %v9948_v11  ;;  %7824 = vmatprep.subr.bf16.mxu0 %v9813_v55  ;;  %v10029_v50 = vcombine.high %v1687_v4, %v1691_v0  ;;  %v1551_v52 = vld [vmem:[#allocation7 + $0xa88] sm:$0xff]  ;;  %v10028_v51 = vcombine.low %v1687_v4, %v1691_v0 }
 0x251   :  { %7865 = vmatprep.subr.bf16.mxu1 %v9941_v57  ;;  %v1555_v49 = vld [vmem:[#allocation7 + $0xaa8] sm:$0xff]  ;;  %v9900_v57 = vcombine.low %v1559_v40, %v1563_v43 }
 0x252   :  { %v1679_v11 = vld [vmem:[#allocation7 + $0xe88] sm:$0xff]  ;;  %v9893_v58 = vcombine.high %v1551_v52, %v1555_v49 }
 0x253   :  { %7825 = vmatpush1.bf16.msra.mxu0 %v9812_v61  ;;  %v1683_v55 = vld [vmem:[#allocation7 + $0xea8] sm:$0xff] }
 0x254   :  { %7866 = vmatpush1.bf16.msra.mxu1 %v9940_v33  ;;  %7826 = vmatprep.subr.bf16.mxu0 %v9933_v2  ;;  %v10021_v14 = vcombine.high %v1679_v11, %v1683_v55  ;;  %v1543_v60 = vld [vmem:[#allocation7 + $0xa48] sm:$0xff]  ;;  %v10020_v5 = vcombine.low %v1679_v11, %v1683_v55 }
 0x255   :  { %7867 = vmatprep.subr.bf16.mxu1 %v10061_v29  ;;  %v1547_v61 = vld [vmem:[#allocation7 + $0xa68] sm:$0xff]  ;;  %v9892_v29 = vcombine.low %v1551_v52, %v1555_v49 }
 0x256   :  { %v1671_v33 = vld [vmem:[#allocation7 + $0xe48] sm:$0xff]  ;;  %v9885_v6 = vcombine.high %v1543_v60, %v1547_v61 }
 0x257   :  { %7827 = vmatpush2.bf16.msra.mxu0 %v9932_v9  ;;  %v1675_v2 = vld [vmem:[#allocation7 + $0xe68] sm:$0xff] }
 0x258   :  { %7868 = vmatpush2.bf16.msra.mxu1 %v10060_v10  ;;  %7828 = vmatprep.subr.bf16.mxu0 %v9925_v13  ;;  %v10013_v7 = vcombine.high %v1671_v33, %v1675_v2  ;;  %v1535_v59 = vld [vmem:[#allocation7 + $0xa08] sm:$0xff]  ;;  %v10012_v16 = vcombine.low %v1671_v33, %v1675_v2 }
 0x259   :  { %7869 = vmatprep.subr.bf16.mxu1 %v10053_v15  ;;  %v1539_v9 = vld [vmem:[#allocation7 + $0xa28] sm:$0xff]  ;;  %v9884_v15 = vcombine.low %v1543_v60, %v1547_v61 }
 0x25a   :  { %v1663_v10 = vld [vmem:[#allocation7 + $0xe08] sm:$0xff]  ;;  %v9877_v17 = vcombine.high %v1535_v59, %v1539_v9 }
 0x25b   :  { %7829 = vmatpush2.bf16.msra.mxu0 %v9924_v20  ;;  %v1667_v13 = vld [vmem:[#allocation7 + $0xe28] sm:$0xff] }
 0x25c   :  { %7870 = vmatpush2.bf16.msra.mxu1 %v10052_v23  ;;  %7830 = vmatprep.subr.bf16.mxu0 %v9917_v24  ;;  %v10005_v18 = vcombine.high %v1663_v10, %v1667_v13  ;;  %v1783_v19 = vld [vmem:[#allocation7 + $0x11c8] sm:$0xff]  ;;  %v10004_v28 = vcombine.low %v1663_v10, %v1667_v13 }
 0x25d   :  { %7871 = vmatprep.subr.bf16.mxu1 %v10045_v27  ;;  %v1787_v20 = vld [vmem:[#allocation7 + $0x11e8] sm:$0xff]  ;;  %v9876_v27 = vcombine.low %v1535_v59, %v1539_v9 }
 0x25e   :  { %v1911_v23 = vld [vmem:[#allocation7 + $0x15c8] sm:$0xff]  ;;  %v10125_v31 = vcombine.high %v1783_v19, %v1787_v20 }
 0x25f   :  { %7831 = vmatpush2.bf16.msra.mxu0 %v9916_v36  ;;  %v1915_v24 = vld [vmem:[#allocation7 + $0x15e8] sm:$0xff] }
 0x260   :  { %7872 = vmatpush2.bf16.msra.mxu1 %v10044_v12  ;;  %7832 = vmatprep.subr.bf16.mxu0 %v9909_v38  ;;  %v10253_v34 = vcombine.high %v1911_v23, %v1915_v24  ;;  %v1775_v35 = vld [vmem:[#allocation7 + $0x1188] sm:$0xff]  ;;  %v10124_v12 = vcombine.low %v1783_v19, %v1787_v20  ;;  %v10252_v40 = vcombine.low %v1911_v23, %v1915_v24 }
 0x261   :  { %7873 = vmatprep.subr.bf16.mxu1 %v10037_v39  ;;  %v1779_v36 = vld [vmem:[#allocation7 + $0x11a8] sm:$0xff] }
 0x262   :  { %v1903_v38 = vld [vmem:[#allocation7 + $0x1588] sm:$0xff]  ;;  %v10117_v43 = vcombine.high %v1775_v35, %v1779_v36  ;;  %v10116_v11 = vcombine.low %v1775_v35, %v1779_v36 }
 0x263   :  { %7833 = vmatpush2.bf16.msra.mxu0 %v9908_v47  ;;  %v1907_v39 = vld [vmem:[#allocation7 + $0x15a8] sm:$0xff] }
 0x264   :  { %7874 = vmatpush2.bf16.msra.mxu1 %v10036_v8  ;;  %7834 = vmatprep.subr.bf16.mxu0 %v9901_v48  ;;  %v1767_v4 = vld [vmem:[#allocation7 + $0x1148] sm:$0xff]  ;;  %v10245_v8 = vcombine.high %v1903_v38, %v1907_v39 }
 0x265   :  { %7875 = vmatprep.subr.bf16.mxu1 %v10029_v50  ;;  %v1771_v0 = vld [vmem:[#allocation7 + $0x1168] sm:$0xff] }
 0x266   :  { %v1895_v48 = vld [vmem:[#allocation7 + $0x1548] sm:$0xff]  ;;  %v10108_v59 = vcombine.low %v1767_v4, %v1771_v0 }
 0x267   :  { %7835 = vmatpush2.bf16.msra.mxu0 %v9900_v57  ;;  %v1899_v50 = vld [vmem:[#allocation7 + $0x1568] sm:$0xff]  ;;  %v10244_v57 = vcombine.low %v1903_v38, %v1907_v39 }
 0x268   :  { %7876 = vmatpush2.bf16.msra.mxu1 %v10028_v51  ;;  %7836 = vmatprep.subr.bf16.mxu0 %v9893_v58  ;;  %v10109_v51 = vcombine.high %v1767_v4, %v1771_v0  ;;  %v1759_v61 = vld [vmem:[#allocation7 + $0x1108] sm:$0xff]  ;;  %v10236_v10 = vcombine.low %v1895_v48, %v1899_v50 }
 0x269   :  { %7877 = vmatprep.subr.bf16.mxu1 %v10021_v14  ;;  %v1763_v33 = vld [vmem:[#allocation7 + $0x1128] sm:$0xff] }
 0x26a   :  { %v10101_v13 = vcombine.high %v1759_v61, %v1763_v33  ;;  %v1883_v19 = vld [vmem:[#allocation7 + $0x14e8] sm:$0xff]  ;;  %v10100_v20 = vcombine.low %v1759_v61, %v1763_v33 }
 0x26b   :  { %7837 = vmatpush2.bf16.msra.mxu0 %v9892_v29  ;;  %v1887_v29 = vld [vmem:[#allocation7 + $0x1508] sm:$0xff] }
 0x26c   :  { %7878 = vmatpush2.bf16.msra.mxu1 %v10020_v5  ;;  %7838 = vmatprep.subr.bf16.mxu0 %v9885_v6  ;;  %v1891_v5 = vld [vmem:[#allocation7 + $0x1528] sm:$0xff] }
 0x26d   :  { %7879 = vmatprep.subr.bf16.mxu1 %v10013_v7  ;;  %v10228_v23 = vcombine.low %v1887_v29, %v1891_v5  ;;  %v1875_v35 = vld [vmem:[#allocation7 + $0x14a8] sm:$0xff] }
 0x26e   :  { %v1863_v4 = vld [vmem:[#allocation7 + $0x1448] sm:$0xff] }
 0x26f   :  { %7839 = vmatpush2.bf16.msra.mxu0 %v9884_v15  ;;  %v10229_v15 = vcombine.high %v1887_v29, %v1891_v5  ;;  %v1867_v0 = vld [vmem:[#allocation7 + $0x1468] sm:$0xff] }
 0x270   :  { %7880 = vmatpush2.bf16.msra.mxu1 %v10012_v16  ;;  %7840 = vmatprep.subr.bf16.mxu0 %v9877_v17  ;;  %v1751_v16 = vld [vmem:[#allocation7 + $0x10c8] sm:$0xff] }
 0x271   :  { %7881 = vmatprep.subr.bf16.mxu1 %v10005_v18  ;;  %v1755_v17 = vld [vmem:[#allocation7 + $0x10e8] sm:$0xff] }
 0x272   :  { %v1879_v18 = vld [vmem:[#allocation7 + $0x14c8] sm:$0xff]  ;;  %v10093_v24 = vcombine.high %v1751_v16, %v1755_v17  ;;  %v10092_v36 = vcombine.low %v1751_v16, %v1755_v17 }
 0x273   :  { %7841 = vmatpush2.bf16.msra.mxu0 %v9876_v27  ;;  %v10221_v27 = vcombine.high %v1879_v18, %v1883_v19  ;;  %v1851_v61 = vld [vmem:[#allocation7 + $0x13e8] sm:$0xff] }
 0x274   :  { %7882 = vmatpush2.bf16.msra.mxu1 %v10004_v28  ;;  %7892 = vmatprep.subr.bf16.mxu0 %v10125_v31  ;;  %v1743_v28 = vld [vmem:[#allocation7 + $0x1088] sm:$0xff] }
 0x275   :  { %7933 = vmatprep.subr.bf16.mxu1 %v10253_v34  ;;  %v1747_v31 = vld [vmem:[#allocation7 + $0x10a8] sm:$0xff] }
 0x276   :  { %v7598_v47 = vpop.f32.mrf.mxu0  ;;  %7843 = vmatmul.mubr.bf16.vlgmr.msra.gmra.mxu0 %v11080_v56  ;;  %v7639_v49 = vpop.f32.mrf.mxu1  ;;  %v1871_v34 = vld [vmem:[#allocation7 + $0x1488] sm:$0xff]  ;;  %v10085_v38 = vcombine.high %v1743_v28, %v1747_v31 }
 0x277   :  { %v7599_v52 = vadd.f32 %v7598_v47, %v11142_v54  ;;  %7884 = vmatmul.mubr.bf16.vlgmr.msra.gmra.mxu1 %v11076_v53  ;;  %7893 = vmatpush1.bf16.msra.mxu0 %v10124_v12  ;;  %v10237_v54 = vcombine.high %v1895_v48, %v1899_v50  ;;  %v10220_v12 = vcombine.low %v1879_v18, %v1883_v19  ;;  %v1975_v33 = vld [vmem:[#allocation7 + $0x17c8] sm:$0xff] }
 0x278   :  { %7924 = vmatprep.mubr.bf16.mxu0 %v11082_v63  ;;  %7934 = vmatpush1.bf16.msra.mxu1 %v10252_v40  ;;  %v7600_v55 = vpop.f32.mrf.mxu0  ;;  %v7641_v60 = vpop.f32.mrf.mxu1  ;;  %v10213_v39 = vcombine.high %v1871_v34, %v1875_v35  ;;  %v1735_v40 = vld [vmem:[#allocation7 + $0x1048] sm:$0xff]  ;;  %v10084_v47 = vcombine.low %v1743_v28, %v1747_v31  ;;  %v10205_v50 = vcombine.high %v1863_v4, %v1867_v0 }
 0x279   :  { %v11152_v58 = vadd.f32 %v7639_v49, %v7599_v52  ;;  %7965 = vmatprep.mubr.bf16.mxu1 %v11085_v3  ;;  %v7601_v14 = vadd.f32 %v7600_v55, %v11146_v1  ;;  %7894 = vmatprep.subr.bf16.mxu0 %v10117_v43  ;;  %v1739_v43 = vld [vmem:[#allocation7 + $0x1068] sm:$0xff] }
 0x27a   :  { %v7602_v2 = vpop.f32.mrf.mxu0  ;;  %7935 = vmatprep.subr.bf16.mxu1 %v10245_v8  ;;  %v7643_v7 = vpop.f32.mrf.mxu1  ;;  %v10212_v8 = vcombine.low %v1871_v34, %v1875_v35  ;;  %v10077_v48 = vcombine.high %v1735_v40, %v1739_v43  ;;  %v1727_v52 = vld [vmem:[#allocation7 + $0x1008] sm:$0xff] }
 0x27b   :  { %v11156_v6 = vadd.f32 %v7641_v60, %v7601_v14  ;;  %7895 = vmatpush1.bf16.msra.mxu0 %v10116_v11  ;;  %v1731_v49 = vld [vmem:[#allocation7 + $0x1028] sm:$0xff] }
 0x27c   :  { %7936 = vmatpush1.bf16.msra.mxu1 %v10244_v57  ;;  %v7603_v9 = vpop.f32.mrf.mxu0  ;;  %7896 = vmatprep.subr.bf16.mxu0 %v10109_v51  ;;  %v7644_v1 = vpop.f32.mrf.mxu1  ;;  %v1855_v11 = vld [vmem:[#allocation7 + $0x1408] sm:$0xff]  ;;  %v10076_v57 = vcombine.low %v1735_v40, %v1739_v43  ;;  %v10204_v51 = vcombine.low %v1863_v4, %v1867_v0  ;;  %v10069_v14 = vcombine.high %v1727_v52, %v1731_v49 }
 0x27d   :  { %7937 = vmatprep.subr.bf16.mxu1 %v10237_v54  ;;  %v1859_v55 = vld [vmem:[#allocation7 + $0x1428] sm:$0xff]  ;;  %v10068_v29 = vcombine.low %v1727_v52, %v1731_v49 }
 0x27e   :  { %v10197_v60 = vcombine.high %v1855_v11, %v1859_v55  ;;  %v1847_v54 = vld [vmem:[#allocation7 + $0x13c8] sm:$0xff]  ;;  %v10196_v5 = vcombine.low %v1855_v11, %v1859_v55 }
 0x27f   :  { %7897 = vmatpush1.bf16.msra.mxu0 %v10108_v59  ;;  %v1979_v2 = vld [vmem:[#allocation7 + $0x17e8] sm:$0xff]  ;;  %v10189_v7 = vcombine.high %v1847_v54, %v1851_v61 }
 0x280   :  { %7938 = vmatpush1.bf16.msra.mxu1 %v10236_v10  ;;  %7898 = vmatprep.subr.bf16.mxu0 %v10101_v13  ;;  %v10317_v59 = vcombine.high %v1975_v33, %v1979_v2  ;;  %v1839_v9 = vld [vmem:[#allocation7 + $0x1388] sm:$0xff]  ;;  %v10316_v16 = vcombine.low %v1975_v33, %v1979_v2 }
 0x281   :  { %7939 = vmatprep.subr.bf16.mxu1 %v10229_v15  ;;  %v1843_v10 = vld [vmem:[#allocation7 + $0x13a8] sm:$0xff]  ;;  %v10188_v15 = vcombine.low %v1847_v54, %v1851_v61 }
 0x282   :  { %v1967_v13 = vld [vmem:[#allocation7 + $0x1788] sm:$0xff]  ;;  %v10181_v17 = vcombine.high %v1839_v9, %v1843_v10 }
 0x283   :  { %7899 = vmatpush1.bf16.msra.mxu0 %v10100_v20  ;;  %v1971_v1 = vld [vmem:[#allocation7 + $0x17a8] sm:$0xff] }
 0x284   :  { %7940 = vmatpush1.bf16.msra.mxu1 %v10228_v23  ;;  %7900 = vmatprep.subr.bf16.mxu0 %v10093_v24  ;;  %v10309_v18 = vcombine.high %v1967_v13, %v1971_v1  ;;  %v1831_v19 = vld [vmem:[#allocation7 + $0x1348] sm:$0xff]  ;;  %v10308_v28 = vcombine.low %v1967_v13, %v1971_v1 }
 0x285   :  { %7941 = vmatprep.subr.bf16.mxu1 %v10221_v27  ;;  %v1835_v20 = vld [vmem:[#allocation7 + $0x1368] sm:$0xff]  ;;  %v10180_v27 = vcombine.low %v1839_v9, %v1843_v10 }
 0x286   :  { %v1959_v23 = vld [vmem:[#allocation7 + $0x1748] sm:$0xff]  ;;  %v10173_v31 = vcombine.high %v1831_v19, %v1835_v20 }
 0x287   :  { %7901 = vmatpush1.bf16.msra.mxu0 %v10092_v36  ;;  %v1963_v24 = vld [vmem:[#allocation7 + $0x1768] sm:$0xff] }
 0x288   :  { %7942 = vmatpush1.bf16.msra.mxu1 %v10220_v12  ;;  %7902 = vmatprep.subr.bf16.mxu0 %v10085_v38  ;;  %v10301_v34 = vcombine.high %v1959_v23, %v1963_v24  ;;  %v1823_v35 = vld [vmem:[#allocation7 + $0x1308] sm:$0xff]  ;;  %v10300_v40 = vcombine.low %v1959_v23, %v1963_v24 }
 0x289   :  { %7943 = vmatprep.subr.bf16.mxu1 %v10213_v39  ;;  %v1827_v36 = vld [vmem:[#allocation7 + $0x1328] sm:$0xff]  ;;  %v10172_v39 = vcombine.low %v1831_v19, %v1835_v20 }
 0x28a   :  { %v1951_v12 = vld [vmem:[#allocation7 + $0x1708] sm:$0xff]  ;;  %v10165_v43 = vcombine.high %v1823_v35, %v1827_v36 }
 0x28b   :  { %7903 = vmatpush1.bf16.msra.mxu0 %v10084_v47  ;;  %v1955_v38 = vld [vmem:[#allocation7 + $0x1728] sm:$0xff] }
 0x28c   :  { %7944 = vmatpush1.bf16.msra.mxu1 %v10212_v8  ;;  %7904 = vmatprep.subr.bf16.mxu0 %v10077_v48  ;;  %v10293_v4 = vcombine.high %v1951_v12, %v1955_v38  ;;  %v1815_v0 = vld [vmem:[#allocation7 + $0x12c8] sm:$0xff]  ;;  %v10292_v52 = vcombine.low %v1951_v12, %v1955_v38 }
 0x28d   :  { %7945 = vmatprep.subr.bf16.mxu1 %v10205_v50  ;;  %v1819_v47 = vld [vmem:[#allocation7 + $0x12e8] sm:$0xff]  ;;  %v10164_v50 = vcombine.low %v1823_v35, %v1827_v36 }
 0x28e   :  { %v1943_v8 = vld [vmem:[#allocation7 + $0x16c8] sm:$0xff]  ;;  %v10157_v49 = vcombine.high %v1815_v0, %v1819_v47 }
 0x28f   :  { %7905 = vmatpush1.bf16.msra.mxu0 %v10076_v57  ;;  %v1947_v48 = vld [vmem:[#allocation7 + $0x16e8] sm:$0xff] }
 0x290   :  { %7946 = vmatpush1.bf16.msra.mxu1 %v10204_v51  ;;  %7906 = vmatprep.subr.bf16.mxu0 %v10069_v14  ;;  %v10285_v11 = vcombine.high %v1943_v8, %v1947_v48  ;;  %v1807_v55 = vld [vmem:[#allocation7 + $0x1288] sm:$0xff]  ;;  %v10284_v54 = vcombine.low %v1943_v8, %v1947_v48 }
 0x291   :  { %7947 = vmatprep.subr.bf16.mxu1 %v10197_v60  ;;  %v1811_v57 = vld [vmem:[#allocation7 + $0x12a8] sm:$0xff]  ;;  %v10156_v60 = vcombine.low %v1815_v0, %v1819_v47 }
 0x292   :  { %v1935_v51 = vld [vmem:[#allocation7 + $0x1688] sm:$0xff]  ;;  %v10149_v61 = vcombine.high %v1807_v55, %v1811_v57 }
 0x293   :  { %7907 = vmatpush1.bf16.msra.mxu0 %v10068_v29  ;;  %v1939_v14 = vld [vmem:[#allocation7 + $0x16a8] sm:$0xff] }
 0x294   :  { %7948 = vmatpush1.bf16.msra.mxu1 %v10196_v5  ;;  %7908 = vmatprep.subr.bf16.mxu0 %v10189_v7  ;;  %v10277_v33 = vcombine.high %v1935_v51, %v1939_v14  ;;  %v1799_v2 = vld [vmem:[#allocation7 + $0x1248] sm:$0xff]  ;;  %v10276_v9 = vcombine.low %v1935_v51, %v1939_v14 }
 0x295   :  { %7949 = vmatprep.subr.bf16.mxu1 %v10317_v59  ;;  %v1803_v29 = vld [vmem:[#allocation7 + $0x1268] sm:$0xff]  ;;  %v10148_v59 = vcombine.low %v1807_v55, %v1811_v57 }
 0x296   :  { %v1927_v5 = vld [vmem:[#allocation7 + $0x1648] sm:$0xff]  ;;  %v10141_v10 = vcombine.high %v1799_v2, %v1803_v29 }
 0x297   :  { %7909 = vmatpush2.bf16.msra.mxu0 %v10188_v15  ;;  %v1931_v7 = vld [vmem:[#allocation7 + $0x1668] sm:$0xff] }
 0x298   :  { %7950 = vmatpush2.bf16.msra.mxu1 %v10316_v16  ;;  %7910 = vmatprep.subr.bf16.mxu0 %v10181_v17  ;;  %v10269_v13 = vcombine.high %v1927_v5, %v1931_v7  ;;  %v1791_v1 = vld [vmem:[#allocation7 + $0x1208] sm:$0xff]  ;;  %v10268_v19 = vcombine.low %v1927_v5, %v1931_v7 }
 0x299   :  { %7951 = vmatprep.subr.bf16.mxu1 %v10309_v18  ;;  %v1795_v15 = vld [vmem:[#allocation7 + $0x1228] sm:$0xff]  ;;  %v10140_v18 = vcombine.low %v1799_v2, %v1803_v29 }
 0x29a   :  { %v1919_v16 = vld [vmem:[#allocation7 + $0x1608] sm:$0xff]  ;;  %v10133_v20 = vcombine.high %v1791_v1, %v1795_v15 }
 0x29b   :  { %7911 = vmatpush2.bf16.msra.mxu0 %v10180_v27  ;;  %v1923_v17 = vld [vmem:[#allocation7 + $0x1628] sm:$0xff] }
 0x29c   :  { %7952 = vmatpush2.bf16.msra.mxu1 %v10308_v28  ;;  %7912 = vmatprep.subr.bf16.mxu0 %v10173_v31  ;;  %v10261_v23 = vcombine.high %v1919_v16, %v1923_v17  ;;  %v2039_v24 = vld [vmem:[#allocation7 + $0x19c8] sm:$0xff]  ;;  %v10260_v35 = vcombine.low %v1919_v16, %v1923_v17 }
 0x29d   :  { %7953 = vmatprep.subr.bf16.mxu1 %v10301_v34  ;;  %v2043_v27 = vld [vmem:[#allocation7 + $0x19e8] sm:$0xff]  ;;  %v10132_v34 = vcombine.low %v1791_v1, %v1795_v15 }
 0x29e   :  { %v2167_v28 = vld [vmem:[#allocation7 + $0x1dc8] sm:$0xff]  ;;  %v10381_v36 = vcombine.high %v2039_v24, %v2043_v27 }
 0x29f   :  { %7913 = vmatpush2.bf16.msra.mxu0 %v10172_v39  ;;  %v2171_v31 = vld [vmem:[#allocation7 + $0x1de8] sm:$0xff] }
 0x2a0   :  { %7954 = vmatpush2.bf16.msra.mxu1 %v10300_v40  ;;  %7914 = vmatprep.subr.bf16.mxu0 %v10165_v43  ;;  %v10509_v12 = vcombine.high %v2167_v28, %v2171_v31  ;;  %v2031_v38 = vld [vmem:[#allocation7 + $0x1988] sm:$0xff]  ;;  %v10380_v40 = vcombine.low %v2039_v24, %v2043_v27  ;;  %v10508_v0 = vcombine.low %v2167_v28, %v2171_v31 }
 0x2a1   :  { %7955 = vmatprep.subr.bf16.mxu1 %v10293_v4  ;;  %v2035_v39 = vld [vmem:[#allocation7 + $0x19a8] sm:$0xff] }
 0x2a2   :  { %v2159_v43 = vld [vmem:[#allocation7 + $0x1d88] sm:$0xff]  ;;  %v10373_v47 = vcombine.high %v2031_v38, %v2035_v39  ;;  %v10372_v51 = vcombine.low %v2031_v38, %v2035_v39 }
 0x2a3   :  { %7915 = vmatpush2.bf16.msra.mxu0 %v10164_v50  ;;  %v2163_v4 = vld [vmem:[#allocation7 + $0x1da8] sm:$0xff] }
 0x2a4   :  { %7956 = vmatpush2.bf16.msra.mxu1 %v10292_v52  ;;  %7916 = vmatprep.subr.bf16.mxu0 %v10157_v49  ;;  %v2023_v8 = vld [vmem:[#allocation7 + $0x1948] sm:$0xff]  ;;  %v10501_v52 = vcombine.high %v2159_v43, %v2163_v4 }
 0x2a5   :  { %7957 = vmatprep.subr.bf16.mxu1 %v10285_v11  ;;  %v2027_v48 = vld [vmem:[#allocation7 + $0x1968] sm:$0xff] }
 0x2a6   :  { %v2151_v49 = vld [vmem:[#allocation7 + $0x1d48] sm:$0xff]  ;;  %v10364_v1 = vcombine.low %v2023_v8, %v2027_v48 }
 0x2a7   :  { %7917 = vmatpush2.bf16.msra.mxu0 %v10156_v60  ;;  %v2155_v11 = vld [vmem:[#allocation7 + $0x1d68] sm:$0xff]  ;;  %v10500_v60 = vcombine.low %v2159_v43, %v2163_v4 }
 0x2a8   :  { %7958 = vmatpush2.bf16.msra.mxu1 %v10284_v54  ;;  %7918 = vmatprep.subr.bf16.mxu0 %v10149_v61  ;;  %v10365_v54 = vcombine.high %v2023_v8, %v2027_v48  ;;  %v2015_v29 = vld [vmem:[#allocation7 + $0x1908] sm:$0xff]  ;;  %v10492_v16 = vcombine.low %v2151_v49, %v2155_v11 }
 0x2a9   :  { %7959 = vmatprep.subr.bf16.mxu1 %v10277_v33  ;;  %v2019_v5 = vld [vmem:[#allocation7 + $0x1928] sm:$0xff] }
 0x2aa   :  { %v10357_v17 = vcombine.high %v2015_v29, %v2019_v5  ;;  %v2139_v24 = vld [vmem:[#allocation7 + $0x1ce8] sm:$0xff]  ;;  %v10356_v27 = vcombine.low %v2015_v29, %v2019_v5 }
 0x2ab   :  { %7919 = vmatpush2.bf16.msra.mxu0 %v10148_v59  ;;  %v2143_v59 = vld [vmem:[#allocation7 + $0x1d08] sm:$0xff] }
 0x2ac   :  { %7960 = vmatpush2.bf16.msra.mxu1 %v10276_v9  ;;  %7920 = vmatprep.subr.bf16.mxu0 %v10141_v10  ;;  %v2147_v9 = vld [vmem:[#allocation7 + $0x1d28] sm:$0xff] }
 0x2ad   :  { %7961 = vmatprep.subr.bf16.mxu1 %v10269_v13  ;;  %v10484_v28 = vcombine.low %v2143_v59, %v2147_v9  ;;  %v2131_v38 = vld [vmem:[#allocation7 + $0x1ca8] sm:$0xff] }
 0x2ae   :  { %v2119_v8 = vld [vmem:[#allocation7 + $0x1c48] sm:$0xff] }
 0x2af   :  { %7921 = vmatpush2.bf16.msra.mxu0 %v10140_v18  ;;  %v10485_v18 = vcombine.high %v2143_v59, %v2147_v9  ;;  %v2123_v48 = vld [vmem:[#allocation7 + $0x1c68] sm:$0xff] }
 0x2b0   :  { %7962 = vmatpush2.bf16.msra.mxu1 %v10268_v19  ;;  %7922 = vmatprep.subr.bf16.mxu0 %v10133_v20  ;;  %v2007_v19 = vld [vmem:[#allocation7 + $0x18c8] sm:$0xff] }
 0x2b1   :  { %7963 = vmatprep.subr.bf16.mxu1 %v10261_v23  ;;  %v2011_v20 = vld [vmem:[#allocation7 + $0x18e8] sm:$0xff] }
 0x2b2   :  { %v2135_v23 = vld [vmem:[#allocation7 + $0x1cc8] sm:$0xff]  ;;  %v10349_v31 = vcombine.high %v2007_v19, %v2011_v20  ;;  %v10348_v39 = vcombine.low %v2007_v19, %v2011_v20 }
 0x2b3   :  { %7923 = vmatpush2.bf16.msra.mxu0 %v10132_v34  ;;  %v10477_v34 = vcombine.high %v2135_v23, %v2139_v24  ;;  %v2107_v29 = vld [vmem:[#allocation7 + $0x1be8] sm:$0xff] }
 0x2b4   :  { %7964 = vmatpush2.bf16.msra.mxu1 %v10260_v35  ;;  %7974 = vmatprep.subr.bf16.mxu0 %v10381_v36  ;;  %v1999_v35 = vld [vmem:[#allocation7 + $0x1888] sm:$0xff] }
 0x2b5   :  { %8015 = vmatprep.subr.bf16.mxu1 %v10509_v12  ;;  %v2003_v36 = vld [vmem:[#allocation7 + $0x18a8] sm:$0xff] }
 0x2b6   :  { %v7680_v50 = vpop.f32.mrf.mxu0  ;;  %7925 = vmatmul.mubr.bf16.vlgmr.msra.gmra.mxu0 %v11100_v41  ;;  %v7721_v57 = vpop.f32.mrf.mxu1  ;;  %v2127_v12 = vld [vmem:[#allocation7 + $0x1c88] sm:$0xff]  ;;  %v10341_v43 = vcombine.high %v1999_v35, %v2003_v36 }
 0x2b7   :  { %v7681_v55 = vadd.f32 %v7680_v50, %v11152_v58  ;;  %7966 = vmatmul.mubr.bf16.vlgmr.msra.gmra.mxu1 %v11104_v44  ;;  %7975 = vmatpush1.bf16.msra.mxu0 %v10380_v40  ;;  %v10493_v58 = vcombine.high %v2151_v49, %v2155_v11  ;;  %v10476_v40 = vcombine.low %v2135_v23, %v2139_v24  ;;  %v2231_v5 = vld [vmem:[#allocation7 + $0x1fc8] sm:$0xff] }
 0x2b8   :  { %8006 = vmatprep.mubr.bf16.mxu0 %v11108_v46  ;;  %8016 = vmatpush1.bf16.msra.mxu1 %v10508_v0  ;;  %v7682_v14 = vpop.f32.mrf.mxu0  ;;  %v7723_v2 = vpop.f32.mrf.mxu1  ;;  %v10469_v4 = vcombine.high %v2127_v12, %v2131_v38  ;;  %v1991_v0 = vld [vmem:[#allocation7 + $0x1848] sm:$0xff]  ;;  %v10340_v50 = vcombine.low %v1999_v35, %v2003_v36  ;;  %v10461_v11 = vcombine.high %v2119_v8, %v2123_v48 }
 0x2b9   :  { %v11162_v61 = vadd.f32 %v7721_v57, %v7681_v55  ;;  %8047 = vmatprep.mubr.bf16.mxu1 %v11112_v45  ;;  %v7683_v33 = vadd.f32 %v7682_v14, %v11156_v6  ;;  %7976 = vmatprep.subr.bf16.mxu0 %v10373_v47  ;;  %v1995_v47 = vld [vmem:[#allocation7 + $0x1868] sm:$0xff] }
 0x2ba   :  { %v7684_v7 = vpop.f32.mrf.mxu0  ;;  %8017 = vmatprep.subr.bf16.mxu1 %v10501_v52  ;;  %v7725_v13 = vpop.f32.mrf.mxu1  ;;  %v10468_v52 = vcombine.low %v2127_v12, %v2131_v38  ;;  %v10333_v49 = vcombine.high %v1991_v0, %v1995_v47  ;;  %v1983_v55 = vld [vmem:[#allocation7 + $0x1808] sm:$0xff] }
 0x2bb   :  { %v11166_v10 = vadd.f32 %v7723_v2, %v7683_v33  ;;  %7977 = vmatpush1.bf16.msra.mxu0 %v10372_v51  ;;  %v1987_v57 = vld [vmem:[#allocation7 + $0x1828] sm:$0xff] }
 0x2bc   :  { %8018 = vmatpush1.bf16.msra.mxu1 %v10500_v60  ;;  %v7685_v15 = vpop.f32.mrf.mxu0  ;;  %7978 = vmatprep.subr.bf16.mxu0 %v10365_v54  ;;  %v7726_v6 = vpop.f32.mrf.mxu1  ;;  %v2111_v51 = vld [vmem:[#allocation7 + $0x1c08] sm:$0xff]  ;;  %v10332_v60 = vcombine.low %v1991_v0, %v1995_v47  ;;  %v10460_v54 = vcombine.low %v2119_v8, %v2123_v48  ;;  %v10325_v33 = vcombine.high %v1983_v55, %v1987_v57 }
 0x2bd   :  { %8019 = vmatprep.subr.bf16.mxu1 %v10493_v58  ;;  %v2115_v14 = vld [vmem:[#allocation7 + $0x1c28] sm:$0xff]  ;;  %v10324_v59 = vcombine.low %v1983_v55, %v1987_v57 }
 0x2be   :  { %v10453_v2 = vcombine.high %v2111_v51, %v2115_v14  ;;  %v2103_v58 = vld [vmem:[#allocation7 + $0x1bc8] sm:$0xff]  ;;  %v10452_v9 = vcombine.low %v2111_v51, %v2115_v14 }
 0x2bf   :  { %7979 = vmatpush1.bf16.msra.mxu0 %v10364_v1  ;;  %v2235_v7 = vld [vmem:[#allocation7 + $0x1fe8] sm:$0xff]  ;;  %v10445_v13 = vcombine.high %v2103_v58, %v2107_v29 }
 0x2c0   :  { %8020 = vmatpush1.bf16.msra.mxu1 %v10492_v16  ;;  %7980 = vmatprep.subr.bf16.mxu0 %v10357_v17  ;;  %v10573_v1 = vcombine.high %v2231_v5, %v2235_v7  ;;  %v2095_v15 = vld [vmem:[#allocation7 + $0x1b88] sm:$0xff]  ;;  %v10572_v19 = vcombine.low %v2231_v5, %v2235_v7 }
 0x2c1   :  { %8021 = vmatprep.subr.bf16.mxu1 %v10485_v18  ;;  %v2099_v16 = vld [vmem:[#allocation7 + $0x1ba8] sm:$0xff]  ;;  %v10444_v18 = vcombine.low %v2103_v58, %v2107_v29 }
 0x2c2   :  { %v2223_v17 = vld [vmem:[#allocation7 + $0x1f88] sm:$0xff]  ;;  %v10437_v20 = vcombine.high %v2095_v15, %v2099_v16 }
 0x2c3   :  { %7981 = vmatpush1.bf16.msra.mxu0 %v10356_v27  ;;  %v2227_v6 = vld [vmem:[#allocation7 + $0x1fa8] sm:$0xff] }
 0x2c4   :  { %8022 = vmatpush1.bf16.msra.mxu1 %v10484_v28  ;;  %7982 = vmatprep.subr.bf16.mxu0 %v10349_v31  ;;  %v10565_v23 = vcombine.high %v2223_v17, %v2227_v6  ;;  %v2087_v24 = vld [vmem:[#allocation7 + $0x1b48] sm:$0xff]  ;;  %v10564_v35 = vcombine.low %v2223_v17, %v2227_v6 }
 0x2c5   :  { %8023 = vmatprep.subr.bf16.mxu1 %v10477_v34  ;;  %v2091_v27 = vld [vmem:[#allocation7 + $0x1b68] sm:$0xff]  ;;  %v10436_v34 = vcombine.low %v2095_v15, %v2099_v16 }
 0x2c6   :  { %v2215_v28 = vld [vmem:[#allocation7 + $0x1f48] sm:$0xff]  ;;  %v10429_v36 = vcombine.high %v2087_v24, %v2091_v27 }
 0x2c7   :  { %7983 = vmatpush1.bf16.msra.mxu0 %v10348_v39  ;;  %v2219_v31 = vld [vmem:[#allocation7 + $0x1f68] sm:$0xff] }
 0x2c8   :  { %8024 = vmatpush1.bf16.msra.mxu1 %v10476_v40  ;;  %7984 = vmatprep.subr.bf16.mxu0 %v10341_v43  ;;  %v10557_v12 = vcombine.high %v2215_v28, %v2219_v31  ;;  %v2079_v38 = vld [vmem:[#allocation7 + $0x1b08] sm:$0xff]  ;;  %v10556_v0 = vcombine.low %v2215_v28, %v2219_v31  ;;  %v1272_v31 = vld [vmem:[#allocation7 + $0x1d0] sm:$0xff] }
 0x2c9   :  { %8025 = vmatprep.subr.bf16.mxu1 %v10469_v4  ;;  %v2083_v39 = vld [vmem:[#allocation7 + $0x1b28] sm:$0xff]  ;;  %v10428_v4 = vcombine.low %v2087_v24, %v2091_v27 }
 0x2ca   :  { %v2207_v40 = vld [vmem:[#allocation7 + $0x1f08] sm:$0xff]  ;;  %v10421_v47 = vcombine.high %v2079_v38, %v2083_v39 }
 0x2cb   :  { %7985 = vmatpush1.bf16.msra.mxu0 %v10340_v50  ;;  %v2211_v43 = vld [vmem:[#allocation7 + $0x1f28] sm:$0xff] }
 0x2cc   :  { %8026 = vmatpush1.bf16.msra.mxu1 %v10468_v52  ;;  %7986 = vmatprep.subr.bf16.mxu0 %v10333_v49  ;;  %v10549_v8 = vcombine.high %v2207_v40, %v2211_v43  ;;  %v2071_v48 = vld [vmem:[#allocation7 + $0x1ac8] sm:$0xff]  ;;  %v10548_v55 = vcombine.low %v2207_v40, %v2211_v43 }
 0x2cd   :  { %8027 = vmatprep.subr.bf16.mxu1 %v10461_v11  ;;  %v2075_v50 = vld [vmem:[#allocation7 + $0x1ae8] sm:$0xff]  ;;  %v10420_v11 = vcombine.low %v2079_v38, %v2083_v39  ;;  %v2250_v38 = vsub.s32 2, %v11118_v62 }
 0x2ce   :  { %v2199_v52 = vld [vmem:[#allocation7 + $0x1ec8] sm:$0xff]  ;;  %v10413_v57 = vcombine.high %v2071_v48, %v2075_v50 }
 0x2cf   :  { %7987 = vmatpush1.bf16.msra.mxu0 %v10332_v60  ;;  %v2203_v49 = vld [vmem:[#allocation7 + $0x1ee8] sm:$0xff] }
 0x2d0   :  { %8028 = vmatpush1.bf16.msra.mxu1 %v10460_v54  ;;  %7988 = vmatprep.subr.bf16.mxu0 %v10325_v33  ;;  %v10541_v51 = vcombine.high %v2199_v52, %v2203_v49  ;;  %v2063_v14 = vld [vmem:[#allocation7 + $0x1a88] sm:$0xff]  ;;  %v10540_v58 = vcombine.low %v2199_v52, %v2203_v49  ;;  %v1392_v52 = vld [vmem:[#allocation7 + $0x590] sm:$0xff] }
 0x2d1   :  { %8029 = vmatprep.subr.bf16.mxu1 %v10453_v2  ;;  %v2067_v60 = vld [vmem:[#allocation7 + $0x1aa8] sm:$0xff]  ;;  %v10412_v2 = vcombine.low %v2071_v48, %v2075_v50  ;;  %v1396_v49 = vld [vmem:[#allocation7 + $0x5b0] sm:$0xff] }
 0x2d2   :  { %v2191_v54 = vld [vmem:[#allocation7 + $0x1e88] sm:$0xff]  ;;  %v10405_v29 = vcombine.high %v2063_v14, %v2067_v60 }
 0x2d3   :  { %7989 = vmatpush1.bf16.msra.mxu0 %v10324_v59  ;;  %v2195_v33 = vld [vmem:[#allocation7 + $0x1ea8] sm:$0xff] }
 0x2d4   :  { %8030 = vmatpush1.bf16.msra.mxu1 %v10452_v9  ;;  %7990 = vmatprep.subr.bf16.mxu0 %v10445_v13  ;;  %v10533_v5 = vcombine.high %v2191_v54, %v2195_v33  ;;  %v2055_v7 = vld [vmem:[#allocation7 + $0x1a48] sm:$0xff]  ;;  %v10532_v15 = vcombine.low %v2191_v54, %v2195_v33  ;;  %v9735_v54 = vcombine.high %v1392_v52, %v1396_v49  ;;  %v1384_v33 = vld [vmem:[#allocation7 + $0x550] sm:$0xff] }
 0x2d5   :  { %8031 = vmatprep.subr.bf16.mxu1 %v10573_v1  ;;  %v2059_v59 = vld [vmem:[#allocation7 + $0x1a68] sm:$0xff]  ;;  %v10404_v1 = vcombine.low %v2063_v14, %v2067_v60  ;;  %v1260_v14 = vld [vmem:[#allocation7 + $0x170] sm:$0xff] }
 0x2d6   :  { %v2183_v9 = vld [vmem:[#allocation7 + $0x1e48] sm:$0xff]  ;;  %v10397_v16 = vcombine.high %v2055_v7, %v2059_v59 }
 0x2d7   :  { %7991 = vmatpush2.bf16.msra.mxu0 %v10444_v18  ;;  %v2187_v13 = vld [vmem:[#allocation7 + $0x1e68] sm:$0xff] }
 0x2d8   :  { %8032 = vmatpush2.bf16.msra.mxu1 %v10572_v19  ;;  %7992 = vmatprep.subr.bf16.mxu0 %v10437_v20  ;;  %v10525_v17 = vcombine.high %v2183_v9, %v2187_v13  ;;  %v2047_v6 = vld [vmem:[#allocation7 + $0x1a08] sm:$0xff]  ;;  %v10524_v24 = vcombine.low %v2183_v9, %v2187_v13 }
 0x2d9   :  { %8033 = vmatprep.subr.bf16.mxu1 %v10565_v23  ;;  %v2051_v18 = vld [vmem:[#allocation7 + $0x1a28] sm:$0xff]  ;;  %v10396_v23 = vcombine.low %v2055_v7, %v2059_v59  ;;  %v9734_v59 = vcombine.low %v1392_v52, %v1396_v49  ;;  %v1364_v52 = vld [vmem:[#allocation7 + $0x4b0] sm:$0xff] }
 0x2da   :  { %v2175_v19 = vld [vmem:[#allocation7 + $0x1e08] sm:$0xff]  ;;  %v10389_v27 = vcombine.high %v2047_v6, %v2051_v18 }
 0x2db   :  { %7993 = vmatpush2.bf16.msra.mxu0 %v10436_v34  ;;  %v2179_v20 = vld [vmem:[#allocation7 + $0x1e28] sm:$0xff]  ;;  %v1276_v34 = vld [vmem:[#allocation7 + $0x1f0] sm:$0xff] }
 0x2dc   :  { %8034 = vmatpush2.bf16.msra.mxu1 %v10564_v35  ;;  %7994 = vmatprep.subr.bf16.mxu0 %v10429_v36  ;;  %v10517_v28 = vcombine.high %v2175_v19, %v2179_v20  ;;  %v1400_v35 = vld [vmem:[#allocation7 + $0x5d0] sm:$0xff]  ;;  %v10516_v39 = vcombine.low %v2175_v19, %v2179_v20  ;;  %v9615_v40 = vcombine.high %v1272_v31, %v1276_v34 }
 0x2dd   :  { %8035 = vmatprep.subr.bf16.mxu1 %v10557_v12  ;;  %v1404_v36 = vld [vmem:[#allocation7 + $0x5f0] sm:$0xff]  ;;  %v10388_v12 = vcombine.low %v2047_v6, %v2051_v18  ;;  %v9614_v50 = vcombine.low %v1272_v31, %v1276_v34 }
 0x2de   :  { %v9743_v43 = vcombine.high %v1400_v35, %v1404_v36  ;;  %v1252_v6 = vld [vmem:[#allocation7 + $0x130] sm:$0xff] }
 0x2df   :  { %7995 = vmatpush2.bf16.msra.mxu0 %v10428_v4  ;;  %v2254_v4 = vsub.s32 3, %v11118_v62  ;;  %v1376_v19 = vld [vmem:[#allocation7 + $0x510] sm:$0xff] }
 0x2e0   :  { %8036 = vmatpush2.bf16.msra.mxu1 %v10556_v0  ;;  %7996 = vmatprep.subr.bf16.mxu0 %v10421_v47  ;;  %v1264_v0 = vld [vmem:[#allocation7 + $0x190] sm:$0xff] }
 0x2e1   :  { %8037 = vmatprep.subr.bf16.mxu1 %v10549_v8  ;;  %v1268_v47 = vld [vmem:[#allocation7 + $0x1b0] sm:$0xff]  ;;  %v10808_v8 = vld [vmem:[#allocation8] sm:$0xff] }
 0x2e2   :  { %v2251_v48 = vrot.slane %v10808_v8, %v2250_v38  ;;  %v1380_v20 = vld [vmem:[#allocation7 + $0x530] sm:$0xff] }
 0x2e3   :  { %7997 = vmatpush2.bf16.msra.mxu0 %v10420_v11  ;;  %v9742_v11 = vcombine.low %v1400_v35, %v1404_v36  ;;  %v9719_v36 = vcombine.high %v1376_v19, %v1380_v20  ;;  %v1244_v38 = vld [vmem:[#allocation7 + $0xf0] sm:$0xff] }
 0x2e4   :  { %8038 = vmatpush2.bf16.msra.mxu1 %v10548_v55  ;;  %7998 = vmatprep.subr.bf16.mxu0 %v10413_v57  ;;  %v2255_v55 = vrot.slane %v10808_v8, %v2254_v4  ;;  %v9607_v57 = vcombine.high %v1264_v0, %v1268_v47  ;;  %v9718_v4 = vcombine.low %v1376_v19, %v1380_v20  ;;  %v1232_v8 = vld [vmem:[#allocation7 + $0x90] sm:$0xff] }
 0x2e5   :  { %8039 = vmatprep.subr.bf16.mxu1 %v10541_v51  ;;  %v1256_v51 = vld [vmem:[#allocation7 + $0x150] sm:$0xff] }
 0x2e6   :  { %v9599_v9 = vcombine.high %v1256_v51, %v1260_v14  ;;  %v1464_v19 = vld [vmem:[#allocation7 + $0x7d0] sm:$0xff] }
 0x2e7   :  { %7999 = vmatpush2.bf16.msra.mxu0 %v10412_v2  ;;  %v1388_v2 = vld [vmem:[#allocation7 + $0x570] sm:$0xff] }
 0x2e8   :  { %8040 = vmatpush2.bf16.msra.mxu1 %v10540_v58  ;;  %8000 = vmatprep.subr.bf16.mxu0 %v10405_v29  ;;  %v9726_v31 = vcombine.low %v1384_v33, %v1388_v2  ;;  %v1468_v20 = vld [vmem:[#allocation7 + $0x7f0] sm:$0xff] }
 0x2e9   :  { %8041 = vmatprep.subr.bf16.mxu1 %v10533_v5  ;;  %v9606_v5 = vcombine.low %v1264_v0, %v1268_v47 }
 0x2eb   :  { %8001 = vmatpush2.bf16.msra.mxu0 %v10404_v1 }
 0x2ec   :  { %8042 = vmatpush2.bf16.msra.mxu1 %v10532_v15  ;;  %8002 = vmatprep.subr.bf16.mxu0 %v10397_v16  ;;  %v9727_v16 = vcombine.high %v1384_v33, %v1388_v2 }
 0x2ed   :  { %8043 = vmatprep.subr.bf16.mxu1 %v10525_v17  ;;  %v1248_v17 = vld [vmem:[#allocation7 + $0x110] sm:$0xff] }
 0x2ee   :  { %v9591_v34 = vcombine.high %v1248_v17, %v1252_v6 }
 0x2ef   :  { %8003 = vmatpush2.bf16.msra.mxu0 %v10396_v23 }
 0x2f0   :  { %8044 = vmatpush2.bf16.msra.mxu1 %v10524_v24  ;;  %8004 = vmatprep.subr.bf16.mxu0 %v10389_v27  ;;  %v9598_v27 = vcombine.low %v1256_v51, %v1260_v14  ;;  %v1224_v51 = vld [vmem:[#allocation7 + $0x50] sm:$0xff] }
 0x2f1   :  { %8045 = vmatprep.subr.bf16.mxu1 %v10517_v28  ;;  %v1228_v14 = vld [vmem:[#allocation7 + $0x70] sm:$0xff] }
 0x2f3   :  { %8005 = vmatpush2.bf16.msra.mxu0 %v10388_v12  ;;  %v1240_v12 = vld [vmem:[#allocation7 + $0xd0] sm:$0xff] }
 0x2f4   :  { %8046 = vmatpush2.bf16.msra.mxu1 %v10516_v39  ;;  %8056 = vmatprep.subr.bf16.mxu0 %v9615_v40  ;;  %v1368_v39 = vld [vmem:[#allocation7 + $0x4d0] sm:$0xff]  ;;  %v9583_v0 = vcombine.high %v1240_v12, %v1244_v38  ;;  %v9582_v49 = vcombine.low %v1240_v12, %v1244_v38 }
 0x2f5   :  { %8097 = vmatprep.subr.bf16.mxu1 %v9743_v43  ;;  %v1372_v40 = vld [vmem:[#allocation7 + $0x4f0] sm:$0xff]  ;;  %v9590_v43 = vcombine.low %v1248_v17, %v1252_v6 }
 0x2f6   :  { %v7762_v60 = vpop.f32.mrf.mxu0  ;;  %8007 = vmatmul.mubr.bf16.vlgmr.msra.gmra.mxu0 %v11124_v30  ;;  %v9711_v47 = vcombine.high %v1368_v39, %v1372_v40  ;;  %v1336_v6 = vld [vmem:[#allocation7 + $0x3d0] sm:$0xff] }
 0x2f7   :  { %v7763_v58 = vadd.f32 %v7762_v60, %v2251_v48  ;;  %v7803_v29 = vpop.f32.mrf.mxu1  ;;  %8048 = vmatmul.mubr.bf16.vlgmr.msra.gmra.mxu1 %v11128_v32  ;;  %8057 = vmatpush1.bf16.msra.mxu0 %v9614_v50  ;;  %v1236_v48 = vld [vmem:[#allocation7 + $0xb0] sm:$0xff] }
 0x2f8   :  { %8088 = vmatprep.mubr.bf16.mxu0 %v11050_v22  ;;  %8098 = vmatpush1.bf16.msra.mxu1 %v9742_v11  ;;  %v7764_v7 = vpop.f32.mrf.mxu0  ;;  %v1360_v50 = vld [vmem:[#allocation7 + $0x490] sm:$0xff]  ;;  %v9710_v11 = vcombine.low %v1368_v39, %v1372_v40  ;;  %v9574_v33 = vcombine.low %v1232_v8, %v1236_v48  ;;  %v9806_v39 = vcombine.low %v1464_v19, %v1468_v20 }
 0x2f9   :  { %v11173_v13 = vadd.f32 %v7803_v29, %v7763_v58  ;;  %8129 = vmatprep.mubr.bf16.mxu1 %v11054_v26  ;;  %v7765_v1 = vadd.f32 %v7764_v7, %v2255_v55  ;;  %v7805_v15 = vpop.f32.mrf.mxu1  ;;  %8058 = vmatprep.subr.bf16.mxu0 %v9607_v57  ;;  %v9575_v55 = vcombine.high %v1232_v8, %v1236_v48  ;;  %v1352_v60 = vld [vmem:[#allocation7 + $0x450] sm:$0xff] }
 0x2fa   :  { %v7766_v18 = vpop.f32.mrf.mxu0  ;;  %8099 = vmatprep.subr.bf16.mxu1 %v9735_v54  ;;  %v9703_v57 = vcombine.high %v1360_v50, %v1364_v52  ;;  %v1356_v54 = vld [vmem:[#allocation7 + $0x470] sm:$0xff]  ;;  %v9702_v2 = vcombine.low %v1360_v50, %v1364_v52  ;;  %v9567_v58 = vcombine.high %v1224_v51, %v1228_v14 }
 0x2fb   :  { %v11176_v23 = vadd.f32 %v7805_v15, %v7765_v1  ;;  %v7807_v24 = vpop.f32.mrf.mxu1  ;;  %8059 = vmatpush1.bf16.msra.mxu0 %v9606_v5  ;;  %v9695_v29 = vcombine.high %v1352_v60, %v1356_v54  ;;  %v1216_v5 = vld [vmem:[#allocation7 + $0x10] sm:$0xff]  ;;  %v9566_v1 = vcombine.low %v1224_v51, %v1228_v14  ;;  %v9694_v15 = vcombine.low %v1352_v60, %v1356_v54 }
 0x2fc   :  { %8100 = vmatpush1.bf16.msra.mxu1 %v9734_v59  ;;  %v7767_v28 = vpop.f32.mrf.mxu0  ;;  %8060 = vmatprep.subr.bf16.mxu0 %v9599_v9  ;;  %v1220_v7 = vld [vmem:[#allocation7 + $0x30] sm:$0xff] }
 0x2fd   :  { %v7808_v35 = vpop.f32.mrf.mxu1  ;;  %8101 = vmatprep.subr.bf16.mxu1 %v9727_v16  ;;  %v1344_v59 = vld [vmem:[#allocation7 + $0x410] sm:$0xff]  ;;  %v9559_v16 = vcombine.high %v1216_v5, %v1220_v7  ;;  %v9558_v24 = vcombine.low %v1216_v5, %v1220_v7 }
 0x2fe   :  { %v1348_v9 = vld [vmem:[#allocation7 + $0x430] sm:$0xff] }
 0x2ff   :  { %8061 = vmatpush1.bf16.msra.mxu0 %v9598_v27  ;;  %v9687_v17 = vcombine.high %v1344_v59, %v1348_v9  ;;  %v1340_v18 = vld [vmem:[#allocation7 + $0x3f0] sm:$0xff]  ;;  %v9686_v27 = vcombine.low %v1344_v59, %v1348_v9 }
 0x300   :  { %8102 = vmatpush1.bf16.msra.mxu1 %v9726_v31  ;;  %8062 = vmatprep.subr.bf16.mxu0 %v9591_v34  ;;  %v9679_v28 = vcombine.high %v1336_v6, %v1340_v18  ;;  %v9807_v31 = vcombine.high %v1464_v19, %v1468_v20  ;;  %v1328_v34 = vld [vmem:[#allocation7 + $0x390] sm:$0xff]  ;;  %v9678_v38 = vcombine.low %v1336_v6, %v1340_v18 }
 0x301   :  { %8103 = vmatprep.subr.bf16.mxu1 %v9719_v36  ;;  %v1332_v35 = vld [vmem:[#allocation7 + $0x3b0] sm:$0xff] }
 0x302   :  { %v1456_v36 = vld [vmem:[#allocation7 + $0x790] sm:$0xff]  ;;  %v9671_v40 = vcombine.high %v1328_v34, %v1332_v35  ;;  %v9670_v48 = vcombine.low %v1328_v34, %v1332_v35 }
 0x303   :  { %8063 = vmatpush1.bf16.msra.mxu0 %v9590_v43  ;;  %v1460_v12 = vld [vmem:[#allocation7 + $0x7b0] sm:$0xff] }
 0x304   :  { %8104 = vmatpush1.bf16.msra.mxu1 %v9718_v4  ;;  %8064 = vmatprep.subr.bf16.mxu0 %v9583_v0  ;;  %v9799_v43 = vcombine.high %v1456_v36, %v1460_v12  ;;  %v1320_v4 = vld [vmem:[#allocation7 + $0x350] sm:$0xff]  ;;  %v9798_v50 = vcombine.low %v1456_v36, %v1460_v12 }
 0x305   :  { %8105 = vmatprep.subr.bf16.mxu1 %v9711_v47  ;;  %v1324_v0 = vld [vmem:[#allocation7 + $0x370] sm:$0xff] }
 0x306   :  { %v1448_v47 = vld [vmem:[#allocation7 + $0x750] sm:$0xff]  ;;  %v9663_v52 = vcombine.high %v1320_v4, %v1324_v0  ;;  %v9662_v14 = vcombine.low %v1320_v4, %v1324_v0 }
 0x307   :  { %8065 = vmatpush1.bf16.msra.mxu0 %v9582_v49  ;;  %v1452_v8 = vld [vmem:[#allocation7 + $0x770] sm:$0xff] }
 0x308   :  { %8106 = vmatpush1.bf16.msra.mxu1 %v9710_v11  ;;  %8066 = vmatprep.subr.bf16.mxu0 %v9575_v55  ;;  %v9791_v49 = vcombine.high %v1448_v47, %v1452_v8  ;;  %v1312_v11 = vld [vmem:[#allocation7 + $0x310] sm:$0xff]  ;;  %v9790_v60 = vcombine.low %v1448_v47, %v1452_v8 }
 0x309   :  { %8107 = vmatprep.subr.bf16.mxu1 %v9703_v57  ;;  %v1316_v55 = vld [vmem:[#allocation7 + $0x330] sm:$0xff] }
 0x30a   :  { %v1440_v57 = vld [vmem:[#allocation7 + $0x710] sm:$0xff]  ;;  %v9655_v54 = vcombine.high %v1312_v11, %v1316_v55  ;;  %v9654_v7 = vcombine.low %v1312_v11, %v1316_v55 }
 0x30b   :  { %8067 = vmatpush1.bf16.msra.mxu0 %v9574_v33  ;;  %v1444_v51 = vld [vmem:[#allocation7 + $0x730] sm:$0xff] }
 0x30c   :  { %8108 = vmatpush1.bf16.msra.mxu1 %v9702_v2  ;;  %8068 = vmatprep.subr.bf16.mxu0 %v9567_v58  ;;  %v9783_v33 = vcombine.high %v1440_v57, %v1444_v51  ;;  %v1304_v2 = vld [vmem:[#allocation7 + $0x2d0] sm:$0xff]  ;;  %v9782_v59 = vcombine.low %v1440_v57, %v1444_v51 }
 0x30d   :  { %8109 = vmatprep.subr.bf16.mxu1 %v9695_v29  ;;  %v1308_v58 = vld [vmem:[#allocation7 + $0x2f0] sm:$0xff] }
 0x30e   :  { %v1432_v29 = vld [vmem:[#allocation7 + $0x6d0] sm:$0xff]  ;;  %v9647_v9 = vcombine.high %v1304_v2, %v1308_v58  ;;  %v9646_v18 = vcombine.low %v1304_v2, %v1308_v58 }
 0x30f   :  { %8069 = vmatpush1.bf16.msra.mxu0 %v9566_v1  ;;  %v1436_v5 = vld [vmem:[#allocation7 + $0x6f0] sm:$0xff] }
 0x310   :  { %8110 = vmatpush1.bf16.msra.mxu1 %v9694_v15  ;;  %8070 = vmatprep.subr.bf16.mxu0 %v9559_v16  ;;  %v9775_v1 = vcombine.high %v1432_v29, %v1436_v5  ;;  %v1296_v15 = vld [vmem:[#allocation7 + $0x290] sm:$0xff]  ;;  %v9774_v19 = vcombine.low %v1432_v29, %v1436_v5 }
 0x311   :  { %8111 = vmatprep.subr.bf16.mxu1 %v9687_v17  ;;  %v1300_v16 = vld [vmem:[#allocation7 + $0x2b0] sm:$0xff] }
 0x312   :  { %v1424_v17 = vld [vmem:[#allocation7 + $0x690] sm:$0xff]  ;;  %v9639_v20 = vcombine.high %v1296_v15, %v1300_v16  ;;  %v9638_v35 = vcombine.low %v1296_v15, %v1300_v16 }
 0x313   :  { %8071 = vmatpush1.bf16.msra.mxu0 %v9558_v24  ;;  %v1428_v6 = vld [vmem:[#allocation7 + $0x6b0] sm:$0xff] }
 0x314   :  { %8112 = vmatpush1.bf16.msra.mxu1 %v9686_v27  ;;  %8072 = vmatprep.subr.bf16.mxu0 %v9679_v28  ;;  %v9767_v24 = vcombine.high %v1424_v17, %v1428_v6  ;;  %v1288_v27 = vld [vmem:[#allocation7 + $0x250] sm:$0xff]  ;;  %v9766_v36 = vcombine.low %v1424_v17, %v1428_v6 }
 0x315   :  { %8113 = vmatprep.subr.bf16.mxu1 %v9807_v31  ;;  %v1292_v28 = vld [vmem:[#allocation7 + $0x270] sm:$0xff] }
 0x316   :  { %v1416_v31 = vld [vmem:[#allocation7 + $0x650] sm:$0xff]  ;;  %v9631_v12 = vcombine.high %v1288_v27, %v1292_v28  ;;  %v9630_v0 = vcombine.low %v1288_v27, %v1292_v28 }
 0x317   :  { %8073 = vmatpush2.bf16.msra.mxu0 %v9678_v38  ;;  %v1420_v34 = vld [vmem:[#allocation7 + $0x670] sm:$0xff] }
 0x318   :  { %8114 = vmatpush2.bf16.msra.mxu1 %v9806_v39  ;;  %8074 = vmatprep.subr.bf16.mxu0 %v9671_v40  ;;  %v9759_v38 = vcombine.high %v1416_v31, %v1420_v34  ;;  %v1280_v39 = vld [vmem:[#allocation7 + $0x210] sm:$0xff]  ;;  %v9758_v47 = vcombine.low %v1416_v31, %v1420_v34 }
 0x319   :  { %8115 = vmatprep.subr.bf16.mxu1 %v9799_v43  ;;  %v1284_v40 = vld [vmem:[#allocation7 + $0x230] sm:$0xff] }
 0x31a   :  { %v1408_v43 = vld [vmem:[#allocation7 + $0x610] sm:$0xff]  ;;  %v9623_v8 = vcombine.high %v1280_v39, %v1284_v40  ;;  %v9622_v55 = vcombine.low %v1280_v39, %v1284_v40 }
 0x31b   :  { %8075 = vmatpush2.bf16.msra.mxu0 %v9670_v48  ;;  %v1412_v4 = vld [vmem:[#allocation7 + $0x630] sm:$0xff] }
 0x31c   :  { %8116 = vmatpush2.bf16.msra.mxu1 %v9798_v50  ;;  %8076 = vmatprep.subr.bf16.mxu0 %v9663_v52  ;;  %v9751_v48 = vcombine.high %v1408_v43, %v1412_v4  ;;  %v1528_v50 = vld [vmem:[#allocation7 + $0x9d0] sm:$0xff]  ;;  %v9750_v57 = vcombine.low %v1408_v43, %v1412_v4 }
 0x31d   :  { %8117 = vmatprep.subr.bf16.mxu1 %v9791_v49  ;;  %v1532_v52 = vld [vmem:[#allocation7 + $0x9f0] sm:$0xff] }
 0x31e   :  { %v1656_v49 = vld [vmem:[#allocation7 + $0xdd0] sm:$0xff]  ;;  %v9871_v51 = vcombine.high %v1528_v50, %v1532_v52 }
 0x31f   :  { %8077 = vmatpush2.bf16.msra.mxu0 %v9662_v14  ;;  %v1660_v11 = vld [vmem:[#allocation7 + $0xdf0] sm:$0xff] }
 0x320   :  { %8118 = vmatpush2.bf16.msra.mxu1 %v9790_v60  ;;  %8078 = vmatprep.subr.bf16.mxu0 %v9655_v54  ;;  %v9999_v14 = vcombine.high %v1656_v49, %v1660_v11  ;;  %v1520_v60 = vld [vmem:[#allocation7 + $0x990] sm:$0xff]  ;;  %v9998_v29 = vcombine.low %v1656_v49, %v1660_v11 }
 0x321   :  { %8119 = vmatprep.subr.bf16.mxu1 %v9783_v33  ;;  %v1524_v54 = vld [vmem:[#allocation7 + $0x9b0] sm:$0xff]  ;;  %v9870_v33 = vcombine.low %v1528_v50, %v1532_v52 }
 0x322   :  { %v1648_v2 = vld [vmem:[#allocation7 + $0xd90] sm:$0xff]  ;;  %v9863_v5 = vcombine.high %v1520_v60, %v1524_v54 }
 0x323   :  { %8079 = vmatpush2.bf16.msra.mxu0 %v9654_v7  ;;  %v1652_v58 = vld [vmem:[#allocation7 + $0xdb0] sm:$0xff] }
 0x324   :  { %8120 = vmatpush2.bf16.msra.mxu1 %v9782_v59  ;;  %8080 = vmatprep.subr.bf16.mxu0 %v9647_v9  ;;  %v1512_v7 = vld [vmem:[#allocation7 + $0x950] sm:$0xff] }
 0x325   :  { %8121 = vmatprep.subr.bf16.mxu1 %v9775_v1  ;;  %v1516_v59 = vld [vmem:[#allocation7 + $0x970] sm:$0xff]  ;;  %v9991_v1 = vcombine.high %v1648_v2, %v1652_v58 }
 0x326   :  { %v1640_v15 = vld [vmem:[#allocation7 + $0xd50] sm:$0xff]  ;;  %v9854_v43 = vcombine.low %v1512_v7, %v1516_v59 }
 0x327   :  { %8081 = vmatpush2.bf16.msra.mxu0 %v9646_v18  ;;  %v1644_v16 = vld [vmem:[#allocation7 + $0xd70] sm:$0xff]  ;;  %v9862_v18 = vcombine.low %v1520_v60, %v1524_v54 }
 0x328   :  { %8122 = vmatpush2.bf16.msra.mxu1 %v9774_v19  ;;  %8082 = vmatprep.subr.bf16.mxu0 %v9639_v20  ;;  %v9990_v20 = vcombine.low %v1648_v2, %v1652_v58  ;;  %v1504_v34 = vld [vmem:[#allocation7 + $0x910] sm:$0xff] }
 0x329   :  { %8123 = vmatprep.subr.bf16.mxu1 %v9767_v24  ;;  %v9855_v24 = vcombine.high %v1512_v7, %v1516_v59  ;;  %v1500_v50 = vld [vmem:[#allocation7 + $0x8f0] sm:$0xff] }
 0x32a   :  { %v1624_v52 = vld [vmem:[#allocation7 + $0xcd0] sm:$0xff] }
 0x32b   :  { %8083 = vmatpush2.bf16.msra.mxu0 %v9638_v35  ;;  %v1508_v35 = vld [vmem:[#allocation7 + $0x930] sm:$0xff] }
 0x32c   :  { %8124 = vmatpush2.bf16.msra.mxu1 %v9766_v36  ;;  %8084 = vmatprep.subr.bf16.mxu0 %v9631_v12  ;;  %v1632_v12 = vld [vmem:[#allocation7 + $0xd10] sm:$0xff]  ;;  %v9846_v11 = vcombine.low %v1504_v34, %v1508_v35 }
 0x32d   :  { %8125 = vmatprep.subr.bf16.mxu1 %v9759_v38  ;;  %v1636_v38 = vld [vmem:[#allocation7 + $0xd30] sm:$0xff] }
 0x32e   :  { %v1628_v49 = vld [vmem:[#allocation7 + $0xcf0] sm:$0xff] }
 0x32f   :  { %8085 = vmatpush2.bf16.msra.mxu0 %v9630_v0  ;;  %v9982_v0 = vcombine.low %v1640_v15, %v1644_v16  ;;  %v1492_v60 = vld [vmem:[#allocation7 + $0x8b0] sm:$0xff]  ;;  %v9966_v58 = vcombine.low %v1624_v52, %v1628_v49 }
 0x330   :  { %8126 = vmatpush2.bf16.msra.mxu1 %v9758_v47  ;;  %8086 = vmatprep.subr.bf16.mxu0 %v9623_v8  ;;  %v9847_v47 = vcombine.high %v1504_v34, %v1508_v35  ;;  %v9975_v8 = vcombine.high %v1632_v12, %v1636_v38  ;;  %v1616_v54 = vld [vmem:[#allocation7 + $0xc90] sm:$0xff] }
 0x331   :  { %8127 = vmatprep.subr.bf16.mxu1 %v9751_v48  ;;  %v1496_v48 = vld [vmem:[#allocation7 + $0x8d0] sm:$0xff] }
 0x332   :  { %v9838_v2 = vcombine.low %v1496_v48, %v1500_v50  ;;  %v1480_v7 = vld [vmem:[#allocation7 + $0x850] sm:$0xff] }
 0x333   :  { %8087 = vmatpush2.bf16.msra.mxu0 %v9622_v55  ;;  %v9974_v55 = vcombine.low %v1632_v12, %v1636_v38  ;;  %v1484_v59 = vld [vmem:[#allocation7 + $0x870] sm:$0xff] }
 0x334   :  { %8128 = vmatpush2.bf16.msra.mxu1 %v9750_v57  ;;  %8138 = vmatprep.subr.bf16.mxu0 %v9871_v51  ;;  %v9839_v57 = vcombine.high %v1496_v48, %v1500_v50  ;;  %v9967_v51 = vcombine.high %v1624_v52, %v1628_v49  ;;  %v1592_v35 = vld [vmem:[#allocation7 + $0xbd0] sm:$0xff] }
 0x335   :  { %8179 = vmatprep.subr.bf16.mxu1 %v9999_v14  ;;  %v1488_v14 = vld [vmem:[#allocation7 + $0x890] sm:$0xff] }
 0x336   :  { %v7844_v9 = vpop.f32.mrf.mxu0  ;;  %8089 = vmatmul.mubr.bf16.vlgmr.msra.gmra.mxu0 %v11052_v25  ;;  %v1720_v12 = vld [vmem:[#allocation7 + $0xfd0] sm:$0xff] }
 0x337   :  { %v7845_v17 = vadd.f32 %v7844_v9, %v11173_v13  ;;  %v7885_v6 = vpop.f32.mrf.mxu1  ;;  %8130 = vmatmul.mubr.bf16.vlgmr.msra.gmra.mxu1 %v11048_v21  ;;  %8139 = vmatpush1.bf16.msra.mxu0 %v9870_v33  ;;  %v9983_v13 = vcombine.high %v1640_v15, %v1644_v16  ;;  %v1620_v33 = vld [vmem:[#allocation7 + $0xcb0] sm:$0xff]  ;;  %v9830_v15 = vcombine.low %v1488_v14, %v1492_v60 }
 0x338   :  { %8170 = vmatprep.mubr.bf16.mxu0 %v11064_v37  ;;  %8180 = vmatpush1.bf16.msra.mxu1 %v9998_v29  ;;  %v7846_v19 = vpop.f32.mrf.mxu0  ;;  %v9831_v29 = vcombine.high %v1488_v14, %v1492_v60  ;;  %v1608_v9 = vld [vmem:[#allocation7 + $0xc50] sm:$0xff]  ;;  %v9958_v16 = vcombine.low %v1616_v54, %v1620_v33 }
 0x339   :  { %v11182_v27 = vadd.f32 %v7885_v6, %v7845_v17  ;;  %8211 = vmatprep.mubr.bf16.mxu1 %v11066_v42  ;;  %v7847_v28 = vadd.f32 %v7846_v19, %v11176_v23  ;;  %v7887_v31 = vpop.f32.mrf.mxu1  ;;  %8140 = vmatprep.subr.bf16.mxu0 %v9863_v5  ;;  %v9959_v5 = vcombine.high %v1616_v54, %v1620_v33  ;;  %v1476_v19 = vld [vmem:[#allocation7 + $0x830] sm:$0xff] }
 0x33a   :  { %v7848_v36 = vpop.f32.mrf.mxu0  ;;  %8181 = vmatprep.subr.bf16.mxu1 %v9991_v1  ;;  %v1612_v1 = vld [vmem:[#allocation7 + $0xc70] sm:$0xff]  ;;  %v9823_v17 = vcombine.high %v1480_v7, %v1484_v59 }
 0x33b   :  { %v11186_v39 = vadd.f32 %v7887_v31, %v7847_v28  ;;  %v7889_v40 = vpop.f32.mrf.mxu1  ;;  %8141 = vmatpush1.bf16.msra.mxu0 %v9862_v18  ;;  %v9951_v6 = vcombine.high %v1608_v9, %v1612_v1  ;;  %v1472_v18 = vld [vmem:[#allocation7 + $0x810] sm:$0xff]  ;;  %v9822_v28 = vcombine.low %v1480_v7, %v1484_v59  ;;  %v9950_v31 = vcombine.low %v1608_v9, %v1612_v1 }
 0x33c   :  { %8182 = vmatpush1.bf16.msra.mxu1 %v9990_v20  ;;  %v7849_v4 = vpop.f32.mrf.mxu0  ;;  %8142 = vmatprep.subr.bf16.mxu0 %v9855_v24  ;;  %v1600_v20 = vld [vmem:[#allocation7 + $0xc10] sm:$0xff]  ;;  %v9814_v40 = vcombine.low %v1472_v18, %v1476_v19 }
 0x33d   :  { %v7890_v23 = vpop.f32.mrf.mxu1  ;;  %8183 = vmatprep.subr.bf16.mxu1 %v9983_v13  ;;  %v1604_v24 = vld [vmem:[#allocation7 + $0xc30] sm:$0xff]  ;;  %v9815_v13 = vcombine.high %v1472_v18, %v1476_v19 }
 0x33e   :  { %v9943_v34 = vcombine.high %v1600_v20, %v1604_v24  ;;  %v1596_v36 = vld [vmem:[#allocation7 + $0xbf0] sm:$0xff] }
 0x33f   :  { %8143 = vmatpush1.bf16.msra.mxu0 %v9854_v43  ;;  %v1724_v38 = vld [vmem:[#allocation7 + $0xff0] sm:$0xff]  ;;  %v9942_v43 = vcombine.low %v1600_v20, %v1604_v24  ;;  %v9935_v4 = vcombine.high %v1592_v35, %v1596_v36  ;;  %v9934_v50 = vcombine.low %v1592_v35, %v1596_v36 }
 0x340   :  { %8184 = vmatpush1.bf16.msra.mxu1 %v9982_v0  ;;  %8144 = vmatprep.subr.bf16.mxu0 %v9847_v47  ;;  %v10063_v0 = vcombine.high %v1720_v12, %v1724_v38  ;;  %v1584_v47 = vld [vmem:[#allocation7 + $0xb90] sm:$0xff]  ;;  %v10062_v52 = vcombine.low %v1720_v12, %v1724_v38 }
 0x341   :  { %8185 = vmatprep.subr.bf16.mxu1 %v9975_v8  ;;  %v1588_v23 = vld [vmem:[#allocation7 + $0xbb0] sm:$0xff] }
 0x342   :  { %v1712_v8 = vld [vmem:[#allocation7 + $0xf90] sm:$0xff]  ;;  %v9927_v49 = vcombine.high %v1584_v47, %v1588_v23  ;;  %v9926_v60 = vcombine.low %v1584_v47, %v1588_v23 }
 0x343   :  { %8145 = vmatpush1.bf16.msra.mxu0 %v9846_v11  ;;  %v1716_v48 = vld [vmem:[#allocation7 + $0xfb0] sm:$0xff] }
 0x344   :  { %8186 = vmatpush1.bf16.msra.mxu1 %v9974_v55  ;;  %8146 = vmatprep.subr.bf16.mxu0 %v9839_v57  ;;  %v10055_v11 = vcombine.high %v1712_v8, %v1716_v48  ;;  %v1576_v55 = vld [vmem:[#allocation7 + $0xb50] sm:$0xff]  ;;  %v10054_v54 = vcombine.low %v1712_v8, %v1716_v48 }
 0x345   :  { %8187 = vmatprep.subr.bf16.mxu1 %v9967_v51  ;;  %v1580_v57 = vld [vmem:[#allocation7 + $0xb70] sm:$0xff] }
 0x346   :  { %v1704_v51 = vld [vmem:[#allocation7 + $0xf50] sm:$0xff]  ;;  %v9919_v33 = vcombine.high %v1576_v55, %v1580_v57  ;;  %v9918_v59 = vcombine.low %v1576_v55, %v1580_v57 }
 0x347   :  { %8147 = vmatpush1.bf16.msra.mxu0 %v9838_v2  ;;  %v1708_v14 = vld [vmem:[#allocation7 + $0xf70] sm:$0xff] }
 0x348   :  { %8188 = vmatpush1.bf16.msra.mxu1 %v9966_v58  ;;  %8148 = vmatprep.subr.bf16.mxu0 %v9831_v29  ;;  %v10047_v2 = vcombine.high %v1704_v51, %v1708_v14  ;;  %v1568_v58 = vld [vmem:[#allocation7 + $0xb10] sm:$0xff]  ;;  %v10046_v9 = vcombine.low %v1704_v51, %v1708_v14 }
 0x349   :  { %8189 = vmatprep.subr.bf16.mxu1 %v9959_v5  ;;  %v1572_v29 = vld [vmem:[#allocation7 + $0xb30] sm:$0xff] }
 0x34a   :  { %v1696_v5 = vld [vmem:[#allocation7 + $0xf10] sm:$0xff]  ;;  %v9911_v1 = vcombine.high %v1568_v58, %v1572_v29  ;;  %v9910_v19 = vcombine.low %v1568_v58, %v1572_v29 }
 0x34b   :  { %8149 = vmatpush1.bf16.msra.mxu0 %v9830_v15  ;;  %v1700_v7 = vld [vmem:[#allocation7 + $0xf30] sm:$0xff] }
 0x34c   :  { %8190 = vmatpush1.bf16.msra.mxu1 %v9958_v16  ;;  %8150 = vmatprep.subr.bf16.mxu0 %v9823_v17  ;;  %v10039_v15 = vcombine.high %v1696_v5, %v1700_v7  ;;  %v1560_v16 = vld [vmem:[#allocation7 + $0xad0] sm:$0xff]  ;;  %v10038_v20 = vcombine.low %v1696_v5, %v1700_v7 }
 0x34d   :  { %8191 = vmatprep.subr.bf16.mxu1 %v9951_v6  ;;  %v1564_v17 = vld [vmem:[#allocation7 + $0xaf0] sm:$0xff] }
 0x34e   :  { %v1688_v6 = vld [vmem:[#allocation7 + $0xed0] sm:$0xff]  ;;  %v9903_v24 = vcombine.high %v1560_v16, %v1564_v17  ;;  %v9902_v36 = vcombine.low %v1560_v16, %v1564_v17 }
 0x34f   :  { %8151 = vmatpush1.bf16.msra.mxu0 %v9822_v28  ;;  %v1692_v18 = vld [vmem:[#allocation7 + $0xef0] sm:$0xff] }
 0x350   :  { %8192 = vmatpush1.bf16.msra.mxu1 %v9950_v31  ;;  %8152 = vmatprep.subr.bf16.mxu0 %v9815_v13  ;;  %v10031_v28 = vcombine.high %v1688_v6, %v1692_v18  ;;  %v1552_v31 = vld [vmem:[#allocation7 + $0xa90] sm:$0xff]  ;;  %v10030_v12 = vcombine.low %v1688_v6, %v1692_v18 }
 0x351   :  { %8193 = vmatprep.subr.bf16.mxu1 %v9943_v34  ;;  %v1556_v13 = vld [vmem:[#allocation7 + $0xab0] sm:$0xff] }
 0x352   :  { %v1680_v34 = vld [vmem:[#allocation7 + $0xe90] sm:$0xff]  ;;  %v9895_v38 = vcombine.high %v1552_v31, %v1556_v13  ;;  %v9894_v23 = vcombine.low %v1552_v31, %v1556_v13 }
 0x353   :  { %8153 = vmatpush1.bf16.msra.mxu0 %v9814_v40  ;;  %v1684_v35 = vld [vmem:[#allocation7 + $0xeb0] sm:$0xff] }
 0x354   :  { %8194 = vmatpush1.bf16.msra.mxu1 %v9942_v43  ;;  %8154 = vmatprep.subr.bf16.mxu0 %v9935_v4  ;;  %v10023_v40 = vcombine.high %v1680_v34, %v1684_v35  ;;  %v1544_v43 = vld [vmem:[#allocation7 + $0xa50] sm:$0xff]  ;;  %v10022_v8 = vcombine.low %v1680_v34, %v1684_v35 }
 0x355   :  { %8195 = vmatprep.subr.bf16.mxu1 %v10063_v0  ;;  %v1548_v4 = vld [vmem:[#allocation7 + $0xa70] sm:$0xff] }
 0x356   :  { %v1672_v0 = vld [vmem:[#allocation7 + $0xe50] sm:$0xff]  ;;  %v9887_v48 = vcombine.high %v1544_v43, %v1548_v4  ;;  %v9886_v57 = vcombine.low %v1544_v43, %v1548_v4 }
 0x357   :  { %8155 = vmatpush2.bf16.msra.mxu0 %v9934_v50  ;;  %v1676_v47 = vld [vmem:[#allocation7 + $0xe70] sm:$0xff] }
 0x358   :  { %8196 = vmatpush2.bf16.msra.mxu1 %v10062_v52  ;;  %8156 = vmatprep.subr.bf16.mxu0 %v9927_v49  ;;  %v10015_v50 = vcombine.high %v1672_v0, %v1676_v47  ;;  %v1536_v52 = vld [vmem:[#allocation7 + $0xa10] sm:$0xff]  ;;  %v10014_v51 = vcombine.low %v1672_v0, %v1676_v47 }
 0x359   :  { %8197 = vmatprep.subr.bf16.mxu1 %v10055_v11  ;;  %v1540_v49 = vld [vmem:[#allocation7 + $0xa30] sm:$0xff] }
 0x35a   :  { %v1664_v11 = vld [vmem:[#allocation7 + $0xe10] sm:$0xff]  ;;  %v9879_v14 = vcombine.high %v1536_v52, %v1540_v49  ;;  %v9878_v29 = vcombine.low %v1536_v52, %v1540_v49 }
 0x35b   :  { %8157 = vmatpush2.bf16.msra.mxu0 %v9926_v60  ;;  %v1668_v55 = vld [vmem:[#allocation7 + $0xe30] sm:$0xff] }
 0x35c   :  { %8198 = vmatpush2.bf16.msra.mxu1 %v10054_v54  ;;  %8158 = vmatprep.subr.bf16.mxu0 %v9919_v33  ;;  %v10007_v60 = vcombine.high %v1664_v11, %v1668_v55  ;;  %v1784_v54 = vld [vmem:[#allocation7 + $0x11d0] sm:$0xff]  ;;  %v10006_v5 = vcombine.low %v1664_v11, %v1668_v55 }
 0x35d   :  { %8199 = vmatprep.subr.bf16.mxu1 %v10047_v2  ;;  %v1788_v33 = vld [vmem:[#allocation7 + $0x11f0] sm:$0xff] }
 0x35e   :  { %v1912_v2 = vld [vmem:[#allocation7 + $0x15d0] sm:$0xff]  ;;  %v10127_v7 = vcombine.high %v1784_v54, %v1788_v33 }
 0x35f   :  { %8159 = vmatpush2.bf16.msra.mxu0 %v9918_v59  ;;  %v1916_v58 = vld [vmem:[#allocation7 + $0x15f0] sm:$0xff] }
 0x360   :  { %8200 = vmatpush2.bf16.msra.mxu1 %v10046_v9  ;;  %8160 = vmatprep.subr.bf16.mxu0 %v9911_v1  ;;  %v10255_v59 = vcombine.high %v1912_v2, %v1916_v58  ;;  %v1776_v9 = vld [vmem:[#allocation7 + $0x1190] sm:$0xff]  ;;  %v10254_v6 = vcombine.low %v1912_v2, %v1916_v58 }
 0x361   :  { %8201 = vmatprep.subr.bf16.mxu1 %v10039_v15  ;;  %v1780_v1 = vld [vmem:[#allocation7 + $0x11b0] sm:$0xff]  ;;  %v10126_v15 = vcombine.low %v1784_v54, %v1788_v33 }
 0x362   :  { %v1904_v16 = vld [vmem:[#allocation7 + $0x1590] sm:$0xff]  ;;  %v10119_v18 = vcombine.high %v1776_v9, %v1780_v1 }
 0x363   :  { %8161 = vmatpush2.bf16.msra.mxu0 %v9910_v19  ;;  %v1908_v17 = vld [vmem:[#allocation7 + $0x15b0] sm:$0xff] }
 0x364   :  { %8202 = vmatpush2.bf16.msra.mxu1 %v10038_v20  ;;  %8162 = vmatprep.subr.bf16.mxu0 %v9903_v24  ;;  %v1768_v19 = vld [vmem:[#allocation7 + $0x1150] sm:$0xff] }
 0x365   :  { %8203 = vmatprep.subr.bf16.mxu1 %v10031_v28  ;;  %v1772_v20 = vld [vmem:[#allocation7 + $0x1170] sm:$0xff]  ;;  %v10247_v28 = vcombine.high %v1904_v16, %v1908_v17 }
 0x366   :  { %v1896_v31 = vld [vmem:[#allocation7 + $0x1550] sm:$0xff]  ;;  %v10110_v11 = vcombine.low %v1768_v19, %v1772_v20 }
 0x367   :  { %8163 = vmatpush2.bf16.msra.mxu0 %v9902_v36  ;;  %v1900_v13 = vld [vmem:[#allocation7 + $0x1570] sm:$0xff]  ;;  %v10118_v36 = vcombine.low %v1776_v9, %v1780_v1 }
 0x368   :  { %8204 = vmatpush2.bf16.msra.mxu1 %v10030_v12  ;;  %8164 = vmatprep.subr.bf16.mxu0 %v9895_v38  ;;  %v10246_v38 = vcombine.low %v1904_v16, %v1908_v17  ;;  %v1760_v47 = vld [vmem:[#allocation7 + $0x1110] sm:$0xff] }
 0x369   :  { %8205 = vmatprep.subr.bf16.mxu1 %v10023_v40  ;;  %v10111_v40 = vcombine.high %v1768_v19, %v1772_v20  ;;  %v1756_v54 = vld [vmem:[#allocation7 + $0x10f0] sm:$0xff] }
 0x36a   :  { %v1880_v33 = vld [vmem:[#allocation7 + $0x14d0] sm:$0xff] }
 0x36b   :  { %8165 = vmatpush2.bf16.msra.mxu0 %v9894_v23  ;;  %v1764_v23 = vld [vmem:[#allocation7 + $0x1130] sm:$0xff] }
 0x36c   :  { %8206 = vmatpush2.bf16.msra.mxu1 %v10022_v8  ;;  %8166 = vmatprep.subr.bf16.mxu0 %v9887_v48  ;;  %v1888_v48 = vld [vmem:[#allocation7 + $0x1510] sm:$0xff]  ;;  %v10102_v58 = vcombine.low %v1760_v47, %v1764_v23 }
 0x36d   :  { %8207 = vmatprep.subr.bf16.mxu1 %v10015_v50  ;;  %v1892_v50 = vld [vmem:[#allocation7 + $0x1530] sm:$0xff] }
 0x36e   :  { %v1884_v2 = vld [vmem:[#allocation7 + $0x14f0] sm:$0xff] }
 0x36f   :  { %8167 = vmatpush2.bf16.msra.mxu0 %v9886_v57  ;;  %v10238_v57 = vcombine.low %v1896_v31, %v1900_v13  ;;  %v1748_v9 = vld [vmem:[#allocation7 + $0x10b0] sm:$0xff]  ;;  %v10222_v17 = vcombine.low %v1880_v33, %v1884_v2 }
 0x370   :  { %8208 = vmatpush2.bf16.msra.mxu1 %v10014_v51  ;;  %8168 = vmatprep.subr.bf16.mxu0 %v9879_v14  ;;  %v10103_v51 = vcombine.high %v1760_v47, %v1764_v23  ;;  %v10231_v14 = vcombine.high %v1888_v48, %v1892_v50  ;;  %v1872_v1 = vld [vmem:[#allocation7 + $0x1490] sm:$0xff] }
 0x371   :  { %8209 = vmatprep.subr.bf16.mxu1 %v10007_v60  ;;  %v1752_v60 = vld [vmem:[#allocation7 + $0x10d0] sm:$0xff] }
 0x372   :  { %v10094_v16 = vcombine.low %v1752_v60, %v1756_v54  ;;  %v1736_v19 = vld [vmem:[#allocation7 + $0x1050] sm:$0xff] }
 0x373   :  { %8169 = vmatpush2.bf16.msra.mxu0 %v9878_v29  ;;  %v10230_v29 = vcombine.low %v1888_v48, %v1892_v50  ;;  %v1740_v20 = vld [vmem:[#allocation7 + $0x1070] sm:$0xff] }
 0x374   :  { %8210 = vmatpush2.bf16.msra.mxu1 %v10006_v5  ;;  %8220 = vmatprep.subr.bf16.mxu0 %v10127_v7  ;;  %v10095_v5 = vcombine.high %v1752_v60, %v1756_v54  ;;  %v10223_v7 = vcombine.high %v1880_v33, %v1884_v2  ;;  %v1848_v23 = vld [vmem:[#allocation7 + $0x13d0] sm:$0xff] }
 0x375   :  { %8261 = vmatprep.subr.bf16.mxu1 %v10255_v59  ;;  %v1744_v59 = vld [vmem:[#allocation7 + $0x1090] sm:$0xff] }
 0x376   :  { %v7926_v24 = vpop.f32.mrf.mxu0  ;;  %8171 = vmatmul.mubr.bf16.vlgmr.msra.gmra.mxu0 %v11080_v56  ;;  %v1976_v48 = vld [vmem:[#allocation7 + $0x17d0] sm:$0xff] }
 0x377   :  { %v7927_v34 = vadd.f32 %v7926_v24, %v11182_v27  ;;  %v7967_v35 = vpop.f32.mrf.mxu1  ;;  %8212 = vmatmul.mubr.bf16.vlgmr.msra.gmra.mxu1 %v11076_v53  ;;  %8221 = vmatpush1.bf16.msra.mxu0 %v10126_v15  ;;  %v10239_v27 = vcombine.high %v1896_v31, %v1900_v13  ;;  %v1876_v15 = vld [vmem:[#allocation7 + $0x14b0] sm:$0xff]  ;;  %v10086_v31 = vcombine.low %v1744_v59, %v1748_v9 }
 0x378   :  { %8252 = vmatprep.mubr.bf16.mxu0 %v11082_v63  ;;  %8262 = vmatpush1.bf16.msra.mxu1 %v10254_v6  ;;  %v7928_v12 = vpop.f32.mrf.mxu0  ;;  %v10087_v6 = vcombine.high %v1744_v59, %v1748_v9  ;;  %v1864_v24 = vld [vmem:[#allocation7 + $0x1450] sm:$0xff]  ;;  %v10214_v13 = vcombine.low %v1872_v1, %v1876_v15 }
 0x379   :  { %v11192_v43 = vadd.f32 %v7967_v35, %v7927_v34  ;;  %8293 = vmatprep.mubr.bf16.mxu1 %v11085_v3  ;;  %v7929_v4 = vadd.f32 %v7928_v12, %v11186_v39  ;;  %v7969_v0 = vpop.f32.mrf.mxu1  ;;  %8222 = vmatprep.subr.bf16.mxu0 %v10119_v18  ;;  %v10215_v18 = vcombine.high %v1872_v1, %v1876_v15  ;;  %v1732_v12 = vld [vmem:[#allocation7 + $0x1030] sm:$0xff] }
 0x37a   :  { %v7930_v8 = vpop.f32.mrf.mxu0  ;;  %8263 = vmatprep.subr.bf16.mxu1 %v10247_v28  ;;  %v1868_v28 = vld [vmem:[#allocation7 + $0x1470] sm:$0xff]  ;;  %v10079_v34 = vcombine.high %v1736_v19, %v1740_v20 }
 0x37b   :  { %v11196_v52 = vadd.f32 %v7969_v0, %v7929_v4  ;;  %v7971_v49 = vpop.f32.mrf.mxu1  ;;  %8223 = vmatpush1.bf16.msra.mxu0 %v10118_v36  ;;  %v10207_v35 = vcombine.high %v1864_v24, %v1868_v28  ;;  %v1728_v36 = vld [vmem:[#allocation7 + $0x1010] sm:$0xff]  ;;  %v10078_v4 = vcombine.low %v1736_v19, %v1740_v20  ;;  %v10206_v0 = vcombine.low %v1864_v24, %v1868_v28 }
 0x37c   :  { %8264 = vmatpush1.bf16.msra.mxu1 %v10246_v38  ;;  %v7931_v55 = vpop.f32.mrf.mxu0  ;;  %8224 = vmatprep.subr.bf16.mxu0 %v10111_v40  ;;  %v1856_v38 = vld [vmem:[#allocation7 + $0x1410] sm:$0xff]  ;;  %v10070_v49 = vcombine.low %v1728_v36, %v1732_v12 }
 0x37d   :  { %v7972_v39 = vpop.f32.mrf.mxu1  ;;  %8265 = vmatprep.subr.bf16.mxu1 %v10239_v27  ;;  %v1860_v40 = vld [vmem:[#allocation7 + $0x1430] sm:$0xff]  ;;  %v10071_v27 = vcombine.high %v1728_v36, %v1732_v12 }
 0x37e   :  { %v10199_v47 = vcombine.high %v1856_v38, %v1860_v40  ;;  %v1852_v8 = vld [vmem:[#allocation7 + $0x13f0] sm:$0xff] }
 0x37f   :  { %8225 = vmatpush1.bf16.msra.mxu0 %v10110_v11  ;;  %v1980_v50 = vld [vmem:[#allocation7 + $0x17f0] sm:$0xff]  ;;  %v10198_v11 = vcombine.low %v1856_v38, %v1860_v40  ;;  %v10191_v55 = vcombine.high %v1848_v23, %v1852_v8  ;;  %v10190_v54 = vcombine.low %v1848_v23, %v1852_v8 }
 0x380   :  { %8266 = vmatpush1.bf16.msra.mxu1 %v10238_v57  ;;  %8226 = vmatprep.subr.bf16.mxu0 %v10103_v51  ;;  %v10319_v57 = vcombine.high %v1976_v48, %v1980_v50  ;;  %v1840_v51 = vld [vmem:[#allocation7 + $0x1390] sm:$0xff]  ;;  %v10318_v33 = vcombine.low %v1976_v48, %v1980_v50 }
 0x381   :  { %8267 = vmatprep.subr.bf16.mxu1 %v10231_v14  ;;  %v1844_v39 = vld [vmem:[#allocation7 + $0x13b0] sm:$0xff] }
 0x382   :  { %v1968_v14 = vld [vmem:[#allocation7 + $0x1790] sm:$0xff]  ;;  %v10183_v2 = vcombine.high %v1840_v51, %v1844_v39  ;;  %v10182_v9 = vcombine.low %v1840_v51, %v1844_v39 }
 0x383   :  { %8227 = vmatpush1.bf16.msra.mxu0 %v10102_v58  ;;  %v1972_v60 = vld [vmem:[#allocation7 + $0x17b0] sm:$0xff] }
 0x384   :  { %8268 = vmatpush1.bf16.msra.mxu1 %v10230_v29  ;;  %8228 = vmatprep.subr.bf16.mxu0 %v10095_v5  ;;  %v10311_v58 = vcombine.high %v1968_v14, %v1972_v60  ;;  %v1832_v29 = vld [vmem:[#allocation7 + $0x1350] sm:$0xff]  ;;  %v10310_v1 = vcombine.low %v1968_v14, %v1972_v60 }
 0x385   :  { %8269 = vmatprep.subr.bf16.mxu1 %v10223_v7  ;;  %v1836_v5 = vld [vmem:[#allocation7 + $0x1370] sm:$0xff] }
 0x386   :  { %v1960_v7 = vld [vmem:[#allocation7 + $0x1750] sm:$0xff]  ;;  %v10175_v15 = vcombine.high %v1832_v29, %v1836_v5  ;;  %v10174_v20 = vcombine.low %v1832_v29, %v1836_v5 }
 0x387   :  { %8229 = vmatpush1.bf16.msra.mxu0 %v10094_v16  ;;  %v1964_v59 = vld [vmem:[#allocation7 + $0x1770] sm:$0xff] }
 0x388   :  { %8270 = vmatpush1.bf16.msra.mxu1 %v10222_v17  ;;  %8230 = vmatprep.subr.bf16.mxu0 %v10087_v6  ;;  %v10303_v16 = vcombine.high %v1960_v7, %v1964_v59  ;;  %v1824_v17 = vld [vmem:[#allocation7 + $0x1310] sm:$0xff]  ;;  %v10302_v24 = vcombine.low %v1960_v7, %v1964_v59 }
 0x389   :  { %8271 = vmatprep.subr.bf16.mxu1 %v10215_v18  ;;  %v1828_v6 = vld [vmem:[#allocation7 + $0x1330] sm:$0xff] }
 0x38a   :  { %v1952_v18 = vld [vmem:[#allocation7 + $0x1710] sm:$0xff]  ;;  %v10167_v28 = vcombine.high %v1824_v17, %v1828_v6  ;;  %v10166_v12 = vcombine.low %v1824_v17, %v1828_v6 }
 0x38b   :  { %8231 = vmatpush1.bf16.msra.mxu0 %v10086_v31  ;;  %v1956_v19 = vld [vmem:[#allocation7 + $0x1730] sm:$0xff] }
 0x38c   :  { %8272 = vmatpush1.bf16.msra.mxu1 %v10214_v13  ;;  %8232 = vmatprep.subr.bf16.mxu0 %v10079_v34  ;;  %v10295_v31 = vcombine.high %v1952_v18, %v1956_v19  ;;  %v1816_v13 = vld [vmem:[#allocation7 + $0x12d0] sm:$0xff]  ;;  %v10294_v38 = vcombine.low %v1952_v18, %v1956_v19 }
 0x38d   :  { %8273 = vmatprep.subr.bf16.mxu1 %v10207_v35  ;;  %v1820_v34 = vld [vmem:[#allocation7 + $0x12f0] sm:$0xff] }
 0x38e   :  { %v1944_v35 = vld [vmem:[#allocation7 + $0x16d0] sm:$0xff]  ;;  %v10159_v40 = vcombine.high %v1816_v13, %v1820_v34  ;;  %v10158_v8 = vcombine.low %v1816_v13, %v1820_v34 }
 0x38f   :  { %8233 = vmatpush1.bf16.msra.mxu0 %v10078_v4  ;;  %v1948_v36 = vld [vmem:[#allocation7 + $0x16f0] sm:$0xff] }
 0x390   :  { %8274 = vmatpush1.bf16.msra.mxu1 %v10206_v0  ;;  %8234 = vmatprep.subr.bf16.mxu0 %v10071_v27  ;;  %v10287_v4 = vcombine.high %v1944_v35, %v1948_v36  ;;  %v1808_v0 = vld [vmem:[#allocation7 + $0x1290] sm:$0xff]  ;;  %v10286_v48 = vcombine.low %v1944_v35, %v1948_v36 }
 0x391   :  { %8275 = vmatprep.subr.bf16.mxu1 %v10199_v47  ;;  %v1812_v27 = vld [vmem:[#allocation7 + $0x12b0] sm:$0xff] }
 0x392   :  { %v1936_v47 = vld [vmem:[#allocation7 + $0x1690] sm:$0xff]  ;;  %v10151_v50 = vcombine.high %v1808_v0, %v1812_v27  ;;  %v10150_v39 = vcombine.low %v1808_v0, %v1812_v27 }
 0x393   :  { %8235 = vmatpush1.bf16.msra.mxu0 %v10070_v49  ;;  %v1940_v23 = vld [vmem:[#allocation7 + $0x16b0] sm:$0xff] }
 0x394   :  { %8276 = vmatpush1.bf16.msra.mxu1 %v10198_v11  ;;  %8236 = vmatprep.subr.bf16.mxu0 %v10191_v55  ;;  %v10279_v49 = vcombine.high %v1936_v47, %v1940_v23  ;;  %v1800_v11 = vld [vmem:[#allocation7 + $0x1250] sm:$0xff]  ;;  %v10278_v14 = vcombine.low %v1936_v47, %v1940_v23 }
 0x395   :  { %8277 = vmatprep.subr.bf16.mxu1 %v10319_v57  ;;  %v1804_v55 = vld [vmem:[#allocation7 + $0x1270] sm:$0xff] }
 0x396   :  { %v1928_v57 = vld [vmem:[#allocation7 + $0x1650] sm:$0xff]  ;;  %v10143_v60 = vcombine.high %v1800_v11, %v1804_v55  ;;  %v10142_v5 = vcombine.low %v1800_v11, %v1804_v55 }
 0x397   :  { %8237 = vmatpush2.bf16.msra.mxu0 %v10190_v54  ;;  %v1932_v51 = vld [vmem:[#allocation7 + $0x1670] sm:$0xff] }
 0x398   :  { %8278 = vmatpush2.bf16.msra.mxu1 %v10318_v33  ;;  %8238 = vmatprep.subr.bf16.mxu0 %v10183_v2  ;;  %v10271_v54 = vcombine.high %v1928_v57, %v1932_v51  ;;  %v1792_v33 = vld [vmem:[#allocation7 + $0x1210] sm:$0xff]  ;;  %v10270_v7 = vcombine.low %v1928_v57, %v1932_v51 }
 0x399   :  { %8279 = vmatprep.subr.bf16.mxu1 %v10311_v58  ;;  %v1796_v2 = vld [vmem:[#allocation7 + $0x1230] sm:$0xff] }
 0x39a   :  { %v1920_v58 = vld [vmem:[#allocation7 + $0x1610] sm:$0xff]  ;;  %v10135_v59 = vcombine.high %v1792_v33, %v1796_v2  ;;  %v10134_v6 = vcombine.low %v1792_v33, %v1796_v2 }
 0x39b   :  { %8239 = vmatpush2.bf16.msra.mxu0 %v10182_v9  ;;  %v1924_v29 = vld [vmem:[#allocation7 + $0x1630] sm:$0xff] }
 0x39c   :  { %8280 = vmatpush2.bf16.msra.mxu1 %v10310_v1  ;;  %8240 = vmatprep.subr.bf16.mxu0 %v10175_v15  ;;  %v10263_v9 = vcombine.high %v1920_v58, %v1924_v29  ;;  %v2040_v1 = vld [vmem:[#allocation7 + $0x19d0] sm:$0xff]  ;;  %v10262_v18 = vcombine.low %v1920_v58, %v1924_v29 }
 0x39d   :  { %8281 = vmatprep.subr.bf16.mxu1 %v10303_v16  ;;  %v2044_v15 = vld [vmem:[#allocation7 + $0x19f0] sm:$0xff] }
 0x39e   :  { %v2168_v16 = vld [vmem:[#allocation7 + $0x1dd0] sm:$0xff]  ;;  %v10383_v19 = vcombine.high %v2040_v1, %v2044_v15 }
 0x39f   :  { %8241 = vmatpush2.bf16.msra.mxu0 %v10174_v20  ;;  %v2172_v17 = vld [vmem:[#allocation7 + $0x1df0] sm:$0xff] }
 0x3a0   :  { %8282 = vmatpush2.bf16.msra.mxu1 %v10302_v24  ;;  %8242 = vmatprep.subr.bf16.mxu0 %v10167_v28  ;;  %v10511_v20 = vcombine.high %v2168_v16, %v2172_v17  ;;  %v2032_v24 = vld [vmem:[#allocation7 + $0x1990] sm:$0xff]  ;;  %v10510_v35 = vcombine.low %v2168_v16, %v2172_v17 }
 0x3a1   :  { %8283 = vmatprep.subr.bf16.mxu1 %v10295_v31  ;;  %v2036_v28 = vld [vmem:[#allocation7 + $0x19b0] sm:$0xff]  ;;  %v10382_v31 = vcombine.low %v2040_v1, %v2044_v15 }
 0x3a2   :  { %v2160_v13 = vld [vmem:[#allocation7 + $0x1d90] sm:$0xff]  ;;  %v10375_v36 = vcombine.high %v2032_v24, %v2036_v28 }
 0x3a3   :  { %8243 = vmatpush2.bf16.msra.mxu0 %v10166_v12  ;;  %v2164_v34 = vld [vmem:[#allocation7 + $0x1db0] sm:$0xff] }
 0x3a4   :  { %8284 = vmatpush2.bf16.msra.mxu1 %v10294_v38  ;;  %8244 = vmatprep.subr.bf16.mxu0 %v10159_v40  ;;  %v2024_v12 = vld [vmem:[#allocation7 + $0x1950] sm:$0xff] }
 0x3a5   :  { %8285 = vmatprep.subr.bf16.mxu1 %v10287_v4  ;;  %v2028_v38 = vld [vmem:[#allocation7 + $0x1970] sm:$0xff]  ;;  %v10503_v4 = vcombine.high %v2160_v13, %v2164_v34 }
 0x3a6   :  { %v2152_v0 = vld [vmem:[#allocation7 + $0x1d50] sm:$0xff]  ;;  %v10366_v58 = vcombine.low %v2024_v12, %v2028_v38 }
 0x3a7   :  { %8245 = vmatpush2.bf16.msra.mxu0 %v10158_v8  ;;  %v2156_v27 = vld [vmem:[#allocation7 + $0x1d70] sm:$0xff]  ;;  %v10374_v8 = vcombine.low %v2032_v24, %v2036_v28 }
 0x3a8   :  { %8286 = vmatpush2.bf16.msra.mxu1 %v10286_v48  ;;  %8246 = vmatprep.subr.bf16.mxu0 %v10151_v50  ;;  %v10502_v50 = vcombine.low %v2160_v13, %v2164_v34  ;;  %v2016_v51 = vld [vmem:[#allocation7 + $0x1910] sm:$0xff] }
 0x3a9   :  { %8287 = vmatprep.subr.bf16.mxu1 %v10279_v49  ;;  %v10367_v49 = vcombine.high %v2024_v12, %v2028_v38  ;;  %v2012_v1 = vld [vmem:[#allocation7 + $0x18f0] sm:$0xff] }
 0x3aa   :  { %v2136_v15 = vld [vmem:[#allocation7 + $0x1cd0] sm:$0xff] }
 0x3ab   :  { %8247 = vmatpush2.bf16.msra.mxu0 %v10150_v39  ;;  %v2020_v39 = vld [vmem:[#allocation7 + $0x1930] sm:$0xff] }
 0x3ac   :  { %8288 = vmatpush2.bf16.msra.mxu1 %v10278_v14  ;;  %8248 = vmatprep.subr.bf16.mxu0 %v10143_v60  ;;  %v2144_v60 = vld [vmem:[#allocation7 + $0x1d10] sm:$0xff]  ;;  %v10358_v17 = vcombine.low %v2016_v51, %v2020_v39 }
 0x3ad   :  { %8289 = vmatprep.subr.bf16.mxu1 %v10271_v54  ;;  %v2148_v54 = vld [vmem:[#allocation7 + $0x1d30] sm:$0xff] }
 0x3ae   :  { %v2140_v16 = vld [vmem:[#allocation7 + $0x1cf0] sm:$0xff] }
 0x3af   :  { %8249 = vmatpush2.bf16.msra.mxu0 %v10142_v5  ;;  %v10494_v5 = vcombine.low %v2152_v0, %v2156_v27  ;;  %v2004_v24 = vld [vmem:[#allocation7 + $0x18b0] sm:$0xff]  ;;  %v10478_v34 = vcombine.low %v2136_v15, %v2140_v16 }
 0x3b0   :  { %8290 = vmatpush2.bf16.msra.mxu1 %v10270_v7  ;;  %8250 = vmatprep.subr.bf16.mxu0 %v10135_v59  ;;  %v10359_v7 = vcombine.high %v2016_v51, %v2020_v39  ;;  %v10487_v59 = vcombine.high %v2144_v60, %v2148_v54  ;;  %v2128_v28 = vld [vmem:[#allocation7 + $0x1c90] sm:$0xff] }
 0x3b1   :  { %8291 = vmatprep.subr.bf16.mxu1 %v10263_v9  ;;  %v2008_v9 = vld [vmem:[#allocation7 + $0x18d0] sm:$0xff] }
 0x3b2   :  { %v10350_v13 = vcombine.low %v2008_v9, %v2012_v1  ;;  %v1992_v12 = vld [vmem:[#allocation7 + $0x1850] sm:$0xff] }
 0x3b3   :  { %8251 = vmatpush2.bf16.msra.mxu0 %v10134_v6  ;;  %v10486_v6 = vcombine.low %v2144_v60, %v2148_v54  ;;  %v1996_v38 = vld [vmem:[#allocation7 + $0x1870] sm:$0xff] }
 0x3b4   :  { %8292 = vmatpush2.bf16.msra.mxu1 %v10262_v18  ;;  %8302 = vmatprep.subr.bf16.mxu0 %v10383_v19  ;;  %v10351_v18 = vcombine.high %v2008_v9, %v2012_v1  ;;  %v10479_v19 = vcombine.high %v2136_v15, %v2140_v16  ;;  %v2104_v39 = vld [vmem:[#allocation7 + $0x1bd0] sm:$0xff] }
 0x3b5   :  { %8343 = vmatprep.subr.bf16.mxu1 %v10511_v20  ;;  %v2000_v20 = vld [vmem:[#allocation7 + $0x1890] sm:$0xff] }
 0x3b6   :  { %v8008_v40 = vpop.f32.mrf.mxu0  ;;  %8253 = vmatmul.mubr.bf16.vlgmr.msra.gmra.mxu0 %v11100_v41  ;;  %v2232_v60 = vld [vmem:[#allocation7 + $0x1fd0] sm:$0xff] }
 0x3b7   :  { %v8009_v47 = vadd.f32 %v8008_v40, %v11192_v43  ;;  %v8049_v23 = vpop.f32.mrf.mxu1  ;;  %8294 = vmatmul.mubr.bf16.vlgmr.msra.gmra.mxu1 %v11104_v44  ;;  %8303 = vmatpush1.bf16.msra.mxu0 %v10382_v31  ;;  %v10495_v43 = vcombine.high %v2152_v0, %v2156_v27  ;;  %v2132_v31 = vld [vmem:[#allocation7 + $0x1cb0] sm:$0xff]  ;;  %v10342_v0 = vcombine.low %v2000_v20, %v2004_v24 }
 0x3b8   :  { %8334 = vmatprep.mubr.bf16.mxu0 %v11108_v46  ;;  %8344 = vmatpush1.bf16.msra.mxu1 %v10510_v35  ;;  %v8010_v48 = vpop.f32.mrf.mxu0  ;;  %v10343_v35 = vcombine.high %v2000_v20, %v2004_v24  ;;  %v2120_v40 = vld [vmem:[#allocation7 + $0x1c50] sm:$0xff]  ;;  %v10470_v27 = vcombine.low %v2128_v28, %v2132_v31 }
 0x3b9   :  { %v11202_v11 = vadd.f32 %v8049_v23, %v8009_v47  ;;  %8375 = vmatprep.mubr.bf16.mxu1 %v11112_v45  ;;  %v8011_v55 = vadd.f32 %v8010_v48, %v11196_v52  ;;  %v8051_v57 = vpop.f32.mrf.mxu1  ;;  %8304 = vmatprep.subr.bf16.mxu0 %v10375_v36  ;;  %v10471_v36 = vcombine.high %v2128_v28, %v2132_v31  ;;  %v1988_v48 = vld [vmem:[#allocation7 + $0x1830] sm:$0xff] }
 0x3ba   :  { %v8012_v14 = vpop.f32.mrf.mxu0  ;;  %8345 = vmatprep.subr.bf16.mxu1 %v10503_v4  ;;  %v2124_v4 = vld [vmem:[#allocation7 + $0x1c70] sm:$0xff]  ;;  %v10335_v47 = vcombine.high %v1992_v12, %v1996_v38 }
 0x3bb   :  { %v11206_v33 = vadd.f32 %v8051_v57, %v8011_v55  ;;  %v8053_v2 = vpop.f32.mrf.mxu1  ;;  %8305 = vmatpush1.bf16.msra.mxu0 %v10374_v8  ;;  %v10463_v23 = vcombine.high %v2120_v40, %v2124_v4  ;;  %v1984_v8 = vld [vmem:[#allocation7 + $0x1810] sm:$0xff]  ;;  %v10334_v55 = vcombine.low %v1992_v12, %v1996_v38  ;;  %v10462_v57 = vcombine.low %v2120_v40, %v2124_v4 }
 0x3bc   :  { %8346 = vmatpush1.bf16.msra.mxu1 %v10502_v50  ;;  %v8013_v29 = vpop.f32.mrf.mxu0  ;;  %8306 = vmatprep.subr.bf16.mxu0 %v10367_v49  ;;  %v2112_v50 = vld [vmem:[#allocation7 + $0x1c10] sm:$0xff]  ;;  %v10326_v2 = vcombine.low %v1984_v8, %v1988_v48 }
 0x3bd   :  { %v8054_v52 = vpop.f32.mrf.mxu1  ;;  %8347 = vmatprep.subr.bf16.mxu1 %v10495_v43  ;;  %v2116_v49 = vld [vmem:[#allocation7 + $0x1c30] sm:$0xff]  ;;  %v10327_v43 = vcombine.high %v1984_v8, %v1988_v48 }
 0x3be   :  { %v10455_v51 = vcombine.high %v2112_v50, %v2116_v49  ;;  %v2108_v14 = vld [vmem:[#allocation7 + $0x1bf0] sm:$0xff] }
 0x3bf   :  { %8307 = vmatpush1.bf16.msra.mxu0 %v10366_v58  ;;  %v2236_v54 = vld [vmem:[#allocation7 + $0x1ff0] sm:$0xff]  ;;  %v10454_v58 = vcombine.low %v2112_v50, %v2116_v49  ;;  %v10447_v29 = vcombine.high %v2104_v39, %v2108_v14  ;;  %v10446_v1 = vcombine.low %v2104_v39, %v2108_v14 }
 0x3c0   :  { %8348 = vmatpush1.bf16.msra.mxu1 %v10494_v5  ;;  %8308 = vmatprep.subr.bf16.mxu0 %v10359_v7  ;;  %v10575_v5 = vcombine.high %v2232_v60, %v2236_v54  ;;  %v2096_v7 = vld [vmem:[#allocation7 + $0x1b90] sm:$0xff]  ;;  %v10574_v15 = vcombine.low %v2232_v60, %v2236_v54 }
 0x3c1   :  { %8349 = vmatprep.subr.bf16.mxu1 %v10487_v59  ;;  %v2100_v52 = vld [vmem:[#allocation7 + $0x1bb0] sm:$0xff] }
 0x3c2   :  { %v2224_v59 = vld [vmem:[#allocation7 + $0x1f90] sm:$0xff]  ;;  %v10439_v16 = vcombine.high %v2096_v7, %v2100_v52  ;;  %v10438_v24 = vcombine.low %v2096_v7, %v2100_v52 }
 0x3c3   :  { %8309 = vmatpush1.bf16.msra.mxu0 %v10358_v17  ;;  %v2228_v9 = vld [vmem:[#allocation7 + $0x1fb0] sm:$0xff] }
 0x3c4   :  { %8350 = vmatpush1.bf16.msra.mxu1 %v10486_v6  ;;  %8310 = vmatprep.subr.bf16.mxu0 %v10351_v18  ;;  %v10567_v17 = vcombine.high %v2224_v59, %v2228_v9  ;;  %v2088_v6 = vld [vmem:[#allocation7 + $0x1b50] sm:$0xff]  ;;  %v10566_v28 = vcombine.low %v2224_v59, %v2228_v9 }
 0x3c5   :  { %8351 = vmatprep.subr.bf16.mxu1 %v10479_v19  ;;  %v2092_v18 = vld [vmem:[#allocation7 + $0x1b70] sm:$0xff] }
 0x3c6   :  { %v2216_v19 = vld [vmem:[#allocation7 + $0x1f50] sm:$0xff]  ;;  %v10431_v31 = vcombine.high %v2088_v6, %v2092_v18  ;;  %v10430_v38 = vcombine.low %v2088_v6, %v2092_v18 }
 0x3c7   :  { %8311 = vmatpush1.bf16.msra.mxu0 %v10350_v13  ;;  %v2220_v20 = vld [vmem:[#allocation7 + $0x1f70] sm:$0xff] }
 0x3c8   :  { %8352 = vmatpush1.bf16.msra.mxu1 %v10478_v34  ;;  %8312 = vmatprep.subr.bf16.mxu0 %v10343_v35  ;;  %v10559_v13 = vcombine.high %v2216_v19, %v2220_v20  ;;  %v2080_v34 = vld [vmem:[#allocation7 + $0x1b10] sm:$0xff]  ;;  %v10558_v40 = vcombine.low %v2216_v19, %v2220_v20 }
 0x3c9   :  { %8353 = vmatprep.subr.bf16.mxu1 %v10471_v36  ;;  %v2084_v35 = vld [vmem:[#allocation7 + $0x1b30] sm:$0xff] }
 0x3ca   :  { %v2208_v36 = vld [vmem:[#allocation7 + $0x1f10] sm:$0xff]  ;;  %v10423_v4 = vcombine.high %v2080_v34, %v2084_v35  ;;  %v10422_v48 = vcombine.low %v2080_v34, %v2084_v35  ;;  %v1405_v34 = vld [vmem:[#allocation7 + $0x5f8] sm:$0xff] }
 0x3cb   :  { %8313 = vmatpush1.bf16.msra.mxu0 %v10342_v0  ;;  %v2212_v12 = vld [vmem:[#allocation7 + $0x1f30] sm:$0xff] }
 0x3cc   :  { %8354 = vmatpush1.bf16.msra.mxu1 %v10470_v27  ;;  %8314 = vmatprep.subr.bf16.mxu0 %v10335_v47  ;;  %v10551_v0 = vcombine.high %v2208_v36, %v2212_v12  ;;  %v2072_v27 = vld [vmem:[#allocation7 + $0x1ad0] sm:$0xff]  ;;  %v10550_v50 = vcombine.low %v2208_v36, %v2212_v12  ;;  %v2258_v36 = vsub.s32 4, %v11118_v62 }
 0x3cd   :  { %8355 = vmatprep.subr.bf16.mxu1 %v10463_v23  ;;  %v2076_v47 = vld [vmem:[#allocation7 + $0x1af0] sm:$0xff] }
 0x3ce   :  { %v2200_v23 = vld [vmem:[#allocation7 + $0x1ed0] sm:$0xff]  ;;  %v10415_v49 = vcombine.high %v2072_v27, %v2076_v47  ;;  %v10414_v14 = vcombine.low %v2072_v27, %v2076_v47  ;;  %v1269_v27 = vld [vmem:[#allocation7 + $0x1b8] sm:$0xff]  ;;  %v10809_v47 = vld [vmem:[#allocation8] sm:$0xff] }
 0x3cf   :  { %8315 = vmatpush1.bf16.msra.mxu0 %v10334_v55  ;;  %v2204_v8 = vld [vmem:[#allocation7 + $0x1ef0] sm:$0xff] }
 0x3d0   :  { %8356 = vmatpush1.bf16.msra.mxu1 %v10462_v57  ;;  %8316 = vmatprep.subr.bf16.mxu0 %v10327_v43  ;;  %v10543_v55 = vcombine.high %v2200_v23, %v2204_v8  ;;  %v2064_v57 = vld [vmem:[#allocation7 + $0x1a90] sm:$0xff]  ;;  %v10542_v60 = vcombine.low %v2200_v23, %v2204_v8  ;;  %v2259_v23 = vrot.slane %v10809_v47, %v2258_v36  ;;  %v1245_v36 = vld [vmem:[#allocation7 + $0xf8] sm:$0xff] }
 0x3d1   :  { %8357 = vmatprep.subr.bf16.mxu1 %v10455_v51  ;;  %v2068_v43 = vld [vmem:[#allocation7 + $0x1ab0] sm:$0xff] }
 0x3d2   :  { %v2192_v51 = vld [vmem:[#allocation7 + $0x1e90] sm:$0xff]  ;;  %v10407_v54 = vcombine.high %v2064_v57, %v2068_v43  ;;  %v10406_v52 = vcombine.low %v2064_v57, %v2068_v43  ;;  %v1257_v43 = vld [vmem:[#allocation7 + $0x158] sm:$0xff] }
 0x3d3   :  { %8317 = vmatpush1.bf16.msra.mxu0 %v10326_v2  ;;  %v2196_v39 = vld [vmem:[#allocation7 + $0x1eb0] sm:$0xff] }
 0x3d4   :  { %8358 = vmatpush1.bf16.msra.mxu1 %v10454_v58  ;;  %8318 = vmatprep.subr.bf16.mxu0 %v10447_v29  ;;  %v10535_v2 = vcombine.high %v2192_v51, %v2196_v39  ;;  %v2056_v58 = vld [vmem:[#allocation7 + $0x1a50] sm:$0xff]  ;;  %v10534_v59 = vcombine.low %v2192_v51, %v2196_v39  ;;  %v1261_v51 = vld [vmem:[#allocation7 + $0x178] sm:$0xff] }
 0x3d5   :  { %8359 = vmatprep.subr.bf16.mxu1 %v10575_v5  ;;  %v2060_v29 = vld [vmem:[#allocation7 + $0x1a70] sm:$0xff] }
 0x3d6   :  { %v2184_v5 = vld [vmem:[#allocation7 + $0x1e50] sm:$0xff]  ;;  %v10399_v9 = vcombine.high %v2056_v58, %v2060_v29  ;;  %v10398_v18 = vcombine.low %v2056_v58, %v2060_v29 }
 0x3d7   :  { %8319 = vmatpush2.bf16.msra.mxu0 %v10446_v1  ;;  %v2188_v7 = vld [vmem:[#allocation7 + $0x1e70] sm:$0xff] }
 0x3d8   :  { %8360 = vmatpush2.bf16.msra.mxu1 %v10574_v15  ;;  %8320 = vmatprep.subr.bf16.mxu0 %v10439_v16  ;;  %v10527_v1 = vcombine.high %v2184_v5, %v2188_v7  ;;  %v2048_v15 = vld [vmem:[#allocation7 + $0x1a10] sm:$0xff]  ;;  %v10526_v19 = vcombine.low %v2184_v5, %v2188_v7 }
 0x3d9   :  { %8361 = vmatprep.subr.bf16.mxu1 %v10567_v17  ;;  %v2052_v16 = vld [vmem:[#allocation7 + $0x1a30] sm:$0xff] }
 0x3da   :  { %v2176_v17 = vld [vmem:[#allocation7 + $0x1e10] sm:$0xff]  ;;  %v10391_v20 = vcombine.high %v2048_v15, %v2052_v16  ;;  %v10390_v35 = vcombine.low %v2048_v15, %v2052_v16  ;;  %v1249_v16 = vld [vmem:[#allocation7 + $0x118] sm:$0xff] }
 0x3db   :  { %8321 = vmatpush2.bf16.msra.mxu0 %v10438_v24  ;;  %v2180_v6 = vld [vmem:[#allocation7 + $0x1e30] sm:$0xff] }
 0x3dc   :  { %8362 = vmatpush2.bf16.msra.mxu1 %v10566_v28  ;;  %8322 = vmatprep.subr.bf16.mxu0 %v10431_v31  ;;  %v10519_v24 = vcombine.high %v2176_v17, %v2180_v6  ;;  %v1273_v28 = vld [vmem:[#allocation7 + $0x1d8] sm:$0xff]  ;;  %v10518_v12 = vcombine.low %v2176_v17, %v2180_v6 }
 0x3dd   :  { %8363 = vmatprep.subr.bf16.mxu1 %v10559_v13  ;;  %v1277_v31 = vld [vmem:[#allocation7 + $0x1f8] sm:$0xff] }
 0x3de   :  { %v1401_v13 = vld [vmem:[#allocation7 + $0x5d8] sm:$0xff]  ;;  %v9616_v8 = vcombine.low %v1273_v28, %v1277_v31 }
 0x3df   :  { %8323 = vmatpush2.bf16.msra.mxu0 %v10430_v38  ;;  %v9617_v38 = vcombine.high %v1273_v28, %v1277_v31  ;;  %v1253_v17 = vld [vmem:[#allocation7 + $0x138] sm:$0xff] }
 0x3e0   :  { %8364 = vmatpush2.bf16.msra.mxu1 %v10558_v40  ;;  %8324 = vmatprep.subr.bf16.mxu0 %v10423_v4  ;;  %v9745_v40 = vcombine.high %v1401_v13, %v1405_v34  ;;  %v2262_v4 = vsub.s32 5, %v11118_v62 }
 0x3e1   :  { %8365 = vmatprep.subr.bf16.mxu1 %v10551_v0  ;;  %v1265_v0 = vld [vmem:[#allocation7 + $0x198] sm:$0xff] }
 0x3e2   :  { %v9609_v57 = vcombine.high %v1265_v0, %v1269_v27  ;;  %v9608_v29 = vcombine.low %v1265_v0, %v1269_v27 }
 0x3e3   :  { %8325 = vmatpush2.bf16.msra.mxu0 %v10422_v48  ;;  %v1393_v48 = vld [vmem:[#allocation7 + $0x598] sm:$0xff] }
 0x3e4   :  { %8366 = vmatpush2.bf16.msra.mxu1 %v10550_v50  ;;  %8326 = vmatprep.subr.bf16.mxu0 %v10415_v49  ;;  %v1397_v50 = vld [vmem:[#allocation7 + $0x5b8] sm:$0xff]  ;;  %v9744_v49 = vcombine.low %v1401_v13, %v1405_v34 }
 0x3e5   :  { %8367 = vmatprep.subr.bf16.mxu1 %v10543_v55  ;;  %v2263_v55 = vrot.slane %v10809_v47, %v2262_v4  ;;  %v9736_v7 = vcombine.low %v1393_v48, %v1397_v50  ;;  %v1233_v47 = vld [vmem:[#allocation7 + $0x98] sm:$0xff] }
 0x3e7   :  { %8327 = vmatpush2.bf16.msra.mxu0 %v10414_v14  ;;  %v9737_v14 = vcombine.high %v1393_v48, %v1397_v50  ;;  %v1365_v48 = vld [vmem:[#allocation7 + $0x4b8] sm:$0xff] }
 0x3e8   :  { %8368 = vmatpush2.bf16.msra.mxu1 %v10542_v60  ;;  %8328 = vmatprep.subr.bf16.mxu0 %v10407_v54  ;;  %v1385_v60 = vld [vmem:[#allocation7 + $0x558] sm:$0xff] }
 0x3e9   :  { %8369 = vmatprep.subr.bf16.mxu1 %v10535_v2  ;;  %v1389_v54 = vld [vmem:[#allocation7 + $0x578] sm:$0xff] }
 0x3ea   :  { %v9729_v15 = vcombine.high %v1385_v60, %v1389_v54  ;;  %v9728_v31 = vcombine.low %v1385_v60, %v1389_v54 }
 0x3eb   :  { %8329 = vmatpush2.bf16.msra.mxu0 %v10406_v52  ;;  %v9601_v52 = vcombine.high %v1257_v43, %v1261_v51 }
 0x3ec   :  { %8370 = vmatpush2.bf16.msra.mxu1 %v10534_v59  ;;  %8330 = vmatprep.subr.bf16.mxu0 %v10399_v9 }
 0x3ed   :  { %8371 = vmatprep.subr.bf16.mxu1 %v10527_v1 }
 0x3ef   :  { %8331 = vmatpush2.bf16.msra.mxu0 %v10398_v18  ;;  %v1377_v18 = vld [vmem:[#allocation7 + $0x518] sm:$0xff] }
 0x3f0   :  { %8372 = vmatpush2.bf16.msra.mxu1 %v10526_v19  ;;  %8332 = vmatprep.subr.bf16.mxu0 %v10391_v20  ;;  %v1381_v19 = vld [vmem:[#allocation7 + $0x538] sm:$0xff] }
 0x3f1   :  { %8373 = vmatprep.subr.bf16.mxu1 %v10519_v24  ;;  %v9600_v24 = vcombine.low %v1257_v43, %v1261_v51  ;;  %v9721_v34 = vcombine.high %v1377_v18, %v1381_v19  ;;  %v9720_v4 = vcombine.low %v1377_v18, %v1381_v19  ;;  %v1225_v43 = vld [vmem:[#allocation7 + $0x58] sm:$0xff] }
 0x3f2   :  { %v1229_v51 = vld [vmem:[#allocation7 + $0x78] sm:$0xff] }
 0x3f3   :  { %8333 = vmatpush2.bf16.msra.mxu0 %v10390_v35  ;;  %v1241_v35 = vld [vmem:[#allocation7 + $0xd8] sm:$0xff] }
 0x3f4   :  { %8374 = vmatpush2.bf16.msra.mxu1 %v10518_v12  ;;  %8384 = vmatprep.subr.bf16.mxu0 %v9617_v38  ;;  %v1369_v12 = vld [vmem:[#allocation7 + $0x4d8] sm:$0xff]  ;;  %v9585_v0 = vcombine.high %v1241_v35, %v1245_v36  ;;  %v9584_v50 = vcombine.low %v1241_v35, %v1245_v36 }
 0x3f5   :  { %8425 = vmatprep.subr.bf16.mxu1 %v9745_v40  ;;  %v1373_v38 = vld [vmem:[#allocation7 + $0x4f8] sm:$0xff]  ;;  %v9592_v40 = vcombine.low %v1249_v16, %v1253_v17 }
 0x3f6   :  { %v8090_v39 = vpop.f32.mrf.mxu0  ;;  %8335 = vmatmul.mubr.bf16.vlgmr.msra.gmra.mxu0 %v11124_v30  ;;  %v9713_v27 = vcombine.high %v1369_v12, %v1373_v38  ;;  %v1465_v18 = vld [vmem:[#allocation7 + $0x7d8] sm:$0xff] }
 0x3f7   :  { %v8091_v2 = vadd.f32 %v8090_v39, %v2259_v23  ;;  %v8131_v58 = vpop.f32.mrf.mxu1  ;;  %8376 = vmatmul.mubr.bf16.vlgmr.msra.gmra.mxu1 %v11128_v32  ;;  %8385 = vmatpush1.bf16.msra.mxu0 %v9616_v8  ;;  %v1237_v23 = vld [vmem:[#allocation7 + $0xb8] sm:$0xff] }
 0x3f8   :  { %8416 = vmatprep.mubr.bf16.mxu0 %v11050_v22  ;;  %8426 = vmatpush1.bf16.msra.mxu1 %v9744_v49  ;;  %v8092_v5 = vpop.f32.mrf.mxu0  ;;  %v1361_v8 = vld [vmem:[#allocation7 + $0x498] sm:$0xff]  ;;  %v9712_v49 = vcombine.low %v1369_v12, %v1373_v38  ;;  %v9576_v60 = vcombine.low %v1233_v47, %v1237_v23 }
 0x3f9   :  { %v11213_v59 = vadd.f32 %v8131_v58, %v8091_v2  ;;  %8457 = vmatprep.mubr.bf16.mxu1 %v11054_v26  ;;  %v8093_v9 = vadd.f32 %v8092_v5, %v2263_v55  ;;  %v8133_v1 = vpop.f32.mrf.mxu1  ;;  %8386 = vmatprep.subr.bf16.mxu0 %v9609_v57  ;;  %v9593_v26 = vcombine.high %v1249_v16, %v1253_v17  ;;  %v1353_v39 = vld [vmem:[#allocation7 + $0x458] sm:$0xff] }
 0x3fa   :  { %v8094_v6 = vpop.f32.mrf.mxu0  ;;  %8427 = vmatprep.subr.bf16.mxu1 %v9737_v14  ;;  %v9577_v55 = vcombine.high %v1233_v47, %v1237_v23  ;;  %v9705_v57 = vcombine.high %v1361_v8, %v1365_v48  ;;  %v1357_v14 = vld [vmem:[#allocation7 + $0x478] sm:$0xff]  ;;  %v9704_v54 = vcombine.low %v1361_v8, %v1365_v48  ;;  %v9569_v2 = vcombine.high %v1225_v43, %v1229_v51 }
 0x3fb   :  { %v11216_v20 = vadd.f32 %v8133_v1, %v8093_v9  ;;  %v8135_v22 = vpop.f32.mrf.mxu1  ;;  %8387 = vmatpush1.bf16.msra.mxu0 %v9608_v29  ;;  %v9697_v58 = vcombine.high %v1353_v39, %v1357_v14  ;;  %v1217_v29 = vld [vmem:[#allocation7 + $0x18] sm:$0xff]  ;;  %v9568_v9 = vcombine.low %v1225_v43, %v1229_v51  ;;  %v9696_v1 = vcombine.low %v1353_v39, %v1357_v14 }
 0x3fc   :  { %8428 = vmatpush1.bf16.msra.mxu1 %v9736_v7  ;;  %v8095_v28 = vpop.f32.mrf.mxu0  ;;  %8388 = vmatprep.subr.bf16.mxu0 %v9601_v52  ;;  %v1221_v5 = vld [vmem:[#allocation7 + $0x38] sm:$0xff] }
 0x3fd   :  { %v8136_v13 = vpop.f32.mrf.mxu1  ;;  %8429 = vmatprep.subr.bf16.mxu1 %v9729_v15  ;;  %v1345_v7 = vld [vmem:[#allocation7 + $0x418] sm:$0xff]  ;;  %v9561_v15 = vcombine.high %v1217_v29, %v1221_v5  ;;  %v9560_v22 = vcombine.low %v1217_v29, %v1221_v5 }
 0x3fe   :  { %v1349_v52 = vld [vmem:[#allocation7 + $0x438] sm:$0xff] }
 0x3ff   :  { %8389 = vmatpush1.bf16.msra.mxu0 %v9600_v24  ;;  %v9689_v16 = vcombine.high %v1345_v7, %v1349_v52  ;;  %v1337_v17 = vld [vmem:[#allocation7 + $0x3d8] sm:$0xff]  ;;  %v9688_v24 = vcombine.low %v1345_v7, %v1349_v52 }
 0x400   :  { %8430 = vmatpush1.bf16.msra.mxu1 %v9728_v31  ;;  %8390 = vmatprep.subr.bf16.mxu0 %v9593_v26  ;;  %v1341_v6 = vld [vmem:[#allocation7 + $0x3f8] sm:$0xff] }
 0x401   :  { %8431 = vmatprep.subr.bf16.mxu1 %v9721_v34  ;;  %v1469_v19 = vld [vmem:[#allocation7 + $0x7f8] sm:$0xff]  ;;  %v9681_v28 = vcombine.high %v1337_v17, %v1341_v6  ;;  %v9680_v36 = vcombine.low %v1337_v17, %v1341_v6 }
 0x402   :  { %v9809_v31 = vcombine.high %v1465_v18, %v1469_v19  ;;  %v1329_v26 = vld [vmem:[#allocation7 + $0x398] sm:$0xff]  ;;  %v9808_v12 = vcombine.low %v1465_v18, %v1469_v19 }
 0x403   :  { %8391 = vmatpush1.bf16.msra.mxu0 %v9592_v40  ;;  %v1333_v13 = vld [vmem:[#allocation7 + $0x3b8] sm:$0xff] }
 0x404   :  { %8432 = vmatpush1.bf16.msra.mxu1 %v9720_v4  ;;  %8392 = vmatprep.subr.bf16.mxu0 %v9585_v0  ;;  %v1457_v34 = vld [vmem:[#allocation7 + $0x798] sm:$0xff]  ;;  %v9673_v38 = vcombine.high %v1329_v26, %v1333_v13  ;;  %v9672_v23 = vcombine.low %v1329_v26, %v1333_v13 }
 0x405   :  { %8433 = vmatprep.subr.bf16.mxu1 %v9713_v27  ;;  %v1461_v35 = vld [vmem:[#allocation7 + $0x7b8] sm:$0xff] }
 0x406   :  { %v9801_v40 = vcombine.high %v1457_v34, %v1461_v35  ;;  %v1321_v4 = vld [vmem:[#allocation7 + $0x358] sm:$0xff]  ;;  %v9800_v8 = vcombine.low %v1457_v34, %v1461_v35 }
 0x407   :  { %8393 = vmatpush1.bf16.msra.mxu0 %v9584_v50  ;;  %v1325_v0 = vld [vmem:[#allocation7 + $0x378] sm:$0xff] }
 0x408   :  { %8434 = vmatpush1.bf16.msra.mxu1 %v9712_v49  ;;  %8394 = vmatprep.subr.bf16.mxu0 %v9577_v55  ;;  %v1449_v27 = vld [vmem:[#allocation7 + $0x758] sm:$0xff]  ;;  %v9665_v48 = vcombine.high %v1321_v4, %v1325_v0  ;;  %v9664_v51 = vcombine.low %v1321_v4, %v1325_v0 }
 0x409   :  { %8435 = vmatprep.subr.bf16.mxu1 %v9705_v57  ;;  %v1453_v47 = vld [vmem:[#allocation7 + $0x778] sm:$0xff] }
 0x40a   :  { %v9793_v50 = vcombine.high %v1449_v27, %v1453_v47  ;;  %v1313_v49 = vld [vmem:[#allocation7 + $0x318] sm:$0xff]  ;;  %v9792_v39 = vcombine.low %v1449_v27, %v1453_v47 }
 0x40b   :  { %8395 = vmatpush1.bf16.msra.mxu0 %v9576_v60  ;;  %v1317_v55 = vld [vmem:[#allocation7 + $0x338] sm:$0xff] }
 0x40c   :  { %8436 = vmatpush1.bf16.msra.mxu1 %v9704_v54  ;;  %8396 = vmatprep.subr.bf16.mxu0 %v9569_v2  ;;  %v1441_v57 = vld [vmem:[#allocation7 + $0x718] sm:$0xff]  ;;  %v9657_v14 = vcombine.high %v1313_v49, %v1317_v55  ;;  %v9656_v5 = vcombine.low %v1313_v49, %v1317_v55 }
 0x40d   :  { %8437 = vmatprep.subr.bf16.mxu1 %v9697_v58  ;;  %v1445_v43 = vld [vmem:[#allocation7 + $0x738] sm:$0xff] }
 0x40e   :  { %v9785_v60 = vcombine.high %v1441_v57, %v1445_v43  ;;  %v1305_v54 = vld [vmem:[#allocation7 + $0x2d8] sm:$0xff]  ;;  %v9784_v7 = vcombine.low %v1441_v57, %v1445_v43 }
 0x40f   :  { %8397 = vmatpush1.bf16.msra.mxu0 %v9568_v9  ;;  %v1309_v2 = vld [vmem:[#allocation7 + $0x2f8] sm:$0xff] }
 0x410   :  { %8438 = vmatpush1.bf16.msra.mxu1 %v9696_v1  ;;  %8398 = vmatprep.subr.bf16.mxu0 %v9561_v15  ;;  %v1433_v58 = vld [vmem:[#allocation7 + $0x6d8] sm:$0xff]  ;;  %v9649_v52 = vcombine.high %v1305_v54, %v1309_v2  ;;  %v9648_v6 = vcombine.low %v1305_v54, %v1309_v2 }
 0x411   :  { %8439 = vmatprep.subr.bf16.mxu1 %v9689_v16  ;;  %v1437_v29 = vld [vmem:[#allocation7 + $0x6f8] sm:$0xff] }
 0x412   :  { %v9777_v9 = vcombine.high %v1433_v58, %v1437_v29  ;;  %v1297_v1 = vld [vmem:[#allocation7 + $0x298] sm:$0xff]  ;;  %v9776_v18 = vcombine.low %v1433_v58, %v1437_v29 }
 0x413   :  { %8399 = vmatpush1.bf16.msra.mxu0 %v9560_v22  ;;  %v1301_v15 = vld [vmem:[#allocation7 + $0x2b8] sm:$0xff] }
 0x414   :  { %8440 = vmatpush1.bf16.msra.mxu1 %v9688_v24  ;;  %8400 = vmatprep.subr.bf16.mxu0 %v9681_v28  ;;  %v1425_v16 = vld [vmem:[#allocation7 + $0x698] sm:$0xff]  ;;  %v9641_v19 = vcombine.high %v1297_v1, %v1301_v15  ;;  %v9640_v13 = vcombine.low %v1297_v1, %v1301_v15 }
 0x415   :  { %8441 = vmatprep.subr.bf16.mxu1 %v9809_v31  ;;  %v1429_v17 = vld [vmem:[#allocation7 + $0x6b8] sm:$0xff] }
 0x416   :  { %v9769_v22 = vcombine.high %v1425_v16, %v1429_v17  ;;  %v1289_v24 = vld [vmem:[#allocation7 + $0x258] sm:$0xff]  ;;  %v9768_v34 = vcombine.low %v1425_v16, %v1429_v17 }
 0x417   :  { %8401 = vmatpush2.bf16.msra.mxu0 %v9680_v36  ;;  %v1293_v28 = vld [vmem:[#allocation7 + $0x278] sm:$0xff] }
 0x418   :  { %8442 = vmatpush2.bf16.msra.mxu1 %v9808_v12  ;;  %8402 = vmatprep.subr.bf16.mxu0 %v9673_v38  ;;  %v1417_v31 = vld [vmem:[#allocation7 + $0x658] sm:$0xff]  ;;  %v9633_v35 = vcombine.high %v1289_v24, %v1293_v28  ;;  %v9632_v0 = vcombine.low %v1289_v24, %v1293_v28 }
 0x419   :  { %8443 = vmatprep.subr.bf16.mxu1 %v9801_v40  ;;  %v1421_v26 = vld [vmem:[#allocation7 + $0x678] sm:$0xff] }
 0x41a   :  { %v9761_v36 = vcombine.high %v1417_v31, %v1421_v26  ;;  %v1281_v12 = vld [vmem:[#allocation7 + $0x218] sm:$0xff]  ;;  %v9760_v27 = vcombine.low %v1417_v31, %v1421_v26 }
 0x41b   :  { %8403 = vmatpush2.bf16.msra.mxu0 %v9672_v23  ;;  %v1285_v38 = vld [vmem:[#allocation7 + $0x238] sm:$0xff] }
 0x41c   :  { %8444 = vmatpush2.bf16.msra.mxu1 %v9800_v8  ;;  %8404 = vmatprep.subr.bf16.mxu0 %v9665_v48  ;;  %v1409_v40 = vld [vmem:[#allocation7 + $0x618] sm:$0xff]  ;;  %v9625_v47 = vcombine.high %v1281_v12, %v1285_v38  ;;  %v9624_v55 = vcombine.low %v1281_v12, %v1285_v38 }
 0x41d   :  { %8445 = vmatprep.subr.bf16.mxu1 %v9793_v50  ;;  %v1413_v4 = vld [vmem:[#allocation7 + $0x638] sm:$0xff] }
 0x41e   :  { %v9753_v23 = vcombine.high %v1409_v40, %v1413_v4  ;;  %v1529_v8 = vld [vmem:[#allocation7 + $0x9d8] sm:$0xff]  ;;  %v9752_v57 = vcombine.low %v1409_v40, %v1413_v4 }
 0x41f   :  { %8405 = vmatpush2.bf16.msra.mxu0 %v9664_v51  ;;  %v1533_v48 = vld [vmem:[#allocation7 + $0x9f8] sm:$0xff] }
 0x420   :  { %8446 = vmatpush2.bf16.msra.mxu1 %v9792_v39  ;;  %8406 = vmatprep.subr.bf16.mxu0 %v9657_v14  ;;  %v1657_v50 = vld [vmem:[#allocation7 + $0xdd8] sm:$0xff]  ;;  %v9873_v43 = vcombine.high %v1529_v8, %v1533_v48 }
 0x421   :  { %8447 = vmatprep.subr.bf16.mxu1 %v9785_v60  ;;  %v1661_v49 = vld [vmem:[#allocation7 + $0xdf8] sm:$0xff]  ;;  %v9872_v60 = vcombine.low %v1529_v8, %v1533_v48 }
 0x422   :  { %v10001_v51 = vcombine.high %v1657_v50, %v1661_v49  ;;  %v1521_v39 = vld [vmem:[#allocation7 + $0x998] sm:$0xff]  ;;  %v10000_v58 = vcombine.low %v1657_v50, %v1661_v49 }
 0x423   :  { %8407 = vmatpush2.bf16.msra.mxu0 %v9656_v5  ;;  %v1525_v14 = vld [vmem:[#allocation7 + $0x9b8] sm:$0xff] }
 0x424   :  { %8448 = vmatpush2.bf16.msra.mxu1 %v9784_v7  ;;  %8408 = vmatprep.subr.bf16.mxu0 %v9649_v52  ;;  %v1649_v54 = vld [vmem:[#allocation7 + $0xd98] sm:$0xff]  ;;  %v9865_v29 = vcombine.high %v1521_v39, %v1525_v14 }
 0x425   :  { %8449 = vmatprep.subr.bf16.mxu1 %v9777_v9  ;;  %v1653_v2 = vld [vmem:[#allocation7 + $0xdb8] sm:$0xff] }
 0x426   :  { %v1513_v5 = vld [vmem:[#allocation7 + $0x958] sm:$0xff]  ;;  %v9993_v9 = vcombine.high %v1649_v54, %v1653_v2 }
 0x427   :  { %8409 = vmatpush2.bf16.msra.mxu0 %v9648_v6  ;;  %v1517_v7 = vld [vmem:[#allocation7 + $0x978] sm:$0xff]  ;;  %v9864_v6 = vcombine.low %v1521_v39, %v1525_v14 }
 0x428   :  { %8450 = vmatpush2.bf16.msra.mxu1 %v9776_v18  ;;  %8410 = vmatprep.subr.bf16.mxu0 %v9641_v19  ;;  %v1641_v1 = vld [vmem:[#allocation7 + $0xd58] sm:$0xff]  ;;  %v9992_v19 = vcombine.low %v1649_v54, %v1653_v2 }
 0x429   :  { %8451 = vmatprep.subr.bf16.mxu1 %v9769_v22  ;;  %v1645_v15 = vld [vmem:[#allocation7 + $0xd78] sm:$0xff]  ;;  %v9857_v22 = vcombine.high %v1513_v5, %v1517_v7 }
 0x42a   :  { %v1505_v31 = vld [vmem:[#allocation7 + $0x918] sm:$0xff] }
 0x42b   :  { %8411 = vmatpush2.bf16.msra.mxu0 %v9640_v13  ;;  %v1509_v26 = vld [vmem:[#allocation7 + $0x938] sm:$0xff] }
 0x42c   :  { %8452 = vmatpush2.bf16.msra.mxu1 %v9768_v34  ;;  %8412 = vmatprep.subr.bf16.mxu0 %v9633_v35  ;;  %v1633_v13 = vld [vmem:[#allocation7 + $0xd18] sm:$0xff]  ;;  %v9849_v38 = vcombine.high %v1505_v31, %v1509_v26 }
 0x42d   :  { %8453 = vmatprep.subr.bf16.mxu1 %v9761_v36  ;;  %v1637_v34 = vld [vmem:[#allocation7 + $0xd38] sm:$0xff]  ;;  %v9856_v36 = vcombine.low %v1513_v5, %v1517_v7 }
 0x42e   :  { %v9977_v40 = vcombine.high %v1633_v13, %v1637_v34  ;;  %v1497_v4 = vld [vmem:[#allocation7 + $0x8d8] sm:$0xff]  ;;  %v9976_v8 = vcombine.low %v1633_v13, %v1637_v34 }
 0x42f   :  { %8413 = vmatpush2.bf16.msra.mxu0 %v9632_v0  ;;  %v1501_v0 = vld [vmem:[#allocation7 + $0x8f8] sm:$0xff] }
 0x430   :  { %8454 = vmatpush2.bf16.msra.mxu1 %v9760_v27  ;;  %8414 = vmatprep.subr.bf16.mxu0 %v9625_v47  ;;  %v1625_v27 = vld [vmem:[#allocation7 + $0xcd8] sm:$0xff]  ;;  %v9841_v48 = vcombine.high %v1497_v4, %v1501_v0 }
 0x431   :  { %8455 = vmatprep.subr.bf16.mxu1 %v9753_v23  ;;  %v1629_v47 = vld [vmem:[#allocation7 + $0xcf8] sm:$0xff]  ;;  %v9848_v23 = vcombine.low %v1505_v31, %v1509_v26 }
 0x432   :  { %v9969_v50 = vcombine.high %v1625_v27, %v1629_v47  ;;  %v1489_v49 = vld [vmem:[#allocation7 + $0x898] sm:$0xff]  ;;  %v9968_v39 = vcombine.low %v1625_v27, %v1629_v47 }
 0x433   :  { %8415 = vmatpush2.bf16.msra.mxu0 %v9624_v55  ;;  %v1493_v55 = vld [vmem:[#allocation7 + $0x8b8] sm:$0xff] }
 0x434   :  { %8456 = vmatpush2.bf16.msra.mxu1 %v9752_v57  ;;  %8466 = vmatprep.subr.bf16.mxu0 %v9873_v43  ;;  %v1617_v57 = vld [vmem:[#allocation7 + $0xc98] sm:$0xff]  ;;  %v9833_v14 = vcombine.high %v1489_v49, %v1493_v55  ;;  %v9832_v5 = vcombine.low %v1489_v49, %v1493_v55 }
 0x435   :  { %8507 = vmatprep.subr.bf16.mxu1 %v10001_v51  ;;  %v1621_v43 = vld [vmem:[#allocation7 + $0xcb8] sm:$0xff]  ;;  %v9840_v51 = vcombine.low %v1497_v4, %v1501_v0 }
 0x436   :  { %v8172_v52 = vpop.f32.mrf.mxu0  ;;  %8417 = vmatmul.mubr.bf16.vlgmr.msra.gmra.mxu0 %v11052_v25  ;;  %v1481_v54 = vld [vmem:[#allocation7 + $0x858] sm:$0xff]  ;;  %v9960_v7 = vcombine.low %v1617_v57, %v1621_v43 }
 0x437   :  { %v8173_v16 = vadd.f32 %v8172_v52, %v11213_v59  ;;  %v8213_v17 = vpop.f32.mrf.mxu1  ;;  %8458 = vmatmul.mubr.bf16.vlgmr.msra.gmra.mxu1 %v11048_v21  ;;  %8467 = vmatpush1.bf16.msra.mxu0 %v9872_v60  ;;  %v9985_v59 = vcombine.high %v1641_v1, %v1645_v15  ;;  %v9961_v60 = vcombine.high %v1617_v57, %v1621_v43  ;;  %v1485_v2 = vld [vmem:[#allocation7 + $0x878] sm:$0xff] }
 0x438   :  { %8498 = vmatprep.mubr.bf16.mxu0 %v11064_v37  ;;  %8508 = vmatpush1.bf16.msra.mxu1 %v10000_v58  ;;  %v8174_v18 = vpop.f32.mrf.mxu0  ;;  %v1609_v58 = vld [vmem:[#allocation7 + $0xc58] sm:$0xff]  ;;  %v9825_v52 = vcombine.high %v1481_v54, %v1485_v2 }
 0x439   :  { %v11222_v24 = vadd.f32 %v8213_v17, %v8173_v16  ;;  %8539 = vmatprep.mubr.bf16.mxu1 %v11066_v42  ;;  %v8175_v25 = vadd.f32 %v8174_v18, %v11216_v20  ;;  %v8215_v28 = vpop.f32.mrf.mxu1  ;;  %8468 = vmatprep.subr.bf16.mxu0 %v9865_v29  ;;  %v9984_v42 = vcombine.low %v1641_v1, %v1645_v15  ;;  %v1613_v29 = vld [vmem:[#allocation7 + $0xc78] sm:$0xff] }
 0x43a   :  { %v8176_v21 = vpop.f32.mrf.mxu0  ;;  %8509 = vmatprep.subr.bf16.mxu1 %v9993_v9  ;;  %v9953_v9 = vcombine.high %v1609_v58, %v1613_v29  ;;  %v1473_v1 = vld [vmem:[#allocation7 + $0x818] sm:$0xff]  ;;  %v9952_v18 = vcombine.low %v1609_v58, %v1613_v29 }
 0x43b   :  { %v11226_v37 = vadd.f32 %v8215_v28, %v8175_v25  ;;  %v8217_v35 = vpop.f32.mrf.mxu1  ;;  %8469 = vmatpush1.bf16.msra.mxu0 %v9864_v6  ;;  %v1477_v15 = vld [vmem:[#allocation7 + $0x838] sm:$0xff]  ;;  %v9824_v6 = vcombine.low %v1481_v54, %v1485_v2 }
 0x43c   :  { %8510 = vmatpush1.bf16.msra.mxu1 %v9992_v19  ;;  %v8177_v12 = vpop.f32.mrf.mxu0  ;;  %8470 = vmatprep.subr.bf16.mxu0 %v9857_v22  ;;  %v1601_v16 = vld [vmem:[#allocation7 + $0xc18] sm:$0xff]  ;;  %v9817_v19 = vcombine.high %v1473_v1, %v1477_v15  ;;  %v9816_v26 = vcombine.low %v1473_v1, %v1477_v15 }
 0x43d   :  { %v8218_v20 = vpop.f32.mrf.mxu1  ;;  %8511 = vmatprep.subr.bf16.mxu1 %v9985_v59  ;;  %v1605_v17 = vld [vmem:[#allocation7 + $0xc38] sm:$0xff] }
 0x43e   :  { %v9945_v22 = vcombine.high %v1601_v16, %v1605_v17  ;;  %v1593_v25 = vld [vmem:[#allocation7 + $0xbd8] sm:$0xff]  ;;  %v9944_v21 = vcombine.low %v1601_v16, %v1605_v17 }
 0x43f   :  { %8471 = vmatpush1.bf16.msra.mxu0 %v9856_v36  ;;  %v1597_v28 = vld [vmem:[#allocation7 + $0xbf8] sm:$0xff] }
 0x440   :  { %8512 = vmatpush1.bf16.msra.mxu1 %v9984_v42  ;;  %8472 = vmatprep.subr.bf16.mxu0 %v9849_v38  ;;  %v1721_v59 = vld [vmem:[#allocation7 + $0xfd8] sm:$0xff]  ;;  %v9937_v13 = vcombine.high %v1593_v25, %v1597_v28  ;;  %v9936_v38 = vcombine.low %v1593_v25, %v1597_v28 }
 0x441   :  { %8513 = vmatprep.subr.bf16.mxu1 %v9977_v40  ;;  %v1725_v31 = vld [vmem:[#allocation7 + $0xff8] sm:$0xff] }
 0x442   :  { %v10065_v34 = vcombine.high %v1721_v59, %v1725_v31  ;;  %v1585_v35 = vld [vmem:[#allocation7 + $0xb98] sm:$0xff]  ;;  %v10064_v20 = vcombine.low %v1721_v59, %v1725_v31 }
 0x443   :  { %8473 = vmatpush1.bf16.msra.mxu0 %v9848_v23  ;;  %v1589_v36 = vld [vmem:[#allocation7 + $0xbb8] sm:$0xff] }
 0x444   :  { %8514 = vmatpush1.bf16.msra.mxu1 %v9976_v8  ;;  %8474 = vmatprep.subr.bf16.mxu0 %v9841_v48  ;;  %v1713_v12 = vld [vmem:[#allocation7 + $0xf98] sm:$0xff]  ;;  %v9929_v40 = vcombine.high %v1585_v35, %v1589_v36  ;;  %v9928_v8 = vcombine.low %v1585_v35, %v1589_v36 }
 0x445   :  { %8515 = vmatprep.subr.bf16.mxu1 %v9969_v50  ;;  %v1717_v42 = vld [vmem:[#allocation7 + $0xfb8] sm:$0xff] }
 0x446   :  { %v10057_v4 = vcombine.high %v1713_v12, %v1717_v42  ;;  %v1577_v0 = vld [vmem:[#allocation7 + $0xb58] sm:$0xff]  ;;  %v10056_v48 = vcombine.low %v1713_v12, %v1717_v42 }
 0x447   :  { %8475 = vmatpush1.bf16.msra.mxu0 %v9840_v51  ;;  %v1581_v27 = vld [vmem:[#allocation7 + $0xb78] sm:$0xff] }
 0x448   :  { %8516 = vmatpush1.bf16.msra.mxu1 %v9968_v39  ;;  %8476 = vmatprep.subr.bf16.mxu0 %v9833_v14  ;;  %v1705_v47 = vld [vmem:[#allocation7 + $0xf58] sm:$0xff]  ;;  %v9921_v50 = vcombine.high %v1577_v0, %v1581_v27  ;;  %v9920_v39 = vcombine.low %v1577_v0, %v1581_v27 }
 0x449   :  { %8517 = vmatprep.subr.bf16.mxu1 %v9961_v60  ;;  %v1709_v23 = vld [vmem:[#allocation7 + $0xf78] sm:$0xff] }
 0x44a   :  { %v10049_v49 = vcombine.high %v1705_v47, %v1709_v23  ;;  %v1569_v55 = vld [vmem:[#allocation7 + $0xb18] sm:$0xff]  ;;  %v10048_v14 = vcombine.low %v1705_v47, %v1709_v23 }
 0x44b   :  { %8477 = vmatpush1.bf16.msra.mxu0 %v9832_v5  ;;  %v1573_v57 = vld [vmem:[#allocation7 + $0xb38] sm:$0xff] }
 0x44c   :  { %8518 = vmatpush1.bf16.msra.mxu1 %v9960_v7  ;;  %8478 = vmatprep.subr.bf16.mxu0 %v9825_v52  ;;  %v1697_v43 = vld [vmem:[#allocation7 + $0xf18] sm:$0xff]  ;;  %v9913_v60 = vcombine.high %v1569_v55, %v1573_v57  ;;  %v9912_v7 = vcombine.low %v1569_v55, %v1573_v57 }
 0x44d   :  { %8519 = vmatprep.subr.bf16.mxu1 %v9953_v9  ;;  %v1701_v51 = vld [vmem:[#allocation7 + $0xf38] sm:$0xff] }
 0x44e   :  { %v10041_v54 = vcombine.high %v1697_v43, %v1701_v51  ;;  %v1561_v2 = vld [vmem:[#allocation7 + $0xad8] sm:$0xff]  ;;  %v10040_v52 = vcombine.low %v1697_v43, %v1701_v51 }
 0x44f   :  { %8479 = vmatpush1.bf16.msra.mxu0 %v9824_v6  ;;  %v1565_v58 = vld [vmem:[#allocation7 + $0xaf8] sm:$0xff] }
 0x450   :  { %8520 = vmatpush1.bf16.msra.mxu1 %v9952_v18  ;;  %8480 = vmatprep.subr.bf16.mxu0 %v9817_v19  ;;  %v1689_v29 = vld [vmem:[#allocation7 + $0xed8] sm:$0xff]  ;;  %v9905_v9 = vcombine.high %v1561_v2, %v1565_v58  ;;  %v9904_v18 = vcombine.low %v1561_v2, %v1565_v58 }
 0x451   :  { %8521 = vmatprep.subr.bf16.mxu1 %v9945_v22  ;;  %v1693_v5 = vld [vmem:[#allocation7 + $0xef8] sm:$0xff] }
 0x452   :  { %v10033_v1 = vcombine.high %v1689_v29, %v1693_v5  ;;  %v1553_v15 = vld [vmem:[#allocation7 + $0xa98] sm:$0xff]  ;;  %v10032_v19 = vcombine.low %v1689_v29, %v1693_v5 }
 0x453   :  { %8481 = vmatpush1.bf16.msra.mxu0 %v9816_v26  ;;  %v1557_v16 = vld [vmem:[#allocation7 + $0xab8] sm:$0xff] }
 0x454   :  { %8522 = vmatpush1.bf16.msra.mxu1 %v9944_v21  ;;  %8482 = vmatprep.subr.bf16.mxu0 %v9937_v13  ;;  %v1681_v17 = vld [vmem:[#allocation7 + $0xe98] sm:$0xff]  ;;  %v9897_v22 = vcombine.high %v1553_v15, %v1557_v16  ;;  %v9896_v21 = vcombine.low %v1553_v15, %v1557_v16 }
 0x455   :  { %8523 = vmatprep.subr.bf16.mxu1 %v10065_v34  ;;  %v1685_v6 = vld [vmem:[#allocation7 + $0xeb8] sm:$0xff] }
 0x456   :  { %v10025_v25 = vcombine.high %v1681_v17, %v1685_v6  ;;  %v1545_v28 = vld [vmem:[#allocation7 + $0xa58] sm:$0xff]  ;;  %v10024_v13 = vcombine.low %v1681_v17, %v1685_v6 }
 0x457   :  { %8483 = vmatpush2.bf16.msra.mxu0 %v9936_v38  ;;  %v1549_v59 = vld [vmem:[#allocation7 + $0xa78] sm:$0xff] }
 0x458   :  { %8524 = vmatpush2.bf16.msra.mxu1 %v10064_v20  ;;  %8484 = vmatprep.subr.bf16.mxu0 %v9929_v40  ;;  %v1673_v31 = vld [vmem:[#allocation7 + $0xe58] sm:$0xff]  ;;  %v9889_v34 = vcombine.high %v1545_v28, %v1549_v59  ;;  %v9888_v20 = vcombine.low %v1545_v28, %v1549_v59 }
 0x459   :  { %8525 = vmatprep.subr.bf16.mxu1 %v10057_v4  ;;  %v1677_v26 = vld [vmem:[#allocation7 + $0xe78] sm:$0xff] }
 0x45a   :  { %v10017_v35 = vcombine.high %v1673_v31, %v1677_v26  ;;  %v1537_v36 = vld [vmem:[#allocation7 + $0xa18] sm:$0xff]  ;;  %v10016_v40 = vcombine.low %v1673_v31, %v1677_v26 }
 0x45b   :  { %8485 = vmatpush2.bf16.msra.mxu0 %v9928_v8  ;;  %v1541_v12 = vld [vmem:[#allocation7 + $0xa38] sm:$0xff] }
 0x45c   :  { %8526 = vmatpush2.bf16.msra.mxu1 %v10056_v48  ;;  %8486 = vmatprep.subr.bf16.mxu0 %v9921_v50  ;;  %v1665_v42 = vld [vmem:[#allocation7 + $0xe18] sm:$0xff]  ;;  %v9881_v4 = vcombine.high %v1537_v36, %v1541_v12  ;;  %v9880_v48 = vcombine.low %v1537_v36, %v1541_v12 }
 0x45d   :  { %8527 = vmatprep.subr.bf16.mxu1 %v10049_v49  ;;  %v1669_v38 = vld [vmem:[#allocation7 + $0xe38] sm:$0xff] }
 0x45e   :  { %v10009_v0 = vcombine.high %v1665_v42, %v1669_v38  ;;  %v1785_v27 = vld [vmem:[#allocation7 + $0x11d8] sm:$0xff]  ;;  %v10008_v50 = vcombine.low %v1665_v42, %v1669_v38 }
 0x45f   :  { %8487 = vmatpush2.bf16.msra.mxu0 %v9920_v39  ;;  %v1789_v47 = vld [vmem:[#allocation7 + $0x11f8] sm:$0xff] }
 0x460   :  { %8528 = vmatpush2.bf16.msra.mxu1 %v10048_v14  ;;  %8488 = vmatprep.subr.bf16.mxu0 %v9913_v60  ;;  %v1913_v23 = vld [vmem:[#allocation7 + $0x15d8] sm:$0xff]  ;;  %v10129_v49 = vcombine.high %v1785_v27, %v1789_v47  ;;  %v10128_v51 = vcombine.low %v1785_v27, %v1789_v47 }
 0x461   :  { %8529 = vmatprep.subr.bf16.mxu1 %v10041_v54  ;;  %v1917_v8 = vld [vmem:[#allocation7 + $0x15f8] sm:$0xff] }
 0x462   :  { %v10257_v55 = vcombine.high %v1913_v23, %v1917_v8  ;;  %v1777_v57 = vld [vmem:[#allocation7 + $0x1198] sm:$0xff]  ;;  %v10256_v60 = vcombine.low %v1913_v23, %v1917_v8 }
 0x463   :  { %8489 = vmatpush2.bf16.msra.mxu0 %v9912_v7  ;;  %v1781_v43 = vld [vmem:[#allocation7 + $0x11b8] sm:$0xff] }
 0x464   :  { %8530 = vmatpush2.bf16.msra.mxu1 %v10040_v52  ;;  %8490 = vmatprep.subr.bf16.mxu0 %v9905_v9  ;;  %v1905_v39 = vld [vmem:[#allocation7 + $0x1598] sm:$0xff]  ;;  %v10121_v54 = vcombine.high %v1777_v57, %v1781_v43  ;;  %v10120_v15 = vcombine.low %v1777_v57, %v1781_v43 }
 0x465   :  { %8531 = vmatprep.subr.bf16.mxu1 %v10033_v1  ;;  %v1909_v14 = vld [vmem:[#allocation7 + $0x15b8] sm:$0xff] }
 0x466   :  { %v1769_v2 = vld [vmem:[#allocation7 + $0x1158] sm:$0xff]  ;;  %v10249_v5 = vcombine.high %v1905_v39, %v1909_v14  ;;  %v10248_v17 = vcombine.low %v1905_v39, %v1909_v14 }
 0x467   :  { %8491 = vmatpush2.bf16.msra.mxu0 %v9904_v18  ;;  %v1773_v58 = vld [vmem:[#allocation7 + $0x1178] sm:$0xff] }
 0x468   :  { %8532 = vmatpush2.bf16.msra.mxu1 %v10032_v19  ;;  %8492 = vmatprep.subr.bf16.mxu0 %v9897_v22  ;;  %v1897_v7 = vld [vmem:[#allocation7 + $0x1558] sm:$0xff]  ;;  %v10113_v6 = vcombine.high %v1769_v2, %v1773_v58  ;;  %v10112_v26 = vcombine.low %v1769_v2, %v1773_v58 }
 0x469   :  { %8533 = vmatprep.subr.bf16.mxu1 %v10025_v25  ;;  %v1901_v52 = vld [vmem:[#allocation7 + $0x1578] sm:$0xff] }
 0x46a   :  { %v1761_v22 = vld [vmem:[#allocation7 + $0x1118] sm:$0xff] }
 0x46b   :  { %8493 = vmatpush2.bf16.msra.mxu0 %v9896_v21  ;;  %v1765_v25 = vld [vmem:[#allocation7 + $0x1138] sm:$0xff] }
 0x46c   :  { %8534 = vmatpush2.bf16.msra.mxu1 %v10024_v13  ;;  %8494 = vmatprep.subr.bf16.mxu0 %v9889_v34  ;;  %v1889_v28 = vld [vmem:[#allocation7 + $0x1518] sm:$0xff]  ;;  %v10105_v13 = vcombine.high %v1761_v22, %v1765_v25  ;;  %v10104_v38 = vcombine.low %v1761_v22, %v1765_v25 }
 0x46d   :  { %8535 = vmatprep.subr.bf16.mxu1 %v10017_v35  ;;  %v1893_v59 = vld [vmem:[#allocation7 + $0x1538] sm:$0xff] }
 0x46e   :  { %v10233_v34 = vcombine.high %v1889_v28, %v1893_v59  ;;  %v1753_v35 = vld [vmem:[#allocation7 + $0x10d8] sm:$0xff] }
 0x46f   :  { %8495 = vmatpush2.bf16.msra.mxu0 %v9888_v20  ;;  %v1757_v36 = vld [vmem:[#allocation7 + $0x10f8] sm:$0xff]  ;;  %v10232_v20 = vcombine.low %v1889_v28, %v1893_v59 }
 0x470   :  { %8536 = vmatpush2.bf16.msra.mxu1 %v10016_v40  ;;  %8496 = vmatprep.subr.bf16.mxu0 %v9881_v4  ;;  %v1881_v12 = vld [vmem:[#allocation7 + $0x14d8] sm:$0xff]  ;;  %v10097_v40 = vcombine.high %v1753_v35, %v1757_v36  ;;  %v10096_v8 = vcombine.low %v1753_v35, %v1757_v36 }
 0x471   :  { %8537 = vmatprep.subr.bf16.mxu1 %v10009_v0  ;;  %v1885_v42 = vld [vmem:[#allocation7 + $0x14f8] sm:$0xff] }
 0x472   :  { %v10225_v4 = vcombine.high %v1881_v12, %v1885_v42  ;;  %v1745_v0 = vld [vmem:[#allocation7 + $0x1098] sm:$0xff] }
 0x473   :  { %8497 = vmatpush2.bf16.msra.mxu0 %v9880_v48  ;;  %v1749_v27 = vld [vmem:[#allocation7 + $0x10b8] sm:$0xff]  ;;  %v10224_v48 = vcombine.low %v1881_v12, %v1885_v42 }
 0x474   :  { %8538 = vmatpush2.bf16.msra.mxu1 %v10008_v50  ;;  %8548 = vmatprep.subr.bf16.mxu0 %v10129_v49  ;;  %v1873_v47 = vld [vmem:[#allocation7 + $0x1498] sm:$0xff]  ;;  %v10089_v50 = vcombine.high %v1745_v0, %v1749_v27  ;;  %v10088_v39 = vcombine.low %v1745_v0, %v1749_v27 }
 0x475   :  { %8589 = vmatprep.subr.bf16.mxu1 %v10257_v55  ;;  %v1877_v23 = vld [vmem:[#allocation7 + $0x14b8] sm:$0xff] }
 0x476   :  { %v8254_v29 = vpop.f32.mrf.mxu0  ;;  %8499 = vmatmul.mubr.bf16.vlgmr.msra.gmra.mxu0 %v11080_v56  ;;  %v10217_v49 = vcombine.high %v1873_v47, %v1877_v23  ;;  %v1737_v55 = vld [vmem:[#allocation7 + $0x1058] sm:$0xff]  ;;  %v10216_v14 = vcombine.low %v1873_v47, %v1877_v23 }
 0x477   :  { %v8255_v9 = vadd.f32 %v8254_v29, %v11222_v24  ;;  %v8295_v1 = vpop.f32.mrf.mxu1  ;;  %8540 = vmatmul.mubr.bf16.vlgmr.msra.gmra.mxu1 %v11076_v53  ;;  %8549 = vmatpush1.bf16.msra.mxu0 %v10128_v51  ;;  %v10241_v24 = vcombine.high %v1897_v7, %v1901_v52  ;;  %v1741_v57 = vld [vmem:[#allocation7 + $0x1078] sm:$0xff] }
 0x478   :  { %8580 = vmatprep.mubr.bf16.mxu0 %v11082_v63  ;;  %8590 = vmatpush1.bf16.msra.mxu1 %v10256_v60  ;;  %v8256_v16 = vpop.f32.mrf.mxu0  ;;  %v1865_v43 = vld [vmem:[#allocation7 + $0x1458] sm:$0xff]  ;;  %v10081_v60 = vcombine.high %v1737_v55, %v1741_v57 }
 0x479   :  { %v11232_v18 = vadd.f32 %v8295_v1, %v8255_v9  ;;  %8621 = vmatprep.mubr.bf16.mxu1 %v11085_v3  ;;  %v8257_v56 = vadd.f32 %v8256_v16, %v11226_v37  ;;  %v8297_v19 = vpop.f32.mrf.mxu1  ;;  %8550 = vmatprep.subr.bf16.mxu0 %v10121_v54  ;;  %v10240_v3 = vcombine.low %v1897_v7, %v1901_v52  ;;  %v1869_v51 = vld [vmem:[#allocation7 + $0x1478] sm:$0xff] }
 0x47a   :  { %v8258_v53 = vpop.f32.mrf.mxu0  ;;  %8591 = vmatprep.subr.bf16.mxu1 %v10249_v5  ;;  %v10209_v54 = vcombine.high %v1865_v43, %v1869_v51  ;;  %v1729_v2 = vld [vmem:[#allocation7 + $0x1018] sm:$0xff]  ;;  %v10080_v7 = vcombine.low %v1737_v55, %v1741_v57  ;;  %v10208_v52 = vcombine.low %v1865_v43, %v1869_v51 }
 0x47b   :  { %v11236_v63 = vadd.f32 %v8297_v19, %v8257_v56  ;;  %v8299_v31 = vpop.f32.mrf.mxu1  ;;  %8551 = vmatpush1.bf16.msra.mxu0 %v10120_v15  ;;  %v1733_v58 = vld [vmem:[#allocation7 + $0x1038] sm:$0xff] }
 0x47c   :  { %8592 = vmatpush1.bf16.msra.mxu1 %v10248_v17  ;;  %v8259_v21 = vpop.f32.mrf.mxu0  ;;  %8552 = vmatprep.subr.bf16.mxu0 %v10113_v6  ;;  %v1857_v29 = vld [vmem:[#allocation7 + $0x1418] sm:$0xff]  ;;  %v10073_v9 = vcombine.high %v1729_v2, %v1733_v58  ;;  %v10072_v56 = vcombine.low %v1729_v2, %v1733_v58 }
 0x47d   :  { %v8300_v37 = vpop.f32.mrf.mxu1  ;;  %8593 = vmatprep.subr.bf16.mxu1 %v10241_v24  ;;  %v1861_v5 = vld [vmem:[#allocation7 + $0x1438] sm:$0xff] }
 0x47e   :  { %v10201_v1 = vcombine.high %v1857_v29, %v1861_v5  ;;  %v1849_v15 = vld [vmem:[#allocation7 + $0x13d8] sm:$0xff]  ;;  %v10200_v19 = vcombine.low %v1857_v29, %v1861_v5 }
 0x47f   :  { %8553 = vmatpush1.bf16.msra.mxu0 %v10112_v26  ;;  %v1853_v16 = vld [vmem:[#allocation7 + $0x13f8] sm:$0xff] }
 0x480   :  { %8594 = vmatpush1.bf16.msra.mxu1 %v10240_v3  ;;  %8554 = vmatprep.subr.bf16.mxu0 %v10105_v13  ;;  %v1977_v17 = vld [vmem:[#allocation7 + $0x17d8] sm:$0xff]  ;;  %v10193_v24 = vcombine.high %v1849_v15, %v1853_v16  ;;  %v10192_v31 = vcombine.low %v1849_v15, %v1853_v16 }
 0x481   :  { %8595 = vmatprep.subr.bf16.mxu1 %v10233_v34  ;;  %v1981_v6 = vld [vmem:[#allocation7 + $0x17f8] sm:$0xff] }
 0x482   :  { %v10321_v22 = vcombine.high %v1977_v17, %v1981_v6  ;;  %v1841_v25 = vld [vmem:[#allocation7 + $0x1398] sm:$0xff]  ;;  %v10320_v26 = vcombine.low %v1977_v17, %v1981_v6 }
 0x483   :  { %8555 = vmatpush1.bf16.msra.mxu0 %v10104_v38  ;;  %v1845_v53 = vld [vmem:[#allocation7 + $0x13b8] sm:$0xff] }
 0x484   :  { %8596 = vmatpush1.bf16.msra.mxu1 %v10232_v20  ;;  %8556 = vmatprep.subr.bf16.mxu0 %v10097_v40  ;;  %v1969_v28 = vld [vmem:[#allocation7 + $0x1798] sm:$0xff]  ;;  %v10185_v21 = vcombine.high %v1841_v25, %v1845_v53  ;;  %v10184_v36 = vcombine.low %v1841_v25, %v1845_v53 }
 0x485   :  { %8597 = vmatprep.subr.bf16.mxu1 %v10225_v4  ;;  %v1973_v59 = vld [vmem:[#allocation7 + $0x17b8] sm:$0xff] }
 0x486   :  { %v10313_v3 = vcombine.high %v1969_v28, %v1973_v59  ;;  %v1833_v13 = vld [vmem:[#allocation7 + $0x1358] sm:$0xff]  ;;  %v10312_v12 = vcombine.low %v1969_v28, %v1973_v59 }
 0x487   :  { %8557 = vmatpush1.bf16.msra.mxu0 %v10096_v8  ;;  %v1837_v37 = vld [vmem:[#allocation7 + $0x1378] sm:$0xff] }
 0x488   :  { %8598 = vmatpush1.bf16.msra.mxu1 %v10224_v48  ;;  %8558 = vmatprep.subr.bf16.mxu0 %v10089_v50  ;;  %v1961_v34 = vld [vmem:[#allocation7 + $0x1758] sm:$0xff]  ;;  %v10177_v42 = vcombine.high %v1833_v13, %v1837_v37  ;;  %v10176_v27 = vcombine.low %v1833_v13, %v1837_v37 }
 0x489   :  { %8599 = vmatprep.subr.bf16.mxu1 %v10217_v49  ;;  %v1965_v35 = vld [vmem:[#allocation7 + $0x1778] sm:$0xff] }
 0x48a   :  { %v10305_v38 = vcombine.high %v1961_v34, %v1965_v35  ;;  %v1825_v20 = vld [vmem:[#allocation7 + $0x1318] sm:$0xff]  ;;  %v10304_v47 = vcombine.low %v1961_v34, %v1965_v35 }
 0x48b   :  { %8559 = vmatpush1.bf16.msra.mxu0 %v10088_v39  ;;  %v1829_v40 = vld [vmem:[#allocation7 + $0x1338] sm:$0xff] }
 0x48c   :  { %8600 = vmatpush1.bf16.msra.mxu1 %v10216_v14  ;;  %8560 = vmatprep.subr.bf16.mxu0 %v10081_v60  ;;  %v1953_v4 = vld [vmem:[#allocation7 + $0x1718] sm:$0xff]  ;;  %v10169_v23 = vcombine.high %v1825_v20, %v1829_v40  ;;  %v10168_v57 = vcombine.low %v1825_v20, %v1829_v40 }
 0x48d   :  { %8601 = vmatprep.subr.bf16.mxu1 %v10209_v54  ;;  %v1957_v0 = vld [vmem:[#allocation7 + $0x1738] sm:$0xff] }
 0x48e   :  { %v10297_v8 = vcombine.high %v1953_v4, %v1957_v0  ;;  %v1817_v48 = vld [vmem:[#allocation7 + $0x12d8] sm:$0xff]  ;;  %v10296_v43 = vcombine.low %v1953_v4, %v1957_v0 }
 0x48f   :  { %8561 = vmatpush1.bf16.msra.mxu0 %v10080_v7  ;;  %v1821_v50 = vld [vmem:[#allocation7 + $0x12f8] sm:$0xff] }
 0x490   :  { %8602 = vmatpush1.bf16.msra.mxu1 %v10208_v52  ;;  %8562 = vmatprep.subr.bf16.mxu0 %v10073_v9  ;;  %v1945_v49 = vld [vmem:[#allocation7 + $0x16d8] sm:$0xff]  ;;  %v10161_v51 = vcombine.high %v1817_v48, %v1821_v50  ;;  %v10160_v58 = vcombine.low %v1817_v48, %v1821_v50 }
 0x491   :  { %8603 = vmatprep.subr.bf16.mxu1 %v10201_v1  ;;  %v1949_v55 = vld [vmem:[#allocation7 + $0x16f8] sm:$0xff] }
 0x492   :  { %v10289_v39 = vcombine.high %v1945_v49, %v1949_v55  ;;  %v1809_v14 = vld [vmem:[#allocation7 + $0x1298] sm:$0xff]  ;;  %v10288_v29 = vcombine.low %v1945_v49, %v1949_v55 }
 0x493   :  { %8563 = vmatpush1.bf16.msra.mxu0 %v10072_v56  ;;  %v1813_v60 = vld [vmem:[#allocation7 + $0x12b8] sm:$0xff] }
 0x494   :  { %8604 = vmatpush1.bf16.msra.mxu1 %v10200_v19  ;;  %8564 = vmatprep.subr.bf16.mxu0 %v10193_v24  ;;  %v1937_v54 = vld [vmem:[#allocation7 + $0x1698] sm:$0xff]  ;;  %v10153_v5 = vcombine.high %v1809_v14, %v1813_v60  ;;  %v10152_v16 = vcombine.low %v1809_v14, %v1813_v60 }
 0x495   :  { %8605 = vmatprep.subr.bf16.mxu1 %v10321_v22  ;;  %v1941_v2 = vld [vmem:[#allocation7 + $0x16b8] sm:$0xff] }
 0x496   :  { %v10281_v7 = vcombine.high %v1937_v54, %v1941_v2  ;;  %v1801_v52 = vld [vmem:[#allocation7 + $0x1258] sm:$0xff]  ;;  %v10280_v17 = vcombine.low %v1937_v54, %v1941_v2 }
 0x497   :  { %8565 = vmatpush2.bf16.msra.mxu0 %v10192_v31  ;;  %v1805_v9 = vld [vmem:[#allocation7 + $0x1278] sm:$0xff] }
 0x498   :  { %8606 = vmatpush2.bf16.msra.mxu1 %v10320_v26  ;;  %8566 = vmatprep.subr.bf16.mxu0 %v10185_v21  ;;  %v1929_v1 = vld [vmem:[#allocation7 + $0x1658] sm:$0xff]  ;;  %v10145_v6 = vcombine.high %v1801_v52, %v1805_v9  ;;  %v10144_v53 = vcombine.low %v1801_v52, %v1805_v9 }
 0x499   :  { %8607 = vmatprep.subr.bf16.mxu1 %v10313_v3  ;;  %v1933_v15 = vld [vmem:[#allocation7 + $0x1678] sm:$0xff] }
 0x49a   :  { %v10273_v56 = vcombine.high %v1929_v1, %v1933_v15  ;;  %v1793_v19 = vld [vmem:[#allocation7 + $0x1218] sm:$0xff]  ;;  %v10272_v28 = vcombine.low %v1929_v1, %v1933_v15 }
 0x49b   :  { %8567 = vmatpush2.bf16.msra.mxu0 %v10184_v36  ;;  %v1797_v24 = vld [vmem:[#allocation7 + $0x1238] sm:$0xff] }
 0x49c   :  { %8608 = vmatpush2.bf16.msra.mxu1 %v10312_v12  ;;  %8568 = vmatprep.subr.bf16.mxu0 %v10177_v42  ;;  %v1921_v22 = vld [vmem:[#allocation7 + $0x1618] sm:$0xff]  ;;  %v10137_v59 = vcombine.high %v1793_v19, %v1797_v24  ;;  %v10136_v37 = vcombine.low %v1793_v19, %v1797_v24 }
 0x49d   :  { %8609 = vmatprep.subr.bf16.mxu1 %v10305_v38  ;;  %v1925_v25 = vld [vmem:[#allocation7 + $0x1638] sm:$0xff] }
 0x49e   :  { %v10265_v31 = vcombine.high %v1921_v22, %v1925_v25  ;;  %v2041_v26 = vld [vmem:[#allocation7 + $0x19d8] sm:$0xff]  ;;  %v10264_v34 = vcombine.low %v1921_v22, %v1925_v25 }
 0x49f   :  { %8569 = vmatpush2.bf16.msra.mxu0 %v10176_v27  ;;  %v2045_v21 = vld [vmem:[#allocation7 + $0x19f8] sm:$0xff] }
 0x4a0   :  { %8610 = vmatpush2.bf16.msra.mxu1 %v10304_v47  ;;  %8570 = vmatprep.subr.bf16.mxu0 %v10169_v23  ;;  %v2169_v3 = vld [vmem:[#allocation7 + $0x1dd8] sm:$0xff]  ;;  %v10385_v35 = vcombine.high %v2041_v26, %v2045_v21  ;;  %v10384_v38 = vcombine.low %v2041_v26, %v2045_v21 }
 0x4a1   :  { %8611 = vmatprep.subr.bf16.mxu1 %v10297_v8  ;;  %v2173_v13 = vld [vmem:[#allocation7 + $0x1df8] sm:$0xff] }
 0x4a2   :  { %v10513_v36 = vcombine.high %v2169_v3, %v2173_v13  ;;  %v2033_v12 = vld [vmem:[#allocation7 + $0x1998] sm:$0xff]  ;;  %v10512_v4 = vcombine.low %v2169_v3, %v2173_v13 }
 0x4a3   :  { %8571 = vmatpush2.bf16.msra.mxu0 %v10168_v57  ;;  %v2037_v42 = vld [vmem:[#allocation7 + $0x19b8] sm:$0xff] }
 0x4a4   :  { %8612 = vmatpush2.bf16.msra.mxu1 %v10296_v43  ;;  %8572 = vmatprep.subr.bf16.mxu0 %v10161_v51  ;;  %v2161_v20 = vld [vmem:[#allocation7 + $0x1d98] sm:$0xff]  ;;  %v10377_v0 = vcombine.high %v2033_v12, %v2037_v42  ;;  %v10376_v57 = vcombine.low %v2033_v12, %v2037_v42 }
 0x4a5   :  { %8613 = vmatprep.subr.bf16.mxu1 %v10289_v39  ;;  %v2165_v40 = vld [vmem:[#allocation7 + $0x1db8] sm:$0xff] }
 0x4a6   :  { %v2025_v27 = vld [vmem:[#allocation7 + $0x1958] sm:$0xff]  ;;  %v10505_v8 = vcombine.high %v2161_v20, %v2165_v40  ;;  %v10504_v51 = vcombine.low %v2161_v20, %v2165_v40 }
 0x4a7   :  { %8573 = vmatpush2.bf16.msra.mxu0 %v10160_v58  ;;  %v2029_v47 = vld [vmem:[#allocation7 + $0x1978] sm:$0xff] }
 0x4a8   :  { %8614 = vmatpush2.bf16.msra.mxu1 %v10288_v29  ;;  %8574 = vmatprep.subr.bf16.mxu0 %v10153_v5  ;;  %v2153_v48 = vld [vmem:[#allocation7 + $0x1d58] sm:$0xff]  ;;  %v10369_v39 = vcombine.high %v2025_v27, %v2029_v47 }
 0x4a9   :  { %8615 = vmatprep.subr.bf16.mxu1 %v10281_v7  ;;  %v2157_v50 = vld [vmem:[#allocation7 + $0x1d78] sm:$0xff]  ;;  %v10368_v7 = vcombine.low %v2025_v27, %v2029_v47 }
 0x4aa   :  { %v2017_v54 = vld [vmem:[#allocation7 + $0x1918] sm:$0xff] }
 0x4ab   :  { %8575 = vmatpush2.bf16.msra.mxu0 %v10152_v16  ;;  %v2021_v2 = vld [vmem:[#allocation7 + $0x1938] sm:$0xff] }
 0x4ac   :  { %8616 = vmatpush2.bf16.msra.mxu1 %v10280_v17  ;;  %8576 = vmatprep.subr.bf16.mxu0 %v10145_v6  ;;  %v2145_v58 = vld [vmem:[#allocation7 + $0x1d18] sm:$0xff]  ;;  %v10361_v9 = vcombine.high %v2017_v54, %v2021_v2 }
 0x4ad   :  { %8617 = vmatprep.subr.bf16.mxu1 %v10273_v56  ;;  %v2149_v29 = vld [vmem:[#allocation7 + $0x1d38] sm:$0xff]  ;;  %v10360_v56 = vcombine.low %v2017_v54, %v2021_v2 }
 0x4ae   :  { %v10489_v1 = vcombine.high %v2145_v58, %v2149_v29  ;;  %v2009_v15 = vld [vmem:[#allocation7 + $0x18d8] sm:$0xff]  ;;  %v10488_v19 = vcombine.low %v2145_v58, %v2149_v29 }
 0x4af   :  { %8577 = vmatpush2.bf16.msra.mxu0 %v10144_v53  ;;  %v2013_v16 = vld [vmem:[#allocation7 + $0x18f8] sm:$0xff] }
 0x4b0   :  { %8618 = vmatpush2.bf16.msra.mxu1 %v10272_v28  ;;  %8578 = vmatprep.subr.bf16.mxu0 %v10137_v59  ;;  %v2137_v17 = vld [vmem:[#allocation7 + $0x1cd8] sm:$0xff]  ;;  %v10353_v24 = vcombine.high %v2009_v15, %v2013_v16 }
 0x4b1   :  { %8619 = vmatprep.subr.bf16.mxu1 %v10265_v31  ;;  %v2141_v6 = vld [vmem:[#allocation7 + $0x1cf8] sm:$0xff]  ;;  %v10352_v31 = vcombine.low %v2009_v15, %v2013_v16 }
 0x4b2   :  { %v10481_v22 = vcombine.high %v2137_v17, %v2141_v6  ;;  %v2001_v25 = vld [vmem:[#allocation7 + $0x1898] sm:$0xff]  ;;  %v10480_v26 = vcombine.low %v2137_v17, %v2141_v6 }
 0x4b3   :  { %8579 = vmatpush2.bf16.msra.mxu0 %v10136_v37  ;;  %v2005_v53 = vld [vmem:[#allocation7 + $0x18b8] sm:$0xff] }
 0x4b4   :  { %8620 = vmatpush2.bf16.msra.mxu1 %v10264_v34  ;;  %8630 = vmatprep.subr.bf16.mxu0 %v10385_v35  ;;  %v2129_v28 = vld [vmem:[#allocation7 + $0x1c98] sm:$0xff]  ;;  %v10345_v21 = vcombine.high %v2001_v25, %v2005_v53 }
 0x4b5   :  { %8671 = vmatprep.subr.bf16.mxu1 %v10513_v36  ;;  %v2133_v59 = vld [vmem:[#allocation7 + $0x1cb8] sm:$0xff]  ;;  %v10344_v36 = vcombine.low %v2001_v25, %v2005_v53 }
 0x4b6   :  { %v8336_v23 = vpop.f32.mrf.mxu0  ;;  %8581 = vmatmul.mubr.bf16.vlgmr.msra.gmra.mxu0 %v11100_v41  ;;  %v10473_v3 = vcombine.high %v2129_v28, %v2133_v59  ;;  %v1993_v13 = vld [vmem:[#allocation7 + $0x1858] sm:$0xff]  ;;  %v10472_v12 = vcombine.low %v2129_v28, %v2133_v59 }
 0x4b7   :  { %v8337_v49 = vadd.f32 %v8336_v23, %v11232_v18  ;;  %v8377_v55 = vpop.f32.mrf.mxu1  ;;  %8622 = vmatmul.mubr.bf16.vlgmr.msra.gmra.mxu1 %v11104_v44  ;;  %8631 = vmatpush1.bf16.msra.mxu0 %v10384_v38  ;;  %v10497_v18 = vcombine.high %v2153_v48, %v2157_v50  ;;  %v1997_v37 = vld [vmem:[#allocation7 + $0x1878] sm:$0xff] }
 0x4b8   :  { %8662 = vmatprep.mubr.bf16.mxu0 %v11108_v46  ;;  %8672 = vmatpush1.bf16.msra.mxu1 %v10512_v4  ;;  %v8338_v43 = vpop.f32.mrf.mxu0  ;;  %v2121_v34 = vld [vmem:[#allocation7 + $0x1c58] sm:$0xff]  ;;  %v10337_v42 = vcombine.high %v1993_v13, %v1997_v37  ;;  %v10336_v27 = vcombine.low %v1993_v13, %v1997_v37 }
 0x4b9   :  { %v11242_v14 = vadd.f32 %v8377_v55, %v8337_v49  ;;  %8703 = vmatprep.mubr.bf16.mxu1 %v11112_v45  ;;  %v8339_v41 = vadd.f32 %v8338_v43, %v11236_v63  ;;  %v8379_v60 = vpop.f32.mrf.mxu1  ;;  %8632 = vmatprep.subr.bf16.mxu0 %v10377_v0  ;;  %v10496_v45 = vcombine.low %v2153_v48, %v2157_v50  ;;  %v2125_v35 = vld [vmem:[#allocation7 + $0x1c78] sm:$0xff] }
 0x4ba   :  { %v8340_v44 = vpop.f32.mrf.mxu0  ;;  %8673 = vmatprep.subr.bf16.mxu1 %v10505_v8  ;;  %v10465_v38 = vcombine.high %v2121_v34, %v2125_v35  ;;  %v1985_v20 = vld [vmem:[#allocation7 + $0x1818] sm:$0xff]  ;;  %v10464_v47 = vcombine.low %v2121_v34, %v2125_v35 }
 0x4bb   :  { %v11246_v46 = vadd.f32 %v8379_v60, %v8339_v41  ;;  %v8381_v5 = vpop.f32.mrf.mxu1  ;;  %8633 = vmatpush1.bf16.msra.mxu0 %v10376_v57  ;;  %v1989_v40 = vld [vmem:[#allocation7 + $0x1838] sm:$0xff] }
 0x4bc   :  { %8674 = vmatpush1.bf16.msra.mxu1 %v10504_v51  ;;  %v8341_v52 = vpop.f32.mrf.mxu0  ;;  %8634 = vmatprep.subr.bf16.mxu0 %v10369_v39  ;;  %v2113_v4 = vld [vmem:[#allocation7 + $0x1c18] sm:$0xff]  ;;  %v10329_v23 = vcombine.high %v1985_v20, %v1989_v40  ;;  %v10328_v57 = vcombine.low %v1985_v20, %v1989_v40 }
 0x4bd   :  { %v8382_v63 = vpop.f32.mrf.mxu1  ;;  %8675 = vmatprep.subr.bf16.mxu1 %v10497_v18  ;;  %v2117_v0 = vld [vmem:[#allocation7 + $0x1c38] sm:$0xff] }
 0x4be   :  { %v10457_v8 = vcombine.high %v2113_v4, %v2117_v0  ;;  %v2105_v48 = vld [vmem:[#allocation7 + $0x1bd8] sm:$0xff]  ;;  %v10456_v43 = vcombine.low %v2113_v4, %v2117_v0 }
 0x4bf   :  { %8635 = vmatpush1.bf16.msra.mxu0 %v10368_v7  ;;  %v2109_v50 = vld [vmem:[#allocation7 + $0x1bf8] sm:$0xff] }
 0x4c0   :  { %8676 = vmatpush1.bf16.msra.mxu1 %v10496_v45  ;;  %8636 = vmatprep.subr.bf16.mxu0 %v10361_v9  ;;  %v2233_v49 = vld [vmem:[#allocation7 + $0x1fd8] sm:$0xff]  ;;  %v10449_v51 = vcombine.high %v2105_v48, %v2109_v50  ;;  %v10448_v2 = vcombine.low %v2105_v48, %v2109_v50 }
 0x4c1   :  { %8677 = vmatprep.subr.bf16.mxu1 %v10489_v1  ;;  %v2237_v55 = vld [vmem:[#allocation7 + $0x1ff8] sm:$0xff] }
 0x4c2   :  { %v10577_v39 = vcombine.high %v2233_v49, %v2237_v55  ;;  %v2097_v41 = vld [vmem:[#allocation7 + $0x1b98] sm:$0xff]  ;;  %v10576_v44 = vcombine.low %v2233_v49, %v2237_v55 }
 0x4c3   :  { %8637 = vmatpush1.bf16.msra.mxu0 %v10360_v56  ;;  %v2101_v60 = vld [vmem:[#allocation7 + $0x1bb8] sm:$0xff] }
 0x4c4   :  { %8678 = vmatpush1.bf16.msra.mxu1 %v10488_v19  ;;  %8638 = vmatprep.subr.bf16.mxu0 %v10353_v24  ;;  %v2225_v18 = vld [vmem:[#allocation7 + $0x1f98] sm:$0xff]  ;;  %v10441_v58 = vcombine.high %v2097_v41, %v2101_v60  ;;  %v10440_v9 = vcombine.low %v2097_v41, %v2101_v60 }
 0x4c5   :  { %8679 = vmatprep.subr.bf16.mxu1 %v10481_v22  ;;  %v2229_v54 = vld [vmem:[#allocation7 + $0x1fb8] sm:$0xff] }
 0x4c6   :  { %v10569_v29 = vcombine.high %v2225_v18, %v2229_v54  ;;  %v2089_v5 = vld [vmem:[#allocation7 + $0x1b58] sm:$0xff]  ;;  %v10568_v63 = vcombine.low %v2225_v18, %v2229_v54  ;;  %v2266_v18 = vsub.s32 6, %v11118_v62 }
 0x4c7   :  { %8639 = vmatpush1.bf16.msra.mxu0 %v10352_v31  ;;  %v2093_v7 = vld [vmem:[#allocation7 + $0x1b78] sm:$0xff] }
 0x4c8   :  { %8680 = vmatpush1.bf16.msra.mxu1 %v10480_v26  ;;  %8640 = vmatprep.subr.bf16.mxu0 %v10345_v21  ;;  %v2217_v52 = vld [vmem:[#allocation7 + $0x1f58] sm:$0xff]  ;;  %v10433_v1 = vcombine.high %v2089_v5, %v2093_v7  ;;  %v10432_v19 = vcombine.low %v2089_v5, %v2093_v7  ;;  %v8715_v5 = vmax.f32 %v11206_v33, 0.0  ;;  %v10810_v7 = vld [vmem:[#allocation8] sm:$0xff] }
 0x4c9   :  { %8681 = vmatprep.subr.bf16.mxu1 %v10473_v3  ;;  %v2221_v45 = vld [vmem:[#allocation7 + $0x1f78] sm:$0xff] }
 0x4ca   :  { %v10561_v15 = vcombine.high %v2217_v52, %v2221_v45  ;;  %v2081_v16 = vld [vmem:[#allocation7 + $0x1b18] sm:$0xff]  ;;  %v10560_v24 = vcombine.low %v2217_v52, %v2221_v45  ;;  %v2267_v52 = vrot.slane %v10810_v7, %v2266_v18  ;;  %v10746_v45 = vld [vmem:[#allocation10 + $0x38] sm:$0xff]  }
 0x4cb   :  { %8641 = vmatpush1.bf16.msra.mxu0 %v10344_v36  ;;  %v2085_v17 = vld [vmem:[#allocation7 + $0x1b38] sm:$0xff] }
 0x4cc   :  { %8682 = vmatpush1.bf16.msra.mxu1 %v10472_v12  ;;  %8642 = vmatprep.subr.bf16.mxu0 %v10337_v42  ;;  %v2209_v6 = vld [vmem:[#allocation7 + $0x1f18] sm:$0xff]  ;;  %v10425_v22 = vcombine.high %v2081_v16, %v2085_v17  ;;  %v10424_v26 = vcombine.low %v2081_v16, %v2085_v17 }
 0x4cd   :  { %8683 = vmatprep.subr.bf16.mxu1 %v10465_v38  ;;  %v2213_v56 = vld [vmem:[#allocation7 + $0x1f38] sm:$0xff] }
 0x4ce   :  { %v10553_v25 = vcombine.high %v2209_v6, %v2213_v56  ;;  %v2073_v53 = vld [vmem:[#allocation7 + $0x1ad8] sm:$0xff]  ;;  %v10552_v21 = vcombine.low %v2209_v6, %v2213_v56 }
 0x4cf   :  { %8643 = vmatpush1.bf16.msra.mxu0 %v10336_v27  ;;  %v2077_v28 = vld [vmem:[#allocation7 + $0x1af8] sm:$0xff] }
 0x4d0   :  { %8684 = vmatpush1.bf16.msra.mxu1 %v10464_v47  ;;  %8644 = vmatprep.subr.bf16.mxu0 %v10329_v23  ;;  %v2201_v59 = vld [vmem:[#allocation7 + $0x1ed8] sm:$0xff]  ;;  %v10417_v3 = vcombine.high %v2073_v53, %v2077_v28  ;;  %v10416_v12 = vcombine.low %v2073_v53, %v2077_v28 }
 0x4d1   :  { %8685 = vmatprep.subr.bf16.mxu1 %v10457_v8  ;;  %v2205_v31 = vld [vmem:[#allocation7 + $0x1ef8] sm:$0xff] }
 0x4d2   :  { %v10545_v13 = vcombine.high %v2201_v59, %v2205_v31  ;;  %v2065_v37 = vld [vmem:[#allocation7 + $0x1a98] sm:$0xff]  ;;  %v10544_v42 = vcombine.low %v2201_v59, %v2205_v31 }
 0x4d3   :  { %8645 = vmatpush1.bf16.msra.mxu0 %v10328_v57  ;;  %v2069_v34 = vld [vmem:[#allocation7 + $0x1ab8] sm:$0xff] }
 0x4d4   :  { %8686 = vmatpush1.bf16.msra.mxu1 %v10456_v43  ;;  %8646 = vmatprep.subr.bf16.mxu0 %v10449_v51  ;;  %v2193_v35 = vld [vmem:[#allocation7 + $0x1e98] sm:$0xff]  ;;  %v10409_v38 = vcombine.high %v2065_v37, %v2069_v34  ;;  %v10408_v47 = vcombine.low %v2065_v37, %v2069_v34  ;;  %v10757_v37 = vld [vmem:[#allocation10 + $0xe0] sm:$0xff]  }
 0x4d5   :  { %8687 = vmatprep.subr.bf16.mxu1 %v10577_v39  ;;  %v2197_v36 = vld [vmem:[#allocation7 + $0x1eb8] sm:$0xff]  ;;  %v10758_v34 = vld [vmem:[#allocation10 + $0x20] sm:$0xff]  }
 0x4d6   :  { %v10537_v20 = vcombine.high %v2193_v35, %v2197_v36  ;;  %v2057_v40 = vld [vmem:[#allocation7 + $0x1a58] sm:$0xff]  ;;  %v10536_v23 = vcombine.low %v2193_v35, %v2197_v36  ;;  %v10759_v35 = vld [vmem:[#allocation10 + $0xa0] sm:$0xff]   ;;  %v10760_v36 = vld [vmem:[#allocation10 + $0x58] sm:$0xff]  }
 0x4d7   :  { %8647 = vmatpush2.bf16.msra.mxu0 %v10448_v2  ;;  %v2061_v4 = vld [vmem:[#allocation7 + $0x1a78] sm:$0xff]  ;;  %v10744_v2 = vld [vmem:[#allocation10 + $0x78] sm:$0xff]  }
 0x4d8   :  { %8688 = vmatpush2.bf16.msra.mxu1 %v10576_v44  ;;  %8648 = vmatprep.subr.bf16.mxu0 %v10441_v58  ;;  %v2185_v0 = vld [vmem:[#allocation7 + $0x1e58] sm:$0xff]  ;;  %v10401_v8 = vcombine.high %v2057_v40, %v2061_v4  ;;  %v10400_v43 = vcombine.low %v2057_v40, %v2061_v4  ;;  %v10745_v44 = vld [vmem:[#allocation10 + $0xf8] sm:$0xff]   ;;  %v2270_v58 = vsub.s32 7, %v11118_v62  ;;  %v8723_v62 = vpack.c.bf16 %v8715_v5, %v8715_v5  ;;  %v10796_v5 = vld [vmem:[#allocation10 + $0x1e8] sm:$0xff]  }
 0x4d9   :  { %8689 = vmatprep.subr.bf16.mxu1 %v10569_v29  ;;  %v2189_v27 = vld [vmem:[#allocation7 + $0x1e78] sm:$0xff]  ;;  %v8713_v29 = vmax.f32 %v11166_v10, 0.0 }
 0x4da   :  { %v10529_v48 = vcombine.high %v2185_v0, %v2189_v27  ;;  %v2049_v50 = vld [vmem:[#allocation7 + $0x1a18] sm:$0xff]  ;;  %v10528_v51 = vcombine.low %v2185_v0, %v2189_v27  ;;  %v10768_v27 = vld [vmem:[#allocation10 + $0x48] sm:$0xff]  }
 0x4db   :  { %8649 = vmatpush2.bf16.msra.mxu0 %v10440_v9  ;;  %v2053_v49 = vld [vmem:[#allocation7 + $0x1a38] sm:$0xff]  ;;  %v10747_v9 = vld [vmem:[#allocation10 + $0xb8] sm:$0xff]  }
 0x4dc   :  { %8690 = vmatpush2.bf16.msra.mxu1 %v10568_v63  ;;  %8650 = vmatprep.subr.bf16.mxu0 %v10433_v1  ;;  %v2177_v55 = vld [vmem:[#allocation7 + $0x1e18] sm:$0xff]  ;;  %v10393_v39 = vcombine.high %v2049_v50, %v2053_v49  ;;  %v10392_v60 = vcombine.low %v2049_v50, %v2053_v49  ;;  %v2271_v63 = vrot.slane %v10810_v7, %v2270_v58  ;;  %v10773_v50 = vld [vmem:[#allocation10 + $0xc0] sm:$0xff]   ;;  %v10781_v7 = vld [vmem:[#allocation10 + $0x128] sm:$0xff]  }
 0x4dd   :  { %8691 = vmatprep.subr.bf16.mxu1 %v10561_v15  ;;  %v2181_v57 = vld [vmem:[#allocation7 + $0x1e38] sm:$0xff]  ;;  %v8721_v15 = vpack.c.bf16 %v8713_v29, %v8713_v29  ;;  %v10774_v49 = vld [vmem:[#allocation10] sm:$0xff]  }
 0x4de   :  { %v10521_v41 = vcombine.high %v2177_v55, %v2181_v57  ;;  %v10520_v54 = vcombine.low %v2177_v55, %v2181_v57  ;;  %v10748_v1 = vld [vmem:[#allocation10 + $0x70] sm:$0xff]   ;;  %v8712_v55 = vmax.f32 %v11162_v61, 0.0  ;;  %v10775_v57 = vld [vmem:[#allocation10 + $0x80] sm:$0xff]  }
 0x4df   :  { %8651 = vmatpush2.bf16.msra.mxu0 %v10432_v19  ;;  %v10749_v17 = vld [vmem:[#allocation10 + $0xf0] sm:$0xff]  }
 0x4e0   :  { %8692 = vmatpush2.bf16.msra.mxu1 %v10560_v24  ;;  %8652 = vmatprep.subr.bf16.mxu0 %v10425_v22  ;;  %v10750_v33 = vld [vmem:[#allocation10 + $0x30] sm:$0xff]   ;;  %v10752_v24 = vld [vmem:[#allocation10 + $0x68] sm:$0xff]   ;;  %v8720_v18 = vpack.c.bf16 %v8712_v55, %v8712_v55 }
 0x4e1   :  { %8693 = vmatprep.subr.bf16.mxu1 %v10553_v25  ;;  %v10751_v19 = vld [vmem:[#allocation10 + $0xb0] sm:$0xff]  }
 0x4e2   :  { %v10765_v40 = vld [vmem:[#allocation10 + $0xd0] sm:$0xff]  }
 0x4e3   :  { %8653 = vmatpush2.bf16.msra.mxu0 %v10424_v26  ;;  %v10766_v4 = vld [vmem:[#allocation10 + $0x10] sm:$0xff]  }
 0x4e4   :  { %8694 = vmatpush2.bf16.msra.mxu1 %v10552_v21  ;;  %8654 = vmatprep.subr.bf16.mxu0 %v10417_v3  ;;  %v10755_v21 = vld [vmem:[#allocation10 + $0xa8] sm:$0xff]   ;;  %v10756_v3 = vld [vmem:[#allocation10 + $0x60] sm:$0xff]   ;;  %v10767_v0 = vld [vmem:[#allocation10 + $0x90] sm:$0xff]  }
 0x4e5   :  { %8695 = vmatprep.subr.bf16.mxu1 %v10545_v13  ;;  %v10794_v58 = vld [vmem:[#allocation10 + $0x1f0] sm:$0xff]  }
 0x4e6   :  { %v10779_v29 = vld [vmem:[#allocation10 + $0x130] sm:$0xff]  }
 0x4e7   :  { %8655 = vmatpush2.bf16.msra.mxu0 %v10416_v12  ;;  %v10761_v12 = vld [vmem:[#allocation10 + $0xd8] sm:$0xff]  }
 0x4e8   :  { %8696 = vmatpush2.bf16.msra.mxu1 %v10544_v42  ;;  %8656 = vmatprep.subr.bf16.mxu0 %v10409_v38  ;;  %v10762_v42 = vld [vmem:[#allocation10 + $0x18] sm:$0xff]  }
 0x4e9   :  { %8697 = vmatprep.subr.bf16.mxu1 %v10537_v20  ;;  %v10763_v38 = vld [vmem:[#allocation10 + $0x98] sm:$0xff]   ;;  %v10764_v20 = vld [vmem:[#allocation10 + $0x50] sm:$0xff]  }
 0x4eb   :  { %8657 = vmatpush2.bf16.msra.mxu0 %v10408_v47  ;;  %v10769_v47 = vld [vmem:[#allocation10 + $0xc8] sm:$0xff]  }
 0x4ec   :  { %8698 = vmatpush2.bf16.msra.mxu1 %v10536_v23  ;;  %8658 = vmatprep.subr.bf16.mxu0 %v10401_v8  ;;  %v10770_v23 = vld [vmem:[#allocation10 + $0x8] sm:$0xff]  }
 0x4ed   :  { %8699 = vmatprep.subr.bf16.mxu1 %v10529_v48  ;;  %v10771_v8 = vld [vmem:[#allocation10 + $0x88] sm:$0xff]   ;;  %v10772_v48 = vld [vmem:[#allocation10 + $0x40] sm:$0xff]  }
 0x4ef   :  { %8659 = vmatpush2.bf16.msra.mxu0 %v10400_v43  ;;  %v10776_v43 = vld [vmem:[#allocation10 + $0x178] sm:$0xff]  }
 0x4f0   :  { %8700 = vmatpush2.bf16.msra.mxu1 %v10528_v51  ;;  %8660 = vmatprep.subr.bf16.mxu0 %v10393_v39  ;;  %v8714_v51 = vmax.f32 %v11202_v11, 0.0  ;;  %v10792_v39 = vld [vmem:[#allocation10 + $0x1f8] sm:$0xff]   ;;  %v10780_v11 = vld [vmem:[#allocation10 + $0x168] sm:$0xff]  }
 0x4f1   :  { %8701 = vmatprep.subr.bf16.mxu1 %v10521_v41  ;;  %v8717_v41 = vmax.f32 %v11246_v46, 0.0  ;;  %v10795_v46 = vld [vmem:[#allocation10 + $0x1b0] sm:$0xff]  }
 0x4f3   :  { %8661 = vmatpush2.bf16.msra.mxu0 %v10392_v60  ;;  %v10777_v60 = vld [vmem:[#allocation10 + $0x138] sm:$0xff]   ;;  %v8725_v61 = vpack.c.bf16 %v8717_v41, %v8717_v41 }
 0x4f4   :  { %8702 = vmatpush2.bf16.msra.mxu1 %v10520_v54  ;;  %10643 = vmatprep.subr.bf16.mxu0 %v10744_v2  ;;  %v10778_v54 = vld [vmem:[#allocation10 + $0x170] sm:$0xff]   ;;  %v8722_v2 = vpack.c.bf16 %v8714_v51, %v8714_v51 }
 0x4f5   :  { %10665 = vmatprep.subr.bf16.mxu1 %v10745_v44  ;;  %v10793_v44 = vld [vmem:[#allocation10 + $0x1b8] sm:$0xff]  }
 0x4f6   :  { %v8418_v16 = vpop.f32.mrf.mxu0  ;;  %8663 = vmatmul.mubr.bf16.vlgmr.msra.gmra.mxu0 %v11124_v30  ;;  %v10753_v30 = vld [vmem:[#allocation10 + $0xe8] sm:$0xff]  }
 0x4f7   :  { %v8419_v6 = vadd.f32 %v8418_v16, %v2267_v52  ;;  %v8459_v10 = vpop.f32.mrf.mxu1  ;;  %8704 = vmatmul.mubr.bf16.vlgmr.msra.gmra.mxu1 %v11128_v32  ;;  %10644 = vmatpush3.bf16.msra.mxu0 %v10746_v45  ;;  %v10754_v32 = vld [vmem:[#allocation10 + $0x28] sm:$0xff]   ;;  %v10782_v52 = vld [vmem:[#allocation10 + $0x160] sm:$0xff]   ;;  %v10800_v16 = vld [vmem:[#allocation10 + $0x1d8] sm:$0xff]  }
 0x4f8   :  { %9279 = vmatprep.mubr.bf16.mxu0 %v8721_v15  ;;  %10666 = vmatpush3.bf16.msra.mxu1 %v10747_v9  ;;  %v8420_v56 = vpop.f32.mrf.mxu0  ;;  %v10797_v45 = vld [vmem:[#allocation10 + $0x1a8] sm:$0xff]   ;;  %v10798_v9 = vld [vmem:[#allocation10 + $0x1e0] sm:$0xff]  }
 0x4f9   :  { %v11254_v22 = vadd.f32 %v8459_v10, %v8419_v6  ;;  %9319 = vmatprep.mubr.bf16.mxu1 %v8723_v62  ;;  %v8421_v25 = vadd.f32 %v8420_v56, %v2271_v63  ;;  %v8461_v53 = vpop.f32.mrf.mxu1  ;;  %10645 = vmatprep.subr.bf16.mxu0 %v10748_v1  ;;  %v10783_v63 = vld [vmem:[#allocation10 + $0x120] sm:$0xff]   ;;  %v10784_v1 = vld [vmem:[#allocation10 + $0x158] sm:$0xff]   ;;  %v10786_v62 = vld [vmem:[#allocation10 + $0x150] sm:$0xff]  }
 0x4fa   :  { %v8422_v28 = vpop.f32.mrf.mxu0  ;;  %10667 = vmatprep.subr.bf16.mxu1 %v10749_v17  ;;  %v10799_v15 = vld [vmem:[#allocation10 + $0x1a0] sm:$0xff]   ;;  %v10785_v17 = vld [vmem:[#allocation10 + $0x118] sm:$0xff]   ;;  %v10787_v10 = vld [vmem:[#allocation10 + $0x110] sm:$0xff]  }
 0x4fb   :  { %v11256_v59 = vadd.f32 %v8461_v53, %v8421_v25  ;;  %v8463_v31 = vpop.f32.mrf.mxu1  ;;  %10646 = vmatpush3.bf16.msra.mxu0 %v10750_v33  ;;  %v10801_v6 = vld [vmem:[#allocation10 + $0x198] sm:$0xff]   ;;  %v10788_v33 = vld [vmem:[#allocation10 + $0x148] sm:$0xff]   ;;  %v8716_v25 = vmax.f32 %v11242_v14, 0.0  ;;  %v10802_v28 = vld [vmem:[#allocation10 + $0x1d0] sm:$0xff]  }
 0x4fc   :  { %10668 = vmatpush3.bf16.msra.mxu1 %v10751_v19  ;;  %v8423_v26 = vpop.f32.mrf.mxu0  ;;  %10647 = vmatprep.subr.bf16.mxu0 %v10752_v24  ;;  %v10789_v56 = vld [vmem:[#allocation10 + $0x108] sm:$0xff]   ;;  %v10790_v19 = vld [vmem:[#allocation10 + $0x140] sm:$0xff]  }
 0x4fd   :  { %v8464_v13 = vpop.f32.mrf.mxu1  ;;  %10669 = vmatprep.subr.bf16.mxu1 %v10753_v30  ;;  %v10791_v24 = vld [vmem:[#allocation10 + $0x100] sm:$0xff]   ;;  %v8724_v53 = vpack.c.bf16 %v8716_v25, %v8716_v25  ;;  %v10803_v26 = vld [vmem:[#allocation10 + $0x190] sm:$0xff]  }
 0x4ff   :  { %10648 = vmatpush3.bf16.msra.mxu0 %v10754_v32 }
 0x500   :  { %10670 = vmatpush3.bf16.msra.mxu1 %v10755_v21  ;;  %10649 = vmatprep.subr.bf16.mxu0 %v10756_v3 }
 0x501   :  { %10671 = vmatprep.subr.bf16.mxu1 %v10757_v37 }
 0x503   :  { %10650 = vmatpush3.bf16.msra.mxu0 %v10758_v34 }
 0x504   :  { %10672 = vmatpush3.bf16.msra.mxu1 %v10759_v35  ;;  %10651 = vmatprep.subr.bf16.mxu0 %v10760_v36  ;;  %v10804_v35 = vld [vmem:[#allocation10 + $0x1c8] sm:$0xff]  }
 0x505   :  { %10673 = vmatprep.subr.bf16.mxu1 %v10761_v12  ;;  %v10805_v12 = vld [vmem:[#allocation10 + $0x188] sm:$0xff]  }
 0x507   :  { %10652 = vmatpush3.bf16.msra.mxu0 %v10762_v42 }
 0x508   :  { %10674 = vmatpush3.bf16.msra.mxu1 %v10763_v38  ;;  %10653 = vmatprep.subr.bf16.mxu0 %v10764_v20  ;;  %v10806_v20 = vld [vmem:[#allocation10 + $0x1c0] sm:$0xff]  }
 0x509   :  { %10675 = vmatprep.subr.bf16.mxu1 %v10765_v40 }
 0x50b   :  { %10654 = vmatpush3.bf16.msra.mxu0 %v10766_v4 }
 0x50c   :  { %10676 = vmatpush3.bf16.msra.mxu1 %v10767_v0  ;;  %10655 = vmatprep.subr.bf16.mxu0 %v10768_v27 }
 0x50d   :  { %10677 = vmatprep.subr.bf16.mxu1 %v10769_v47 }
 0x50f   :  { %10656 = vmatpush3.bf16.msra.mxu0 %v10770_v23 }
 0x510   :  { %10678 = vmatpush3.bf16.msra.mxu1 %v10771_v8  ;;  %10657 = vmatprep.subr.bf16.mxu0 %v10772_v48 }
 0x511   :  { %10679 = vmatprep.subr.bf16.mxu1 %v10773_v50 }
 0x513   :  { %10658 = vmatpush3.bf16.msra.mxu0 %v10774_v49 }
 0x514   :  { %10680 = vmatpush3.bf16.msra.mxu1 %v10775_v57  ;;  %10687 = vmatprep.subr.bf16.mxu0 %v10776_v43 }
 0x515   :  { %10709 = vmatprep.subr.bf16.mxu1 %v10792_v39 }
 0x516   :  { %9280 = vmatmul.mubr.bf16.vlgmr.msra.gmra.mxu0 %v8720_v18 }
 0x517   :  { %9320 = vmatmul.mubr.bf16.vlgmr.msra.gmra.mxu1 %v8722_v2  ;;  %10688 = vmatpush3.bf16.msra.mxu0 %v10777_v60 }
 0x518   :  { %9359 = vmatprep.mubr.bf16.mxu0 %v8725_v61  ;;  %10689 = vmatprep.subr.bf16.mxu0 %v10778_v54 }
 0x519   :  { %10710 = vmatpush3.bf16.msra.mxu1 %v10793_v44 }
 0x51a   :  { %10711 = vmatprep.subr.bf16.mxu1 %v10794_v58 }
 0x51b   :  { %10690 = vmatpush3.bf16.msra.mxu0 %v10779_v29 }
 0x51c   :  { %10691 = vmatprep.subr.bf16.mxu0 %v10780_v11 }
 0x51d   :  { %10712 = vmatpush3.bf16.msra.mxu1 %v10795_v46 }
 0x51e   :  { %10713 = vmatprep.subr.bf16.mxu1 %v10796_v5 }
 0x51f   :  { %10692 = vmatpush3.bf16.msra.mxu0 %v10781_v7 }
 0x520   :  { %10693 = vmatprep.subr.bf16.mxu0 %v10782_v52 }
 0x521   :  { %10714 = vmatpush3.bf16.msra.mxu1 %v10797_v45  ;;  %v10578_v45 = vld [vmem:[#allocation11] ss:$0 sm:$0xff] }
 0x522   :  { %10715 = vmatprep.subr.bf16.mxu1 %v10798_v9 }
 0x523   :  { %10694 = vmatpush3.bf16.msra.mxu0 %v10783_v63 }
 0x524   :  { %10695 = vmatprep.subr.bf16.mxu0 %v10784_v1 }
 0x525   :  { %10716 = vmatpush3.bf16.msra.mxu1 %v10799_v15 }
 0x526   :  { %10717 = vmatprep.subr.bf16.mxu1 %v10800_v16 }
 0x527   :  { %10696 = vmatpush3.bf16.msra.mxu0 %v10785_v17 }
 0x528   :  { %10697 = vmatprep.subr.bf16.mxu0 %v10786_v62 }
 0x529   :  { %10718 = vmatpush3.bf16.msra.mxu1 %v10801_v6 }
 0x52a   :  { %10719 = vmatprep.subr.bf16.mxu1 %v10802_v28 }
 0x52b   :  { %10698 = vmatpush3.bf16.msra.mxu0 %v10787_v10 }
 0x52c   :  { %10699 = vmatprep.subr.bf16.mxu0 %v10788_v33 }
 0x52d   :  { %10720 = vmatpush3.bf16.msra.mxu1 %v10803_v26 }
 0x52e   :  { %10721 = vmatprep.subr.bf16.mxu1 %v10804_v35 }
 0x52f   :  { %10700 = vmatpush3.bf16.msra.mxu0 %v10789_v56 }
 0x530   :  { %10701 = vmatprep.subr.bf16.mxu0 %v10790_v19 }
 0x531   :  { %10722 = vmatpush3.bf16.msra.mxu1 %v10805_v12 }
 0x532   :  { %10723 = vmatprep.subr.bf16.mxu1 %v10806_v20 }
 0x533   :  { %10702 = vmatpush3.bf16.msra.mxu0 %v10791_v24 }
 0x536   :  { %v8500_v30 = vpop.f32.mrf.mxu0  ;;  %9360 = vmatmul.mubr.bf16.vlgmr.msra.gmra.mxu0 %v8724_v53 }
 0x537   :  { %v8501_v31 = vadd.f32 %v8500_v30, %v11254_v22  ;;  %v8541_v32 = vpop.f32.mrf.mxu1  ;;  %v10807_v22 = vld [vmem:[#allocation10 + $0x180] sm:$0xff]  }
 0x538   :  { %v8502_v21 = vpop.f32.mrf.mxu0  ;;  %10724 = vmatpush3.bf16.msra.mxu1 %v10807_v22 }
 0x539   :  { %v8542_v3 = vadd.f32 %v8541_v32, %v8501_v31  ;;  %v8503_v13 = vadd.f32 %v8502_v21, %v11256_v59  ;;  %v8543_v37 = vpop.f32.mrf.mxu1 }
 0x53a   :  { %v8504_v34 = vpop.f32.mrf.mxu0 }
 0x53b   :  { %v8544_v14 = vadd.f32 %v8543_v37, %v8503_v13  ;;  %v8545_v36 = vpop.f32.mrf.mxu1 }
 0x53c   :  { %v8505_v42 = vpop.f32.mrf.mxu0 }
 0x53d   :  { %v8546_v38 = vpop.f32.mrf.mxu1 }
 0x576   :  { %v8582_v40 = vpop.f32.mrf.mxu0 }
 0x577   :  { %v8583_v4 = vadd.f32 %v8582_v40, %v8542_v3  ;;  %v8623_v0 = vpop.f32.mrf.mxu1 }
 0x578   :  { %v8584_v27 = vpop.f32.mrf.mxu0 }
 0x579   :  { %v8624_v59 = vadd.f32 %v8623_v0, %v8583_v4  ;;  %v8625_v47 = vpop.f32.mrf.mxu1  ;;  %v8585_v49 = vadd.f32 %v8584_v27, %v8544_v14 }
 0x57a   :  { %v8586_v23 = vpop.f32.mrf.mxu0 }
 0x57b   :  { %v8627_v8 = vpop.f32.mrf.mxu1  ;;  %v8626_v57 = vadd.f32 %v8625_v47, %v8585_v49 }
 0x57c   :  { %v8587_v48 = vpop.f32.mrf.mxu0 }
 0x57d   :  { %v8628_v50 = vpop.f32.mrf.mxu1 }
 0x5b6   :  { %v8664_v55 = vpop.f32.mrf.mxu0 }
 0x5b7   :  { %v8665_v43 = vadd.f32 %v8664_v55, %v8624_v59  ;;  %v8705_v51 = vpop.f32.mrf.mxu1 }
 0x5b8   :  { %v8666_v39 = vpop.f32.mrf.mxu0 }
 0x5b9   :  { %v8706_v41 = vadd.f32 %v8705_v51, %v8665_v43  ;;  %v8667_v60 = vadd.f32 %v8666_v39, %v8626_v57  ;;  %v8707_v18 = vpop.f32.mrf.mxu1 }
 0x5ba   :  { %v8668_v54 = vpop.f32.mrf.mxu0 }
 0x5bb   :  { %v8708_v2 = vadd.f32 %v8707_v18, %v8667_v60  ;;  %v8709_v44 = vpop.f32.mrf.mxu1  ;;  %v8718_v61 = vmax.f32 %v8706_v41, 0.0 }
 0x5bc   :  { %v8669_v58 = vpop.f32.mrf.mxu0 }
 0x5bd   :  { %v8719_v29 = vmax.f32 %v8708_v2, 0.0  ;;  %v8710_v11 = vpop.f32.mrf.mxu1  ;;  %v8726_v5 = vpack.c.bf16 %v8718_v61, %v8718_v61 }
 0x5bf   :  { %v8727_v46 = vpack.c.bf16 %v8719_v29, %v8719_v29 }
 0x5c1   :  { %9399 = vmatprep.mubr.bf16.mxu1 %v8727_v46 }
 0x5c2   :  { %9400 = vmatmul.mubr.bf16.vlgmr.msra.gmra.mxu1 %v8726_v5 }
 0x5d6   :  { %v10659_v7 = vpop.f32.mrf.mxu0 }
 0x5d7   :  { %v10681_v52 = vpop.f32.mrf.mxu1 }
 0x5d8   :  { %v10660_v9 = vpop.f32.mrf.mxu0 }
 0x5d9   :  { %v10661_v63 = vadd.f32 %v10660_v9, %v10659_v7  ;;  %v10682_v1 = vpop.f32.mrf.mxu1 }
 0x5da   :  { %v10683_v15 = vadd.f32 %v10682_v1, %v10681_v52  ;;  %v10662_v16 = vpop.f32.mrf.mxu0 }
 0x5db   :  { %v9282_v17 = vadd.f32 %v10661_v63, %v10578_v45  ;;  %v10684_v62 = vpop.f32.mrf.mxu1 }
 0x5dc   :  { %v10663_v6 = vpop.f32.mrf.mxu0 }
 0x5dd   :  { %v9322_v10 = vadd.f32 %v10683_v15, %v9282_v17  ;;  %v10685_v33 = vpop.f32.mrf.mxu1 }
 0x5f6   :  { %v10703_v56 = vpop.f32.mrf.mxu0 }
 0x5f8   :  { %v10704_v19 = vpop.f32.mrf.mxu0 }
 0x5f9   :  { %v10705_v24 = vadd.f32 %v10704_v19, %v10703_v56 }
 0x5fa   :  { %v10706_v25 = vpop.f32.mrf.mxu0 }
 0x5fb   :  { %v9362_v53 = vadd.f32 %v10705_v24, %v9322_v10 }
 0x5fc   :  { %v10707_v30 = vpop.f32.mrf.mxu0 }
 0x682   :  { %v10725_v28 = vpop.f32.mrf.mxu1 }
 0x684   :  { %v10726_v31 = vpop.f32.mrf.mxu1 }
 0x685   :  { %v10727_v32 = vadd.f32 %v10726_v31, %v10725_v28 }
 0x686   :  { %v10728_v26 = vpop.f32.mrf.mxu1 }
 0x687   :  { %v9402_v21 = vadd.f32 %v10727_v32, %v9362_v53 }
 0x688   :  { %v10729_v3 = vpop.f32.mrf.mxu1 }
 0x689   :  { %9407 = vst [vmem:[#allocation13] sm:$0xff] %v9402_v21 }
 0x68a   :  { %10942 = shalt.err (!%p10939_p6)
}
 0x68b   :  { %9417 = dma.vmem_to_hbm [thread:$0]  %s9415_s5, 128, %s11273_s6, [#allocation4]  }
 0x68c   :  { %10959 = dma.done.wait [#allocation4], 128  }
 0x68d   :  { %10960 = vsyncadd [#allocation4], 4294967168 }
 0x68e   :  { %9421 = vsyncpa [#allocation3], 1 }
 0x68f   :  { %9422 = vsyncpa [#allocation6], 1 }
 0x690   :  { %9423 = vsyncpa [#allocation9], 1 }
 0x691   :  { %9424 = vsyncpa [#allocation12], 1 }
 0x692   :  { %9425 = vsyncpa [#allocation4], 1 }

</bundles_post_ra>
